<compile_context>
chip_gen: v6e
topology: v6e:2x2x1
jax: 0.10.0
libtpu: 0.0.40
codegen_flags: <defaults>
</compile_context>

<pallas_src>
import functools

import jax
import jax.numpy as jnp
from jax.experimental import pallas as pl
from jax.experimental.pallas import tpu as pltpu


# ----------------------------------------------------------------------------
# In-kernel helpers
# ----------------------------------------------------------------------------
def _layer_norm(x, gamma, beta, eps=1e-5):
    mean = jnp.mean(x, axis=-1, keepdims=True)
    var = jnp.mean((x - mean) ** 2, axis=-1, keepdims=True)
    return (x - mean) * jax.lax.rsqrt(var + eps) * gamma + beta


def _bf16(x):
    return x.astype(jnp.bfloat16)


# ----------------------------------------------------------------------------
# Fused encoder + classifier kernel.
# Grid: (batch_tiles, num_layers); layer axis is "arbitrary" (sequential carry
# through a VMEM activation scratch), batch axis is "parallel" (megacore).
# ----------------------------------------------------------------------------
def fused_kernel(x_ref,
                 wqkv_ref, wo_ref, w1_ref, w2_ref, vec_ref,
                 cw1_ref, cb1_ref, cw2_ref, cb2_ref,
                 logits_ref, h_scr, *, num_heads, batched_heads):
    l = pl.program_id(1)
    n_layers = pl.num_programs(1)

    # Load the (bf16) embeddings into the resident f32 activation scratch.
    @pl.when(l == 0)
    def _():
        h_scr[...] = x_ref[...].astype(jnp.float32)

    TB, S, D = h_scr.shape
    H = num_heads
    Dh = D // H
    F = w1_ref.shape[-1]
    scale = 1.0 / (Dh ** 0.5)

    # Packed per-layer vectors: one (8, maxN) block, sliced in-register.
    vec = vec_ref[...]
    bqkv = vec[0:1, :3 * D]
    bo   = vec[1:2, :D]
    ln1g = vec[2:3, :D]
    ln1b = vec[3:4, :D]
    ln2g = vec[4:5, :D]
    ln2b = vec[5:6, :D]
    b1   = vec[6:7, :F]
    b2   = vec[7:8, :D]

    x = h_scr[...].reshape(TB * S, D)                       # (TB*S, D) f32

    # ---- multi-head self-attention (pre-norm) ----
    ln1 = _layer_norm(x, ln1g, ln1b)
    qkv = jnp.dot(_bf16(ln1), wqkv_ref[...],                # one (D, 3D) matmul
                  preferred_element_type=jnp.float32) + bqkv

    if batched_heads:
        # All heads in one batched MXU issue; scale folded into q (Dh-wide).
        q = (qkv[:, :D] * scale).reshape(TB, S, H, Dh)
        k = qkv[:, D:2 * D].reshape(TB, S, H, Dh)
        v = qkv[:, 2 * D:].reshape(TB, S, H, Dh)
        s = jnp.einsum('bqhd,bkhd->bhqk', _bf16(q), _bf16(k),
                       preferred_element_type=jnp.float32)
        s = s - jnp.max(s, axis=-1, keepdims=True)
        p = jnp.exp(s)
        p = p * pl.reciprocal(jnp.sum(p, axis=-1, keepdims=True), approx=True)
        o = jnp.einsum('bhqk,bkhd->bqhd', _bf16(p), _bf16(v),
                       preferred_element_type=jnp.float32)
        attn = o.reshape(TB * S, D)
    else:
        # Fallback path (known-good lowering): static per-head loop.
        q = (qkv[:, :D] * scale).reshape(TB, S, D)
        k = qkv[:, D:2 * D].reshape(TB, S, D)
        v = qkv[:, 2 * D:].reshape(TB, S, D)
        head_outs = []
        for h in range(H):
            lo = h * Dh
            qh = _bf16(q[:, :, lo:lo + Dh])
            kh = _bf16(k[:, :, lo:lo + Dh])
            vh = _bf16(v[:, :, lo:lo + Dh])
            s = jnp.einsum('bqd,bkd->bqk', qh, kh,
                           preferred_element_type=jnp.float32)
            s = s - jnp.max(s, axis=-1, keepdims=True)
            p = jnp.exp(s)
            p = p * pl.reciprocal(jnp.sum(p, axis=-1, keepdims=True),
                                  approx=True)
            head_outs.append(jnp.einsum('bqk,bkd->bqd', _bf16(p), vh,
                                        preferred_element_type=jnp.float32))
        attn = jnp.concatenate(head_outs, axis=-1).reshape(TB * S, D)

    attn_out = jnp.dot(_bf16(attn), wo_ref[...],
                       preferred_element_type=jnp.float32) + bo
    x = x + attn_out                                        # residual

    # ---- feed-forward (pre-norm) ----
    ln2 = _layer_norm(x, ln2g, ln2b)
    h1 = jnp.maximum(jnp.dot(_bf16(ln2), w1_ref[...],
                             preferred_element_type=jnp.float32) + b1, 0.0)
    out = x + jnp.dot(_bf16(h1), w2_ref[...],
                      preferred_element_type=jnp.float32) + b2

    # Carry activations to the next layer; the last layer only needs `out`
    # for the pooled classifier path, so skip the dead VMEM store.
    @pl.when(l < n_layers - 1)
    def _():
        h_scr[...] = out.reshape(TB, S, D)

    # ---- last layer: fused mean-pool + classifier MLP ----
    @pl.when(l == n_layers - 1)
    def _():
        pooled = jnp.sum(out.reshape(TB, S, D), axis=1) * (1.0 / S)  # (TB, D)
        hc = jnp.maximum(jnp.dot(_bf16(pooled), cw1_ref[...],
                                 preferred_element_type=jnp.float32)
                         + cb1_ref[...], 0.0)
        logits = jnp.dot(_bf16(hc), cw2_ref[...],
                         preferred_element_type=jnp.float32) + cb2_ref[...]
        logits_ref[...] = logits.astype(logits_ref.dtype)


# ----------------------------------------------------------------------------
# VMEM-budget-aware tiling
# ----------------------------------------------------------------------------
def _vmem_capacity_bytes():
    try:
        return int(pltpu.get_tpu_info().vmem_capacity_bytes)
    except Exception:
        return 64 * 1024 * 1024        # conservative (v7x-sized) default


def _pick_tb(B, S, D, F, H, CH, Cpad, budget_bytes):
    bf16, f32 = 2, 4
    maxN = max(3 * D, F)
    # Double-buffered per-layer weights + single-buffered classifier weights.
    w_layer = (D * 3 * D + D * D + D * F + F * D) * bf16 + 8 * maxN * f32
    fixed = 2 * w_layer + (D * CH + CH * Cpad) * bf16 + (CH + Cpad) * f32

    def needed(tb):
        n = tb * S
        return (fixed
                + tb * S * D * f32            # resident activation scratch
                + 2 * tb * S * D * bf16       # double-buffered bf16 embeddings
                + 2 * tb * Cpad * f32         # logits block
                + n * 3 * D * f32             # qkv slab
                + 2 * tb * H * S * S * f32    # scores + probs
                + n * F * f32                 # FFN hidden slab
                + 3 * n * D * f32)            # ln / attn / residual temporaries

    cands = [t for t in range(min(B, 512), 0, -1) if B % t == 0]
    prefs = (lambda t: t % 8 == 0 and (t * S) % 256 == 0,   # v6e MXU-friendly
             lambda t: t % 8 == 0,
             lambda t: True)
    for pref in prefs:
        for t in cands:
            if pref(t) and needed(t) <= budget_bytes:
                return t
    return 1


# ----------------------------------------------------------------------------
# pallas_call wrapper
# ----------------------------------------------------------------------------
def fused_forward(x_emb, params, *, num_heads):
    B, S, D = x_emb.shape
    L = params["wqkv"].shape[0]
    F = params["w1"].shape[2]
    CH = params["cw1"].shape[1]
    Cpad = params["cw2"].shape[1]
    maxN = params["vecs"].shape[2]
    assert D % num_heads == 0

    vmem_cap = _vmem_capacity_bytes()
    vmem_limit = max(32 * 1024 * 1024,
                     min(int(vmem_cap * 0.84), 112 * 1024 * 1024))
    TB = _pick_tb(B, S, D, F, num_heads, CH, Cpad, int(vmem_limit * 0.8))
    nb = B // TB

    def build(batched_heads, buffer_const):
        kernel = functools.partial(fused_kernel, num_heads=num_heads,
                                   batched_heads=batched_heads)

        def layer_spec(*shape):     # per-layer stacked weights, squeezed layer dim
            return pl.BlockSpec((None,) + shape,
                                lambda b, l: (l,) + (0,) * len(shape))

        def const_spec(*shape):     # grid-invariant classifier weights
            if buffer_const:
                return pl.BlockSpec(shape, lambda b, l: (0,) * len(shape),
                                    pipeline_mode=pl.Buffered(1))
            return pl.BlockSpec(shape, lambda b, l: (0,) * len(shape))

        in_specs = [
            pl.BlockSpec((TB, S, D), lambda b, l: (b, 0, 0)),   # bf16 embeddings
            layer_spec(D, 3 * D),                               # Wqkv
            layer_spec(D, D),                                   # Wo
            layer_spec(D, F),                                   # W1
            layer_spec(F, D),                                   # W2
            layer_spec(8, maxN),                                # packed vectors
            const_spec(D, CH), const_spec(1, CH),               # classifier W1,b1
            const_spec(CH, Cpad), const_spec(1, Cpad),          # classifier W2,b2
        ]
        out_spec = pl.BlockSpec((TB, Cpad), lambda b, l: (b, 0))

        out = pl.pallas_call(
            kernel,
            out_shape=jax.ShapeDtypeStruct((B, Cpad), jnp.float32),
            grid=(nb, L),
            in_specs=in_specs,
            out_specs=out_spec,
            scratch_shapes=[pltpu.VMEM((TB, S, D), jnp.float32)],
            compiler_params=pltpu.CompilerParams(
                dimension_semantics=("parallel", "arbitrary"),
                vmem_limit_bytes=vmem_limit),
        )(x_emb,
          params["wqkv"], params["wo"], params["w1"], params["w2"],
          params["vecs"],
          params["cw1"], params["cb1"], params["cw2"], params["cb2"])
        return jax.block_until_ready(out)

    # Prefer the fully-optimized configuration; fall back if a feature
    # (multi-batch-dim dot / Buffered(1)) is unsupported by this Mosaic build.
    last_err = None
    for batched_heads, buffer_const in ((True, True), (True, False),
                                        (False, True), (False, False)):
        try:
            return build(batched_heads, buffer_const)
        except Exception as e:          # pragma: no cover - lowering fallback
            last_err = e
    raise last_err


# ----------------------------------------------------------------------------
# Parameter init (deterministic, synthetic) + full forward
# ----------------------------------------------------------------------------
def init_params(key, *, vocab, max_seq, D, F, n_layers, clf_hidden, n_classes):
    Cpad = max(128, ((n_classes + 127) // 128) * 128)
    maxN = max(3 * D, F)
    k = jax.random.split(key, 8)
    std = 0.02

    # Packed per-layer vectors: rows = [bqkv, bo, ln1g, ln1b, ln2g, ln2b, b1, b2]
    vecs = jnp.zeros((n_layers, 8, maxN), jnp.float32)
    vecs = vecs.at[:, 2, :D].set(1.0)   # ln1 gamma
    vecs = vecs.at[:, 4, :D].set(1.0)   # ln2 gamma

    return {
        "tok_emb": std * jax.random.normal(k[0], (vocab, D), jnp.float32),
        "pos_emb": std * jax.random.normal(k[1], (max_seq, D), jnp.float32),
        # stacked per-layer matmul weights (leading axis = layer), bf16
        "wqkv": (std * jax.random.normal(k[2], (n_layers, D, 3 * D))).astype(jnp.bfloat16),
        "wo":   (std * jax.random.normal(k[3], (n_layers, D, D))).astype(jnp.bfloat16),
        "w1":   (std * jax.random.normal(k[4], (n_layers, D, F))).astype(jnp.bfloat16),
        "w2":   (std * jax.random.normal(k[5], (n_layers, F, D))).astype(jnp.bfloat16),
        "vecs": vecs,
        # classifier MLP; logits padded to a lane-dense 128-wide slab
        "cw1":  (std * jax.random.normal(k[6], (D, clf_hidden))).astype(jnp.bfloat16),
        "cb1":  jnp.zeros((1, clf_hidden), jnp.float32),
        "cw2":  jnp.pad(std * jax.random.normal(k[7], (clf_hidden, n_classes)),
                        ((0, 0), (0, Cpad - n_classes))).astype(jnp.bfloat16),
        "cb2":  jnp.zeros((1, Cpad), jnp.float32),
        "n_classes": n_classes,
    }


def unified_classifier_forward(x_tokens, params, num_heads):
    # Glue: token-embedding gather + positional embedding stays in plain JAX.
    B, S = x_tokens.shape
    h = (params["tok_emb"][x_tokens]
         + params["pos_emb"][None, :S, :]).astype(jnp.bfloat16)
    logits_padded = fused_forward(h, params, num_heads=num_heads)
    return logits_padded[:, :params["n_classes"]]


if __name__ == "__main__":
    # small, lane-dense demo shapes
    B, S, D, F, H, L = 2, 8, 128, 256, 4, 2
    VOCAB, CLF_HIDDEN, N_CLASSES = 100, 128, 3

    key = jax.random.PRNGKey(0)
    k_tok, k_par = jax.random.split(key)
    x = jax.random.randint(k_tok, (B, S), 0, VOCAB, dtype=jnp.int32)
    params = init_params(k_par, vocab=VOCAB, max_seq=S, D=D, F=F,
                         n_layers=L, clf_hidden=CLF_HIDDEN, n_classes=N_CLASSES)

    logits = unified_classifier_forward(x, params, num_heads=H)
    logits = jax.block_until_ready(logits)
    assert logits.shape == (B, N_CLASSES)
    assert bool(jnp.all(jnp.isfinite(logits)))
    print("KERNEL_OK")
</pallas_src>

<mosaic_0001>
module attributes {stable_mosaic.version = 11 : i64} {
  func.func @fused_kernel(%arg0: i32, %arg1: i32, %arg2: memref<2x8x128xbf16, #tpu.memory_space<vmem>>, %arg3: memref<1x128x384xbf16, #tpu.memory_space<vmem>>, %arg4: memref<1x128x128xbf16, #tpu.memory_space<vmem>>, %arg5: memref<1x128x256xbf16, #tpu.memory_space<vmem>>, %arg6: memref<1x256x128xbf16, #tpu.memory_space<vmem>>, %arg7: memref<1x8x384xf32, #tpu.memory_space<vmem>>, %arg8: memref<128x128xbf16, #tpu.memory_space<vmem>>, %arg9: memref<1x128xf32, #tpu.memory_space<vmem>>, %arg10: memref<128x128xbf16, #tpu.memory_space<vmem>>, %arg11: memref<1x128xf32, #tpu.memory_space<vmem>>, %arg12: memref<2x128xf32, #tpu.memory_space<vmem>>, %arg13: memref<2x8x128xf32, #tpu.memory_space<vmem>>) attributes {dimension_semantics = [#tpu.dimension_semantics<parallel>, #tpu.dimension_semantics<arbitrary>], iteration_bounds = array<i64: 1, 2>, scalar_prefetch = 0 : i64, scratch_operands = 1 : i64, tpu.core_type = #tpu.core_type<tc>, window_params = [{transform_indices = @transform_0, window_bounds = array<i64: 2, 8, 128>}, {transform_indices = @transform_1, window_bounds = array<i64: 1, 128, 384>}, {transform_indices = @transform_2, window_bounds = array<i64: 1, 128, 128>}, {transform_indices = @transform_3, window_bounds = array<i64: 1, 128, 256>}, {transform_indices = @transform_4, window_bounds = array<i64: 1, 256, 128>}, {transform_indices = @transform_5, window_bounds = array<i64: 1, 8, 384>}, {pipeline_mode = #tpu.pipeline_mode<synchronous>, transform_indices = @transform_6, window_bounds = array<i64: 128, 128>}, {pipeline_mode = #tpu.pipeline_mode<synchronous>, transform_indices = @transform_7, window_bounds = array<i64: 1, 128>}, {pipeline_mode = #tpu.pipeline_mode<synchronous>, transform_indices = @transform_8, window_bounds = array<i64: 128, 128>}, {pipeline_mode = #tpu.pipeline_mode<synchronous>, transform_indices = @transform_9, window_bounds = array<i64: 1, 128>}, {transform_indices = @transform_10, window_bounds = array<i64: 2, 128>}]} {
    %c0_i32 = arith.constant 0 : i32
    %0 = arith.cmpi eq, %arg1, %c0_i32 : i32
    %1 = arith.extui %0 : i1 to i32
    %c0_i32_0 = arith.constant 0 : i32
    %2 = arith.cmpi ne, %1, %c0_i32_0 : i32
    scf.if %2 {
      %c0_52 = arith.constant 0 : index
      %c0_53 = arith.constant 0 : index
      %c0_54 = arith.constant 0 : index
      %179 = vector.load %arg2[%c0_52, %c0_53, %c0_54] : memref<2x8x128xbf16, #tpu.memory_space<vmem>>, vector<2x8x128xbf16>
      %180 = arith.extf %179 : vector<2x8x128xbf16> to vector<2x8x128xf32>
      %c0_55 = arith.constant 0 : index
      %c0_56 = arith.constant 0 : index
      %c0_57 = arith.constant 0 : index
      %181 = vector.load %arg13[%c0_55, %c0_56, %c0_57] : memref<2x8x128xf32, #tpu.memory_space<vmem>>, vector<2x8x128xf32>
      tpu.vector_store %arg13[%c0_55, %c0_56, %c0_57], %180 {strides = array<i32>} : memref<2x8x128xf32, #tpu.memory_space<vmem>>, vector<2x8x128xf32>,
    } else {
    }
    %c0 = arith.constant 0 : index
    %c0_1 = arith.constant 0 : index
    %c0_2 = arith.constant 0 : index
    %3 = vector.load %arg7[%c0, %c0_1, %c0_2] : memref<1x8x384xf32, #tpu.memory_space<vmem>>, vector<1x8x384xf32>
    %4 = vector.shape_cast %3 : vector<1x8x384xf32> to vector<8x384xf32>
    %5 = vector.extract_strided_slice %4 {offsets = [0, 0], sizes = [1, 384], strides = [1, 1]} : vector<8x384xf32> to vector<1x384xf32>
    %6 = vector.extract_strided_slice %4 {offsets = [1, 0], sizes = [1, 128], strides = [1, 1]} : vector<8x384xf32> to vector<1x128xf32>
    %7 = vector.extract_strided_slice %4 {offsets = [2, 0], sizes = [1, 128], strides = [1, 1]} : vector<8x384xf32> to vector<1x128xf32>
    %8 = vector.extract_strided_slice %4 {offsets = [3, 0], sizes = [1, 128], strides = [1, 1]} : vector<8x384xf32> to vector<1x128xf32>
    %9 = vector.extract_strided_slice %4 {offsets = [4, 0], sizes = [1, 128], strides = [1, 1]} : vector<8x384xf32> to vector<1x128xf32>
    %10 = vector.extract_strided_slice %4 {offsets = [5, 0], sizes = [1, 128], strides = [1, 1]} : vector<8x384xf32> to vector<1x128xf32>
    %11 = vector.extract_strided_slice %4 {offsets = [6, 0], sizes = [1, 256], strides = [1, 1]} : vector<8x384xf32> to vector<1x256xf32>
    %12 = vector.extract_strided_slice %4 {offsets = [7, 0], sizes = [1, 128], strides = [1, 1]} : vector<8x384xf32> to vector<1x128xf32>
    %c0_3 = arith.constant 0 : index
    %c0_4 = arith.constant 0 : index
    %c0_5 = arith.constant 0 : index
    %13 = vector.load %arg13[%c0_3, %c0_4, %c0_5] : memref<2x8x128xf32, #tpu.memory_space<vmem>>, vector<2x8x128xf32>
    %14 = vector.shape_cast %13 : vector<2x8x128xf32> to vector<16x128xf32>
    %cst = arith.constant dense<0.000000e+00> : vector<16xf32>
    %15 = vector.multi_reduction <add>, %14, %cst [1] : vector<16x128xf32> to vector<16xf32>
    %16 = vector.shape_cast %15 : vector<16xf32> to vector<16x1xf32>
    %cst_6 = arith.constant 1.280000e+02 : f32
    %17 = vector.broadcast %cst_6 : f32 to vector<16x1xf32>
    %18 = arith.divf %16, %17 : vector<16x1xf32>
    %19 = vector.broadcast %18 : vector<16x1xf32> to vector<16x128xf32>
    %20 = arith.subf %14, %19 : vector<16x128xf32>
    %21 = arith.mulf %20, %20 : vector<16x128xf32>
    %cst_7 = arith.constant dense<0.000000e+00> : vector<16xf32>
    %22 = vector.multi_reduction <add>, %21, %cst_7 [1] : vector<16x128xf32> to vector<16xf32>
    %23 = vector.shape_cast %22 : vector<16xf32> to vector<16x1xf32>
    %cst_8 = arith.constant 1.280000e+02 : f32
    %24 = vector.broadcast %cst_8 : f32 to vector<16x1xf32>
    %25 = arith.divf %23, %24 : vector<16x1xf32>
    %26 = vector.broadcast %18 : vector<16x1xf32> to vector<16x128xf32>
    %27 = arith.subf %14, %26 : vector<16x128xf32>
    %cst_9 = arith.constant 9.99999974E-6 : f32
    %28 = vector.broadcast %cst_9 : f32 to vector<16x1xf32>
    %29 = arith.addf %25, %28 : vector<16x1xf32>
    %30 = math.rsqrt %29 : vector<16x1xf32>
    %31 = vector.broadcast %30 : vector<16x1xf32> to vector<16x128xf32>
    %32 = arith.mulf %27, %31 : vector<16x128xf32>
    %33 = vector.broadcast %7 : vector<1x128xf32> to vector<16x128xf32>
    %34 = arith.mulf %32, %33 : vector<16x128xf32>
    %35 = vector.broadcast %8 : vector<1x128xf32> to vector<16x128xf32>
    %36 = arith.addf %34, %35 : vector<16x128xf32>
    %37 = arith.truncf %36 : vector<16x128xf32> to vector<16x128xbf16>
    %c0_10 = arith.constant 0 : index
    %c0_11 = arith.constant 0 : index
    %c0_12 = arith.constant 0 : index
    %38 = vector.load %arg3[%c0_10, %c0_11, %c0_12] : memref<1x128x384xbf16, #tpu.memory_space<vmem>>, vector<1x128x384xbf16>
    %39 = vector.shape_cast %38 : vector<1x128x384xbf16> to vector<128x384xbf16>
    %cst_13 = arith.constant dense<0.000000e+00> : vector<16x384xf32>
    %40 = tpu.matmul %37, %39, %cst_13 {dimension_numbers = #tpu.dot_dimension_numbers<[1], [0], [0], [1], [0, 0, 1, 1], [], []>} : vector<16x128xbf16>, vector<128x384xbf16>, vector<16x384xf32> -> vector<16x384xf32>
    %41 = vector.broadcast %5 : vector<1x384xf32> to vector<16x384xf32>
    %42 = arith.addf %40, %41 : vector<16x384xf32>
    %43 = vector.extract_strided_slice %42 {offsets = [0, 0], sizes = [16, 128], strides = [1, 1]} : vector<16x384xf32> to vector<16x128xf32>
    %cst_14 = arith.constant 0.176776692 : f32
    %44 = vector.broadcast %cst_14 : f32 to vector<16x128xf32>
    %45 = arith.mulf %43, %44 : vector<16x128xf32>
    %46 = vector.shape_cast %45 : vector<16x128xf32> to vector<2x8x128xf32>
    %47 = vector.extract_strided_slice %42 {offsets = [0, 128], sizes = [16, 128], strides = [1, 1]} : vector<16x384xf32> to vector<16x128xf32>
    %48 = vector.shape_cast %47 : vector<16x128xf32> to vector<2x8x128xf32>
    %49 = vector.extract_strided_slice %42 {offsets = [0, 256], sizes = [16, 128], strides = [1, 1]} : vector<16x384xf32> to vector<16x128xf32>
    %50 = vector.shape_cast %49 : vector<16x128xf32> to vector<2x8x128xf32>
    %51 = vector.extract_strided_slice %46 {offsets = [0, 0, 0], sizes = [2, 8, 32], strides = [1, 1, 1]} : vector<2x8x128xf32> to vector<2x8x32xf32>
    %52 = arith.truncf %51 : vector<2x8x32xf32> to vector<2x8x32xbf16>
    %53 = vector.extract_strided_slice %48 {offsets = [0, 0, 0], sizes = [2, 8, 32], strides = [1, 1, 1]} : vector<2x8x128xf32> to vector<2x8x32xf32>
    %54 = arith.truncf %53 : vector<2x8x32xf32> to vector<2x8x32xbf16>
    %55 = vector.extract_strided_slice %50 {offsets = [0, 0, 0], sizes = [2, 8, 32], strides = [1, 1, 1]} : vector<2x8x128xf32> to vector<2x8x32xf32>
    %56 = arith.truncf %55 : vector<2x8x32xf32> to vector<2x8x32xbf16>
    "tpu.trace_start"() <{level = 10 : i32, message = "bqd,bkd->bqk"}> : () -> ()
    %cst_15 = arith.constant dense<0.000000e+00> : vector<2x8x8xf32>
    %57 = tpu.matmul %52, %54, %cst_15 {dimension_numbers = #tpu.dot_dimension_numbers<[2], [2], [1], [1], [0, 0, 0, 1, 1, 1], [0], [0]>} : vector<2x8x32xbf16>, vector<2x8x32xbf16>, vector<2x8x8xf32> -> vector<2x8x8xf32>
    "tpu.trace_stop"() : () -> ()
    %cst_16 = arith.constant dense<0xFF800000> : vector<2x8xf32>
    %58 = vector.multi_reduction <maximumf>, %57, %cst_16 [2] : vector<2x8x8xf32> to vector<2x8xf32>
    %59 = vector.shape_cast %58 : vector<2x8xf32> to vector<2x8x1xf32>
    %60 = vector.broadcast %59 : vector<2x8x1xf32> to vector<2x8x8xf32>
    %61 = arith.subf %57, %60 : vector<2x8x8xf32>
    %62 = math.exp %61 : vector<2x8x8xf32>
    %cst_17 = arith.constant dense<0.000000e+00> : vector<2x8xf32>
    %63 = vector.multi_reduction <add>, %62, %cst_17 [2] : vector<2x8x8xf32> to vector<2x8xf32>
    %64 = vector.shape_cast %63 : vector<2x8xf32> to vector<2x8x1xf32>
    %65 = tpu.reciprocal %64 {approx = true} : vector<2x8x1xf32> -> vector<2x8x1xf32>
    %66 = vector.broadcast %65 : vector<2x8x1xf32> to vector<2x8x8xf32>
    %67 = arith.mulf %62, %66 : vector<2x8x8xf32>
    %68 = arith.truncf %67 : vector<2x8x8xf32> to vector<2x8x8xbf16>
    "tpu.trace_start"() <{level = 10 : i32, message = "bqk,bkd->bqd"}> : () -> ()
    %cst_18 = arith.constant dense<0.000000e+00> : vector<2x8x32xf32>
    %69 = tpu.matmul %68, %56, %cst_18 {dimension_numbers = #tpu.dot_dimension_numbers<[2], [1], [1], [2], [0, 0, 0, 1, 1, 2], [0], [0]>} : vector<2x8x8xbf16>, vector<2x8x32xbf16>, vector<2x8x32xf32> -> vector<2x8x32xf32>
    "tpu.trace_stop"() : () -> ()
    %70 = vector.extract_strided_slice %46 {offsets = [0, 0, 32], sizes = [2, 8, 32], strides = [1, 1, 1]} : vector<2x8x128xf32> to vector<2x8x32xf32>
    %71 = arith.truncf %70 : vector<2x8x32xf32> to vector<2x8x32xbf16>
    %72 = vector.extract_strided_slice %48 {offsets = [0, 0, 32], sizes = [2, 8, 32], strides = [1, 1, 1]} : vector<2x8x128xf32> to vector<2x8x32xf32>
    %73 = arith.truncf %72 : vector<2x8x32xf32> to vector<2x8x32xbf16>
    %74 = vector.extract_strided_slice %50 {offsets = [0, 0, 32], sizes = [2, 8, 32], strides = [1, 1, 1]} : vector<2x8x128xf32> to vector<2x8x32xf32>
    %75 = arith.truncf %74 : vector<2x8x32xf32> to vector<2x8x32xbf16>
    "tpu.trace_start"() <{level = 10 : i32, message = "bqd,bkd->bqk"}> : () -> ()
    %cst_19 = arith.constant dense<0.000000e+00> : vector<2x8x8xf32>
    %76 = tpu.matmul %71, %73, %cst_19 {dimension_numbers = #tpu.dot_dimension_numbers<[2], [2], [1], [1], [0, 0, 0, 1, 1, 1], [0], [0]>} : vector<2x8x32xbf16>, vector<2x8x32xbf16>, vector<2x8x8xf32> -> vector<2x8x8xf32>
    "tpu.trace_stop"() : () -> ()
    %cst_20 = arith.constant dense<0xFF800000> : vector<2x8xf32>
    %77 = vector.multi_reduction <maximumf>, %76, %cst_20 [2] : vector<2x8x8xf32> to vector<2x8xf32>
    %78 = vector.shape_cast %77 : vector<2x8xf32> to vector<2x8x1xf32>
    %79 = vector.broadcast %78 : vector<2x8x1xf32> to vector<2x8x8xf32>
    %80 = arith.subf %76, %79 : vector<2x8x8xf32>
    %81 = math.exp %80 : vector<2x8x8xf32>
    %cst_21 = arith.constant dense<0.000000e+00> : vector<2x8xf32>
    %82 = vector.multi_reduction <add>, %81, %cst_21 [2] : vector<2x8x8xf32> to vector<2x8xf32>
    %83 = vector.shape_cast %82 : vector<2x8xf32> to vector<2x8x1xf32>
    %84 = tpu.reciprocal %83 {approx = true} : vector<2x8x1xf32> -> vector<2x8x1xf32>
    %85 = vector.broadcast %84 : vector<2x8x1xf32> to vector<2x8x8xf32>
    %86 = arith.mulf %81, %85 : vector<2x8x8xf32>
    %87 = arith.truncf %86 : vector<2x8x8xf32> to vector<2x8x8xbf16>
    "tpu.trace_start"() <{level = 10 : i32, message = "bqk,bkd->bqd"}> : () -> ()
    %cst_22 = arith.constant dense<0.000000e+00> : vector<2x8x32xf32>
    %88 = tpu.matmul %87, %75, %cst_22 {dimension_numbers = #tpu.dot_dimension_numbers<[2], [1], [1], [2], [0, 0, 0, 1, 1, 2], [0], [0]>} : vector<2x8x8xbf16>, vector<2x8x32xbf16>, vector<2x8x32xf32> -> vector<2x8x32xf32>
    "tpu.trace_stop"() : () -> ()
    %89 = vector.extract_strided_slice %46 {offsets = [0, 0, 64], sizes = [2, 8, 32], strides = [1, 1, 1]} : vector<2x8x128xf32> to vector<2x8x32xf32>
    %90 = arith.truncf %89 : vector<2x8x32xf32> to vector<2x8x32xbf16>
    %91 = vector.extract_strided_slice %48 {offsets = [0, 0, 64], sizes = [2, 8, 32], strides = [1, 1, 1]} : vector<2x8x128xf32> to vector<2x8x32xf32>
    %92 = arith.truncf %91 : vector<2x8x32xf32> to vector<2x8x32xbf16>
    %93 = vector.extract_strided_slice %50 {offsets = [0, 0, 64], sizes = [2, 8, 32], strides = [1, 1, 1]} : vector<2x8x128xf32> to vector<2x8x32xf32>
    %94 = arith.truncf %93 : vector<2x8x32xf32> to vector<2x8x32xbf16>
    "tpu.trace_start"() <{level = 10 : i32, message = "bqd,bkd->bqk"}> : () -> ()
    %cst_23 = arith.constant dense<0.000000e+00> : vector<2x8x8xf32>
    %95 = tpu.matmul %90, %92, %cst_23 {dimension_numbers = #tpu.dot_dimension_numbers<[2], [2], [1], [1], [0, 0, 0, 1, 1, 1], [0], [0]>} : vector<2x8x32xbf16>, vector<2x8x32xbf16>, vector<2x8x8xf32> -> vector<2x8x8xf32>
    "tpu.trace_stop"() : () -> ()
    %cst_24 = arith.constant dense<0xFF800000> : vector<2x8xf32>
    %96 = vector.multi_reduction <maximumf>, %95, %cst_24 [2] : vector<2x8x8xf32> to vector<2x8xf32>
    %97 = vector.shape_cast %96 : vector<2x8xf32> to vector<2x8x1xf32>
    %98 = vector.broadcast %97 : vector<2x8x1xf32> to vector<2x8x8xf32>
    %99 = arith.subf %95, %98 : vector<2x8x8xf32>
    %100 = math.exp %99 : vector<2x8x8xf32>
    %cst_25 = arith.constant dense<0.000000e+00> : vector<2x8xf32>
    %101 = vector.multi_reduction <add>, %100, %cst_25 [2] : vector<2x8x8xf32> to vector<2x8xf32>
    %102 = vector.shape_cast %101 : vector<2x8xf32> to vector<2x8x1xf32>
    %103 = tpu.reciprocal %102 {approx = true} : vector<2x8x1xf32> -> vector<2x8x1xf32>
    %104 = vector.broadcast %103 : vector<2x8x1xf32> to vector<2x8x8xf32>
    %105 = arith.mulf %100, %104 : vector<2x8x8xf32>
    %106 = arith.truncf %105 : vector<2x8x8xf32> to vector<2x8x8xbf16>
    "tpu.trace_start"() <{level = 10 : i32, message = "bqk,bkd->bqd"}> : () -> ()
    %cst_26 = arith.constant dense<0.000000e+00> : vector<2x8x32xf32>
    %107 = tpu.matmul %106, %94, %cst_26 {dimension_numbers = #tpu.dot_dimension_numbers<[2], [1], [1], [2], [0, 0, 0, 1, 1, 2], [0], [0]>} : vector<2x8x8xbf16>, vector<2x8x32xbf16>, vector<2x8x32xf32> -> vector<2x8x32xf32>
    "tpu.trace_stop"() : () -> ()
    %108 = vector.extract_strided_slice %46 {offsets = [0, 0, 96], sizes = [2, 8, 32], strides = [1, 1, 1]} : vector<2x8x128xf32> to vector<2x8x32xf32>
    %109 = arith.truncf %108 : vector<2x8x32xf32> to vector<2x8x32xbf16>
    %110 = vector.extract_strided_slice %48 {offsets = [0, 0, 96], sizes = [2, 8, 32], strides = [1, 1, 1]} : vector<2x8x128xf32> to vector<2x8x32xf32>
    %111 = arith.truncf %110 : vector<2x8x32xf32> to vector<2x8x32xbf16>
    %112 = vector.extract_strided_slice %50 {offsets = [0, 0, 96], sizes = [2, 8, 32], strides = [1, 1, 1]} : vector<2x8x128xf32> to vector<2x8x32xf32>
    %113 = arith.truncf %112 : vector<2x8x32xf32> to vector<2x8x32xbf16>
    "tpu.trace_start"() <{level = 10 : i32, message = "bqd,bkd->bqk"}> : () -> ()
    %cst_27 = arith.constant dense<0.000000e+00> : vector<2x8x8xf32>
    %114 = tpu.matmul %109, %111, %cst_27 {dimension_numbers = #tpu.dot_dimension_numbers<[2], [2], [1], [1], [0, 0, 0, 1, 1, 1], [0], [0]>} : vector<2x8x32xbf16>, vector<2x8x32xbf16>, vector<2x8x8xf32> -> vector<2x8x8xf32>
    "tpu.trace_stop"() : () -> ()
    %cst_28 = arith.constant dense<0xFF800000> : vector<2x8xf32>
    %115 = vector.multi_reduction <maximumf>, %114, %cst_28 [2] : vector<2x8x8xf32> to vector<2x8xf32>
    %116 = vector.shape_cast %115 : vector<2x8xf32> to vector<2x8x1xf32>
    %117 = vector.broadcast %116 : vector<2x8x1xf32> to vector<2x8x8xf32>
    %118 = arith.subf %114, %117 : vector<2x8x8xf32>
    %119 = math.exp %118 : vector<2x8x8xf32>
    %cst_29 = arith.constant dense<0.000000e+00> : vector<2x8xf32>
    %120 = vector.multi_reduction <add>, %119, %cst_29 [2] : vector<2x8x8xf32> to vector<2x8xf32>
    %121 = vector.shape_cast %120 : vector<2x8xf32> to vector<2x8x1xf32>
    %122 = tpu.reciprocal %121 {approx = true} : vector<2x8x1xf32> -> vector<2x8x1xf32>
    %123 = vector.broadcast %122 : vector<2x8x1xf32> to vector<2x8x8xf32>
    %124 = arith.mulf %119, %123 : vector<2x8x8xf32>
    %125 = arith.truncf %124 : vector<2x8x8xf32> to vector<2x8x8xbf16>
    "tpu.trace_start"() <{level = 10 : i32, message = "bqk,bkd->bqd"}> : () -> ()
    %cst_30 = arith.constant dense<0.000000e+00> : vector<2x8x32xf32>
    %126 = tpu.matmul %125, %113, %cst_30 {dimension_numbers = #tpu.dot_dimension_numbers<[2], [1], [1], [2], [0, 0, 0, 1, 1, 2], [0], [0]>} : vector<2x8x8xbf16>, vector<2x8x32xbf16>, vector<2x8x32xf32> -> vector<2x8x32xf32>
    "tpu.trace_stop"() : () -> ()
    %127 = tpu.concatenate %69, %88, %107, %126 in 2 : vector<2x8x32xf32>, vector<2x8x32xf32>, vector<2x8x32xf32>, vector<2x8x32xf32> -> vector<2x8x128xf32>
    %128 = vector.shape_cast %127 : vector<2x8x128xf32> to vector<16x128xf32>
    %129 = arith.truncf %128 : vector<16x128xf32> to vector<16x128xbf16>
    %c0_31 = arith.constant 0 : index
    %c0_32 = arith.constant 0 : index
    %c0_33 = arith.constant 0 : index
    %130 = vector.load %arg4[%c0_31, %c0_32, %c0_33] : memref<1x128x128xbf16, #tpu.memory_space<vmem>>, vector<1x128x128xbf16>
    %131 = vector.shape_cast %130 : vector<1x128x128xbf16> to vector<128x128xbf16>
    %cst_34 = arith.constant dense<0.000000e+00> : vector<16x128xf32>
    %132 = tpu.matmul %129, %131, %cst_34 {dimension_numbers = #tpu.dot_dimension_numbers<[1], [0], [0], [1], [0, 0, 1, 1], [], []>} : vector<16x128xbf16>, vector<128x128xbf16>, vector<16x128xf32> -> vector<16x128xf32>
    %133 = vector.broadcast %6 : vector<1x128xf32> to vector<16x128xf32>
    %134 = arith.addf %132, %133 : vector<16x128xf32>
    %135 = arith.addf %14, %134 : vector<16x128xf32>
    %cst_35 = arith.constant dense<0.000000e+00> : vector<16xf32>
    %136 = vector.multi_reduction <add>, %135, %cst_35 [1] : vector<16x128xf32> to vector<16xf32>
    %137 = vector.shape_cast %136 : vector<16xf32> to vector<16x1xf32>
    %cst_36 = arith.constant 1.280000e+02 : f32
    %138 = vector.broadcast %cst_36 : f32 to vector<16x1xf32>
    %139 = arith.divf %137, %138 : vector<16x1xf32>
    %140 = vector.broadcast %139 : vector<16x1xf32> to vector<16x128xf32>
    %141 = arith.subf %135, %140 : vector<16x128xf32>
    %142 = arith.mulf %141, %141 : vector<16x128xf32>
    %cst_37 = arith.constant dense<0.000000e+00> : vector<16xf32>
    %143 = vector.multi_reduction <add>, %142, %cst_37 [1] : vector<16x128xf32> to vector<16xf32>
    %144 = vector.shape_cast %143 : vector<16xf32> to vector<16x1xf32>
    %cst_38 = arith.constant 1.280000e+02 : f32
    %145 = vector.broadcast %cst_38 : f32 to vector<16x1xf32>
    %146 = arith.divf %144, %145 : vector<16x1xf32>
    %147 = vector.broadcast %139 : vector<16x1xf32> to vector<16x128xf32>
    %148 = arith.subf %135, %147 : vector<16x128xf32>
    %cst_39 = arith.constant 9.99999974E-6 : f32
    %149 = vector.broadcast %cst_39 : f32 to vector<16x1xf32>
    %150 = arith.addf %146, %149 : vector<16x1xf32>
    %151 = math.rsqrt %150 : vector<16x1xf32>
    %152 = vector.broadcast %151 : vector<16x1xf32> to vector<16x128xf32>
    %153 = arith.mulf %148, %152 : vector<16x128xf32>
    %154 = vector.broadcast %9 : vector<1x128xf32> to vector<16x128xf32>
    %155 = arith.mulf %153, %154 : vector<16x128xf32>
    %156 = vector.broadcast %10 : vector<1x128xf32> to vector<16x128xf32>
    %157 = arith.addf %155, %156 : vector<16x128xf32>
    %158 = arith.truncf %157 : vector<16x128xf32> to vector<16x128xbf16>
    %c0_40 = arith.constant 0 : index
    %c0_41 = arith.constant 0 : index
    %c0_42 = arith.constant 0 : index
    %159 = vector.load %arg5[%c0_40, %c0_41, %c0_42] : memref<1x128x256xbf16, #tpu.memory_space<vmem>>, vector<1x128x256xbf16>
    %160 = vector.shape_cast %159 : vector<1x128x256xbf16> to vector<128x256xbf16>
    %cst_43 = arith.constant dense<0.000000e+00> : vector<16x256xf32>
    %161 = tpu.matmul %158, %160, %cst_43 {dimension_numbers = #tpu.dot_dimension_numbers<[1], [0], [0], [1], [0, 0, 1, 1], [], []>} : vector<16x128xbf16>, vector<128x256xbf16>, vector<16x256xf32> -> vector<16x256xf32>
    %162 = vector.broadcast %11 : vector<1x256xf32> to vector<16x256xf32>
    %163 = arith.addf %161, %162 : vector<16x256xf32>
    %cst_44 = arith.constant 0.000000e+00 : f32
    %164 = vector.broadcast %cst_44 : f32 to vector<16x256xf32>
    %165 = arith.maximumf %163, %164 : vector<16x256xf32>
    %166 = arith.truncf %165 : vector<16x256xf32> to vector<16x256xbf16>
    %c0_45 = arith.constant 0 : index
    %c0_46 = arith.constant 0 : index
    %c0_47 = arith.constant 0 : index
    %167 = vector.load %arg6[%c0_45, %c0_46, %c0_47] : memref<1x256x128xbf16, #tpu.memory_space<vmem>>, vector<1x256x128xbf16>
    %168 = vector.shape_cast %167 : vector<1x256x128xbf16> to vector<256x128xbf16>
    %cst_48 = arith.constant dense<0.000000e+00> : vector<16x128xf32>
    %169 = tpu.matmul %166, %168, %cst_48 {dimension_numbers = #tpu.dot_dimension_numbers<[1], [0], [0], [1], [0, 0, 1, 1], [], []>} : vector<16x256xbf16>, vector<256x128xbf16>, vector<16x128xf32> -> vector<16x128xf32>
    %170 = arith.addf %135, %169 : vector<16x128xf32>
    %171 = vector.broadcast %12 : vector<1x128xf32> to vector<16x128xf32>
    %172 = arith.addf %170, %171 : vector<16x128xf32>
    %c1_i32 = arith.constant 1 : i32
    %173 = arith.cmpi slt, %arg1, %c1_i32 : i32
    %174 = arith.extui %173 : i1 to i32
    %c0_i32_49 = arith.constant 0 : i32
    %175 = arith.cmpi ne, %174, %c0_i32_49 : i32
    scf.if %175 {
      %179 = vector.shape_cast %172 : vector<16x128xf32> to vector<2x8x128xf32>
      %c0_52 = arith.constant 0 : index
      %c0_53 = arith.constant 0 : index
      %c0_54 = arith.constant 0 : index
      %180 = vector.load %arg13[%c0_52, %c0_53, %c0_54] : memref<2x8x128xf32, #tpu.memory_space<vmem>>, vector<2x8x128xf32>
      tpu.vector_store %arg13[%c0_52, %c0_53, %c0_54], %179 {strides = array<i32>} : memref<2x8x128xf32, #tpu.memory_space<vmem>>, vector<2x8x128xf32>,
    } else {
    }
    %c1_i32_50 = arith.constant 1 : i32
    %176 = arith.cmpi eq, %arg1, %c1_i32_50 : i32
    %177 = arith.extui %176 : i1 to i32
    %c0_i32_51 = arith.constant 0 : i32
    %178 = arith.cmpi ne, %177, %c0_i32_51 : i32
    scf.if %178 {
      %179 = vector.shape_cast %172 : vector<16x128xf32> to vector<2x8x128xf32>
      %cst_52 = arith.constant dense<0.000000e+00> : vector<2x128xf32>
      %180 = vector.multi_reduction <add>, %179, %cst_52 [1] : vector<2x8x128xf32> to vector<2x128xf32>
      %cst_53 = arith.constant 1.250000e-01 : f32
      %181 = vector.broadcast %cst_53 : f32 to vector<2x128xf32>
      %182 = arith.mulf %180, %181 : vector<2x128xf32>
      %183 = arith.truncf %182 : vector<2x128xf32> to vector<2x128xbf16>
      %c0_54 = arith.constant 0 : index
      %c0_55 = arith.constant 0 : index
      %184 = vector.load %arg8[%c0_54, %c0_55] : memref<128x128xbf16, #tpu.memory_space<vmem>>, vector<128x128xbf16>
      %cst_56 = arith.constant dense<0.000000e+00> : vector<2x128xf32>
      %185 = tpu.matmul %183, %184, %cst_56 {dimension_numbers = #tpu.dot_dimension_numbers<[1], [0], [0], [1], [0, 0, 1, 1], [], []>} : vector<2x128xbf16>, vector<128x128xbf16>, vector<2x128xf32> -> vector<2x128xf32>
      %c0_57 = arith.constant 0 : index
      %c0_58 = arith.constant 0 : index
      %186 = vector.load %arg9[%c0_57, %c0_58] : memref<1x128xf32, #tpu.memory_space<vmem>>, vector<1x128xf32>
      %187 = vector.broadcast %186 : vector<1x128xf32> to vector<2x128xf32>
      %188 = arith.addf %185, %187 : vector<2x128xf32>
      %cst_59 = arith.constant 0.000000e+00 : f32
      %189 = vector.broadcast %cst_59 : f32 to vector<2x128xf32>
      %190 = arith.maximumf %188, %189 : vector<2x128xf32>
      %191 = arith.truncf %190 : vector<2x128xf32> to vector<2x128xbf16>
      %c0_60 = arith.constant 0 : index
      %c0_61 = arith.constant 0 : index
      %192 = vector.load %arg10[%c0_60, %c0_61] : memref<128x128xbf16, #tpu.memory_space<vmem>>, vector<128x128xbf16>
      %cst_62 = arith.constant dense<0.000000e+00> : vector<2x128xf32>
      %193 = tpu.matmul %191, %192, %cst_62 {dimension_numbers = #tpu.dot_dimension_numbers<[1], [0], [0], [1], [0, 0, 1, 1], [], []>} : vector<2x128xbf16>, vector<128x128xbf16>, vector<2x128xf32> -> vector<2x128xf32>
      %c0_63 = arith.constant 0 : index
      %c0_64 = arith.constant 0 : index
      %194 = vector.load %arg11[%c0_63, %c0_64] : memref<1x128xf32, #tpu.memory_space<vmem>>, vector<1x128xf32>
      %195 = vector.broadcast %194 : vector<1x128xf32> to vector<2x128xf32>
      %196 = arith.addf %193, %195 : vector<2x128xf32>
      %c0_65 = arith.constant 0 : index
      %c0_66 = arith.constant 0 : index
      %197 = vector.load %arg12[%c0_65, %c0_66] : memref<2x128xf32, #tpu.memory_space<vmem>>, vector<2x128xf32>
      tpu.vector_store %arg12[%c0_65, %c0_66], %196 {strides = array<i32>} : memref<2x128xf32, #tpu.memory_space<vmem>>, vector<2x128xf32>,
    } else {
    }
    return
  }
  func.func @transform_0(%arg0: i32, %arg1: i32) -> (i32, i32, i32) {
    %c0_i32 = arith.constant 0 : i32
    %c0_i32_0 = arith.constant 0 : i32
    %c0_i32_1 = arith.constant 0 : i32
    return %arg0, %c0_i32, %c0_i32_0 : i32, i32, i32
  }
  func.func @transform_1(%arg0: i32, %arg1: i32) -> (i32, i32, i32) {
    %c0_i32 = arith.constant 0 : i32
    %c0_i32_0 = arith.constant 0 : i32
    %c0_i32_1 = arith.constant 0 : i32
    return %arg1, %c0_i32, %c0_i32_0 : i32, i32, i32
  }
  func.func @transform_2(%arg0: i32, %arg1: i32) -> (i32, i32, i32) {
    %c0_i32 = arith.constant 0 : i32
    %c0_i32_0 = arith.constant 0 : i32
    %c0_i32_1 = arith.constant 0 : i32
    return %arg1, %c0_i32, %c0_i32_0 : i32, i32, i32
  }
  func.func @transform_3(%arg0: i32, %arg1: i32) -> (i32, i32, i32) {
    %c0_i32 = arith.constant 0 : i32
    %c0_i32_0 = arith.constant 0 : i32
    %c0_i32_1 = arith.constant 0 : i32
    return %arg1, %c0_i32, %c0_i32_0 : i32, i32, i32
  }
  func.func @transform_4(%arg0: i32, %arg1: i32) -> (i32, i32, i32) {
    %c0_i32 = arith.constant 0 : i32
    %c0_i32_0 = arith.constant 0 : i32
    %c0_i32_1 = arith.constant 0 : i32
    return %arg1, %c0_i32, %c0_i32_0 : i32, i32, i32
  }
  func.func @transform_5(%arg0: i32, %arg1: i32) -> (i32, i32, i32) {
    %c0_i32 = arith.constant 0 : i32
    %c0_i32_0 = arith.constant 0 : i32
    %c0_i32_1 = arith.constant 0 : i32
    return %arg1, %c0_i32, %c0_i32_0 : i32, i32, i32
  }
  func.func @transform_6(%arg0: i32, %arg1: i32) -> (i32, i32) {
    %c0_i32 = arith.constant 0 : i32
    %c0_i32_0 = arith.constant 0 : i32
    %c0_i32_1 = arith.constant 0 : i32
    return %c0_i32, %c0_i32_0 : i32, i32
  }
  func.func @transform_7(%arg0: i32, %arg1: i32) -> (i32, i32) {
    %c0_i32 = arith.constant 0 : i32
    %c0_i32_0 = arith.constant 0 : i32
    %c0_i32_1 = arith.constant 0 : i32
    return %c0_i32, %c0_i32_0 : i32, i32
  }
  func.func @transform_8(%arg0: i32, %arg1: i32) -> (i32, i32) {
    %c0_i32 = arith.constant 0 : i32
    %c0_i32_0 = arith.constant 0 : i32
    %c0_i32_1 = arith.constant 0 : i32
    return %c0_i32, %c0_i32_0 : i32, i32
  }
  func.func @transform_9(%arg0: i32, %arg1: i32) -> (i32, i32) {
    %c0_i32 = arith.constant 0 : i32
    %c0_i32_0 = arith.constant 0 : i32
    %c0_i32_1 = arith.constant 0 : i32
    return %c0_i32, %c0_i32_0 : i32, i32
  }
  func.func @transform_10(%arg0: i32, %arg1: i32) -> (i32, i32) {
    %c0_i32 = arith.constant 0 : i32
    %c0_i32_0 = arith.constant 0 : i32
    return %arg0, %c0_i32 : i32, i32
  }
}

module attributes {stable_mosaic.version = 11 : i64} {
  func.func @fused_kernel(%arg0: i32, %arg1: i32, %arg2: memref<2x8x128xbf16, #tpu.memory_space<vmem>>, %arg3: memref<1x128x384xbf16, #tpu.memory_space<vmem>>, %arg4: memref<1x128x128xbf16, #tpu.memory_space<vmem>>, %arg5: memref<1x128x256xbf16, #tpu.memory_space<vmem>>, %arg6: memref<1x256x128xbf16, #tpu.memory_space<vmem>>, %arg7: memref<1x8x384xf32, #tpu.memory_space<vmem>>, %arg8: memref<128x128xbf16, #tpu.memory_space<vmem>>, %arg9: memref<1x128xf32, #tpu.memory_space<vmem>>, %arg10: memref<128x128xbf16, #tpu.memory_space<vmem>>, %arg11: memref<1x128xf32, #tpu.memory_space<vmem>>, %arg12: memref<2x128xf32, #tpu.memory_space<vmem>>, %arg13: memref<2x8x128xf32, #tpu.memory_space<vmem>>) attributes {dimension_semantics = [#tpu.dimension_semantics<parallel>, #tpu.dimension_semantics<arbitrary>], iteration_bounds = array<i64: 1, 2>, scalar_prefetch = 0 : i64, scratch_operands = 1 : i64, tpu.core_type = #tpu.core_type<tc>, window_params = [{transform_indices = @transform_0, window_bounds = array<i64: 2, 8, 128>}, {transform_indices = @transform_1, window_bounds = array<i64: 1, 128, 384>}, {transform_indices = @transform_2, window_bounds = array<i64: 1, 128, 128>}, {transform_indices = @transform_3, window_bounds = array<i64: 1, 128, 256>}, {transform_indices = @transform_4, window_bounds = array<i64: 1, 256, 128>}, {transform_indices = @transform_5, window_bounds = array<i64: 1, 8, 384>}, {pipeline_mode = #tpu.pipeline_mode<synchronous>, transform_indices = @transform_6, window_bounds = array<i64: 128, 128>}, {pipeline_mode = #tpu.pipeline_mode<synchronous>, transform_indices = @transform_7, window_bounds = array<i64: 1, 128>}, {pipeline_mode = #tpu.pipeline_mode<synchronous>, transform_indices = @transform_8, window_bounds = array<i64: 128, 128>}, {pipeline_mode = #tpu.pipeline_mode<synchronous>, transform_indices = @transform_9, window_bounds = array<i64: 1, 128>}, {transform_indices = @transform_10, window_bounds = array<i64: 2, 128>}]} {
    %c0_i32 = arith.constant 0 : i32
    %0 = arith.cmpi eq, %arg1, %c0_i32 : i32
    %1 = arith.extui %0 : i1 to i32
    %c0_i32_0 = arith.constant 0 : i32
    %2 = arith.cmpi ne, %1, %c0_i32_0 : i32
    scf.if %2 {
      %c0_52 = arith.constant 0 : index
      %c0_53 = arith.constant 0 : index
      %c0_54 = arith.constant 0 : index
      %179 = vector.load %arg2[%c0_52, %c0_53, %c0_54] : memref<2x8x128xbf16, #tpu.memory_space<vmem>>, vector<2x8x128xbf16>
      %180 = arith.extf %179 : vector<2x8x128xbf16> to vector<2x8x128xf32>
      %c0_55 = arith.constant 0 : index
      %c0_56 = arith.constant 0 : index
      %c0_57 = arith.constant 0 : index
      %181 = vector.load %arg13[%c0_55, %c0_56, %c0_57] : memref<2x8x128xf32, #tpu.memory_space<vmem>>, vector<2x8x128xf32>
      tpu.vector_store %arg13[%c0_55, %c0_56, %c0_57], %180 {strides = array<i32>} : memref<2x8x128xf32, #tpu.memory_space<vmem>>, vector<2x8x128xf32>,
    } else {
    }
    %c0 = arith.constant 0 : index
    %c0_1 = arith.constant 0 : index
    %c0_2 = arith.constant 0 : index
    %3 = vector.load %arg7[%c0, %c0_1, %c0_2] : memref<1x8x384xf32, #tpu.memory_space<vmem>>, vector<1x8x384xf32>
    %4 = vector.shape_cast %3 : vector<1x8x384xf32> to vector<8x384xf32>
    %5 = vector.extract_strided_slice %4 {offsets = [0, 0], sizes = [1, 384], strides = [1, 1]} : vector<8x384xf32> to vector<1x384xf32>
    %6 = vector.extract_strided_slice %4 {offsets = [1, 0], sizes = [1, 128], strides = [1, 1]} : vector<8x384xf32> to vector<1x128xf32>
    %7 = vector.extract_strided_slice %4 {offsets = [2, 0], sizes = [1, 128], strides = [1, 1]} : vector<8x384xf32> to vector<1x128xf32>
    %8 = vector.extract_strided_slice %4 {offsets = [3, 0], sizes = [1, 128], strides = [1, 1]} : vector<8x384xf32> to vector<1x128xf32>
    %9 = vector.extract_strided_slice %4 {offsets = [4, 0], sizes = [1, 128], strides = [1, 1]} : vector<8x384xf32> to vector<1x128xf32>
    %10 = vector.extract_strided_slice %4 {offsets = [5, 0], sizes = [1, 128], strides = [1, 1]} : vector<8x384xf32> to vector<1x128xf32>
    %11 = vector.extract_strided_slice %4 {offsets = [6, 0], sizes = [1, 256], strides = [1, 1]} : vector<8x384xf32> to vector<1x256xf32>
    %12 = vector.extract_strided_slice %4 {offsets = [7, 0], sizes = [1, 128], strides = [1, 1]} : vector<8x384xf32> to vector<1x128xf32>
    %c0_3 = arith.constant 0 : index
    %c0_4 = arith.constant 0 : index
    %c0_5 = arith.constant 0 : index
    %13 = vector.load %arg13[%c0_3, %c0_4, %c0_5] : memref<2x8x128xf32, #tpu.memory_space<vmem>>, vector<2x8x128xf32>
    %14 = vector.shape_cast %13 : vector<2x8x128xf32> to vector<16x128xf32>
    %cst = arith.constant dense<0.000000e+00> : vector<16xf32>
    %15 = vector.multi_reduction <add>, %14, %cst [1] : vector<16x128xf32> to vector<16xf32>
    %16 = vector.shape_cast %15 : vector<16xf32> to vector<16x1xf32>
    %cst_6 = arith.constant 1.280000e+02 : f32
    %17 = vector.broadcast %cst_6 : f32 to vector<16x1xf32>
    %18 = arith.divf %16, %17 : vector<16x1xf32>
    %19 = vector.broadcast %18 : vector<16x1xf32> to vector<16x128xf32>
    %20 = arith.subf %14, %19 : vector<16x128xf32>
    %21 = arith.mulf %20, %20 : vector<16x128xf32>
    %cst_7 = arith.constant dense<0.000000e+00> : vector<16xf32>
    %22 = vector.multi_reduction <add>, %21, %cst_7 [1] : vector<16x128xf32> to vector<16xf32>
    %23 = vector.shape_cast %22 : vector<16xf32> to vector<16x1xf32>
    %cst_8 = arith.constant 1.280000e+02 : f32
    %24 = vector.broadcast %cst_8 : f32 to vector<16x1xf32>
    %25 = arith.divf %23, %24 : vector<16x1xf32>
    %26 = vector.broadcast %18 : vector<16x1xf32> to vector<16x128xf32>
    %27 = arith.subf %14, %26 : vector<16x128xf32>
    %cst_9 = arith.constant 9.99999974E-6 : f32
    %28 = vector.broadcast %cst_9 : f32 to vector<16x1xf32>
    %29 = arith.addf %25, %28 : vector<16x1xf32>
    %30 = math.rsqrt %29 : vector<16x1xf32>
    %31 = vector.broadcast %30 : vector<16x1xf32> to vector<16x128xf32>
    %32 = arith.mulf %27, %31 : vector<16x128xf32>
    %33 = vector.broadcast %7 : vector<1x128xf32> to vector<16x128xf32>
    %34 = arith.mulf %32, %33 : vector<16x128xf32>
    %35 = vector.broadcast %8 : vector<1x128xf32> to vector<16x128xf32>
    %36 = arith.addf %34, %35 : vector<16x128xf32>
    %37 = arith.truncf %36 : vector<16x128xf32> to vector<16x128xbf16>
    %c0_10 = arith.constant 0 : index
    %c0_11 = arith.constant 0 : index
    %c0_12 = arith.constant 0 : index
    %38 = vector.load %arg3[%c0_10, %c0_11, %c0_12] : memref<1x128x384xbf16, #tpu.memory_space<vmem>>, vector<1x128x384xbf16>
    %39 = vector.shape_cast %38 : vector<1x128x384xbf16> to vector<128x384xbf16>
    %cst_13 = arith.constant dense<0.000000e+00> : vector<16x384xf32>
    %40 = tpu.matmul %37, %39, %cst_13 {dimension_numbers = #tpu.dot_dimension_numbers<[1], [0], [0], [1], [0, 0, 1, 1], [], []>} : vector<16x128xbf16>, vector<128x384xbf16>, vector<16x384xf32> -> vector<16x384xf32>
    %41 = vector.broadcast %5 : vector<1x384xf32> to vector<16x384xf32>
    %42 = arith.addf %40, %41 : vector<16x384xf32>
    %43 = vector.extract_strided_slice %42 {offsets = [0, 0], sizes = [16, 128], strides = [1, 1]} : vector<16x384xf32> to vector<16x128xf32>
    %cst_14 = arith.constant 0.176776692 : f32
    %44 = vector.broadcast %cst_14 : f32 to vector<16x128xf32>
    %45 = arith.mulf %43, %44 : vector<16x128xf32>
    %46 = vector.shape_cast %45 : vector<16x128xf32> to vector<2x8x128xf32>
    %47 = vector.extract_strided_slice %42 {offsets = [0, 128], sizes = [16, 128], strides = [1, 1]} : vector<16x384xf32> to vector<16x128xf32>
    %48 = vector.shape_cast %47 : vector<16x128xf32> to vector<2x8x128xf32>
    %49 = vector.extract_strided_slice %42 {offsets = [0, 256], sizes = [16, 128], strides = [1, 1]} : vector<16x384xf32> to vector<16x128xf32>
    %50 = vector.shape_cast %49 : vector<16x128xf32> to vector<2x8x128xf32>
    %51 = vector.extract_strided_slice %46 {offsets = [0, 0, 0], sizes = [2, 8, 32], strides = [1, 1, 1]} : vector<2x8x128xf32> to vector<2x8x32xf32>
    %52 = arith.truncf %51 : vector<2x8x32xf32> to vector<2x8x32xbf16>
    %53 = vector.extract_strided_slice %48 {offsets = [0, 0, 0], sizes = [2, 8, 32], strides = [1, 1, 1]} : vector<2x8x128xf32> to vector<2x8x32xf32>
    %54 = arith.truncf %53 : vector<2x8x32xf32> to vector<2x8x32xbf16>
    %55 = vector.extract_strided_slice %50 {offsets = [0, 0, 0], sizes = [2, 8, 32], strides = [1, 1, 1]} : vector<2x8x128xf32> to vector<2x8x32xf32>
    %56 = arith.truncf %55 : vector<2x8x32xf32> to vector<2x8x32xbf16>
    "tpu.trace_start"() <{level = 10 : i32, message = "bqd,bkd->bqk"}> : () -> ()
    %cst_15 = arith.constant dense<0.000000e+00> : vector<2x8x8xf32>
    %57 = tpu.matmul %52, %54, %cst_15 {dimension_numbers = #tpu.dot_dimension_numbers<[2], [2], [1], [1], [0, 0, 0, 1, 1, 1], [0], [0]>} : vector<2x8x32xbf16>, vector<2x8x32xbf16>, vector<2x8x8xf32> -> vector<2x8x8xf32>
    "tpu.trace_stop"() : () -> ()
    %cst_16 = arith.constant dense<0xFF800000> : vector<2x8xf32>
    %58 = vector.multi_reduction <maximumf>, %57, %cst_16 [2] : vector<2x8x8xf32> to vector<2x8xf32>
    %59 = vector.shape_cast %58 : vector<2x8xf32> to vector<2x8x1xf32>
    %60 = vector.broadcast %59 : vector<2x8x1xf32> to vector<2x8x8xf32>
    %61 = arith.subf %57, %60 : vector<2x8x8xf32>
    %62 = math.exp %61 : vector<2x8x8xf32>
    %cst_17 = arith.constant dense<0.000000e+00> : vector<2x8xf32>
    %63 = vector.multi_reduction <add>, %62, %cst_17 [2] : vector<2x8x8xf32> to vector<2x8xf32>
    %64 = vector.shape_cast %63 : vector<2x8xf32> to vector<2x8x1xf32>
    %65 = tpu.reciprocal %64 {approx = true} : vector<2x8x1xf32> -> vector<2x8x1xf32>
    %66 = vector.broadcast %65 : vector<2x8x1xf32> to vector<2x8x8xf32>
    %67 = arith.mulf %62, %66 : vector<2x8x8xf32>
    %68 = arith.truncf %67 : vector<2x8x8xf32> to vector<2x8x8xbf16>
    "tpu.trace_start"() <{level = 10 : i32, message = "bqk,bkd->bqd"}> : () -> ()
    %cst_18 = arith.constant dense<0.000000e+00> : vector<2x8x32xf32>
    %69 = tpu.matmul %68, %56, %cst_18 {dimension_numbers = #tpu.dot_dimension_numbers<[2], [1], [1], [2], [0, 0, 0, 1, 1, 2], [0], [0]>} : vector<2x8x8xbf16>, vector<2x8x32xbf16>, vector<2x8x32xf32> -> vector<2x8x32xf32>
    "tpu.trace_stop"() : () -> ()
    %70 = vector.extract_strided_slice %46 {offsets = [0, 0, 32], sizes = [2, 8, 32], strides = [1, 1, 1]} : vector<2x8x128xf32> to vector<2x8x32xf32>
    %71 = arith.truncf %70 : vector<2x8x32xf32> to vector<2x8x32xbf16>
    %72 = vector.extract_strided_slice %48 {offsets = [0, 0, 32], sizes = [2, 8, 32], strides = [1, 1, 1]} : vector<2x8x128xf32> to vector<2x8x32xf32>
    %73 = arith.truncf %72 : vector<2x8x32xf32> to vector<2x8x32xbf16>
    %74 = vector.extract_strided_slice %50 {offsets = [0, 0, 32], sizes = [2, 8, 32], strides = [1, 1, 1]} : vector<2x8x128xf32> to vector<2x8x32xf32>
    %75 = arith.truncf %74 : vector<2x8x32xf32> to vector<2x8x32xbf16>
    "tpu.trace_start"() <{level = 10 : i32, message = "bqd,bkd->bqk"}> : () -> ()
    %cst_19 = arith.constant dense<0.000000e+00> : vector<2x8x8xf32>
    %76 = tpu.matmul %71, %73, %cst_19 {dimension_numbers = #tpu.dot_dimension_numbers<[2], [2], [1], [1], [0, 0, 0, 1, 1, 1], [0], [0]>} : vector<2x8x32xbf16>, vector<2x8x32xbf16>, vector<2x8x8xf32> -> vector<2x8x8xf32>
    "tpu.trace_stop"() : () -> ()
    %cst_20 = arith.constant dense<0xFF800000> : vector<2x8xf32>
    %77 = vector.multi_reduction <maximumf>, %76, %cst_20 [2] : vector<2x8x8xf32> to vector<2x8xf32>
    %78 = vector.shape_cast %77 : vector<2x8xf32> to vector<2x8x1xf32>
    %79 = vector.broadcast %78 : vector<2x8x1xf32> to vector<2x8x8xf32>
    %80 = arith.subf %76, %79 : vector<2x8x8xf32>
    %81 = math.exp %80 : vector<2x8x8xf32>
    %cst_21 = arith.constant dense<0.000000e+00> : vector<2x8xf32>
    %82 = vector.multi_reduction <add>, %81, %cst_21 [2] : vector<2x8x8xf32> to vector<2x8xf32>
    %83 = vector.shape_cast %82 : vector<2x8xf32> to vector<2x8x1xf32>
    %84 = tpu.reciprocal %83 {approx = true} : vector<2x8x1xf32> -> vector<2x8x1xf32>
    %85 = vector.broadcast %84 : vector<2x8x1xf32> to vector<2x8x8xf32>
    %86 = arith.mulf %81, %85 : vector<2x8x8xf32>
    %87 = arith.truncf %86 : vector<2x8x8xf32> to vector<2x8x8xbf16>
    "tpu.trace_start"() <{level = 10 : i32, message = "bqk,bkd->bqd"}> : () -> ()
    %cst_22 = arith.constant dense<0.000000e+00> : vector<2x8x32xf32>
    %88 = tpu.matmul %87, %75, %cst_22 {dimension_numbers = #tpu.dot_dimension_numbers<[2], [1], [1], [2], [0, 0, 0, 1, 1, 2], [0], [0]>} : vector<2x8x8xbf16>, vector<2x8x32xbf16>, vector<2x8x32xf32> -> vector<2x8x32xf32>
    "tpu.trace_stop"() : () -> ()
    %89 = vector.extract_strided_slice %46 {offsets = [0, 0, 64], sizes = [2, 8, 32], strides = [1, 1, 1]} : vector<2x8x128xf32> to vector<2x8x32xf32>
    %90 = arith.truncf %89 : vector<2x8x32xf32> to vector<2x8x32xbf16>
    %91 = vector.extract_strided_slice %48 {offsets = [0, 0, 64], sizes = [2, 8, 32], strides = [1, 1, 1]} : vector<2x8x128xf32> to vector<2x8x32xf32>
    %92 = arith.truncf %91 : vector<2x8x32xf32> to vector<2x8x32xbf16>
    %93 = vector.extract_strided_slice %50 {offsets = [0, 0, 64], sizes = [2, 8, 32], strides = [1, 1, 1]} : vector<2x8x128xf32> to vector<2x8x32xf32>
    %94 = arith.truncf %93 : vector<2x8x32xf32> to vector<2x8x32xbf16>
    "tpu.trace_start"() <{level = 10 : i32, message = "bqd,bkd->bqk"}> : () -> ()
    %cst_23 = arith.constant dense<0.000000e+00> : vector<2x8x8xf32>
    %95 = tpu.matmul %90, %92, %cst_23 {dimension_numbers = #tpu.dot_dimension_numbers<[2], [2], [1], [1], [0, 0, 0, 1, 1, 1], [0], [0]>} : vector<2x8x32xbf16>, vector<2x8x32xbf16>, vector<2x8x8xf32> -> vector<2x8x8xf32>
    "tpu.trace_stop"() : () -> ()
    %cst_24 = arith.constant dense<0xFF800000> : vector<2x8xf32>
    %96 = vector.multi_reduction <maximumf>, %95, %cst_24 [2] : vector<2x8x8xf32> to vector<2x8xf32>
    %97 = vector.shape_cast %96 : vector<2x8xf32> to vector<2x8x1xf32>
    %98 = vector.broadcast %97 : vector<2x8x1xf32> to vector<2x8x8xf32>
    %99 = arith.subf %95, %98 : vector<2x8x8xf32>
    %100 = math.exp %99 : vector<2x8x8xf32>
    %cst_25 = arith.constant dense<0.000000e+00> : vector<2x8xf32>
    %101 = vector.multi_reduction <add>, %100, %cst_25 [2] : vector<2x8x8xf32> to vector<2x8xf32>
    %102 = vector.shape_cast %101 : vector<2x8xf32> to vector<2x8x1xf32>
    %103 = tpu.reciprocal %102 {approx = true} : vector<2x8x1xf32> -> vector<2x8x1xf32>
    %104 = vector.broadcast %103 : vector<2x8x1xf32> to vector<2x8x8xf32>
    %105 = arith.mulf %100, %104 : vector<2x8x8xf32>
    %106 = arith.truncf %105 : vector<2x8x8xf32> to vector<2x8x8xbf16>
    "tpu.trace_start"() <{level = 10 : i32, message = "bqk,bkd->bqd"}> : () -> ()
    %cst_26 = arith.constant dense<0.000000e+00> : vector<2x8x32xf32>
    %107 = tpu.matmul %106, %94, %cst_26 {dimension_numbers = #tpu.dot_dimension_numbers<[2], [1], [1], [2], [0, 0, 0, 1, 1, 2], [0], [0]>} : vector<2x8x8xbf16>, vector<2x8x32xbf16>, vector<2x8x32xf32> -> vector<2x8x32xf32>
    "tpu.trace_stop"() : () -> ()
    %108 = vector.extract_strided_slice %46 {offsets = [0, 0, 96], sizes = [2, 8, 32], strides = [1, 1, 1]} : vector<2x8x128xf32> to vector<2x8x32xf32>
    %109 = arith.truncf %108 : vector<2x8x32xf32> to vector<2x8x32xbf16>
    %110 = vector.extract_strided_slice %48 {offsets = [0, 0, 96], sizes = [2, 8, 32], strides = [1, 1, 1]} : vector<2x8x128xf32> to vector<2x8x32xf32>
    %111 = arith.truncf %110 : vector<2x8x32xf32> to vector<2x8x32xbf16>
    %112 = vector.extract_strided_slice %50 {offsets = [0, 0, 96], sizes = [2, 8, 32], strides = [1, 1, 1]} : vector<2x8x128xf32> to vector<2x8x32xf32>
    %113 = arith.truncf %112 : vector<2x8x32xf32> to vector<2x8x32xbf16>
    "tpu.trace_start"() <{level = 10 : i32, message = "bqd,bkd->bqk"}> : () -> ()
    %cst_27 = arith.constant dense<0.000000e+00> : vector<2x8x8xf32>
    %114 = tpu.matmul %109, %111, %cst_27 {dimension_numbers = #tpu.dot_dimension_numbers<[2], [2], [1], [1], [0, 0, 0, 1, 1, 1], [0], [0]>} : vector<2x8x32xbf16>, vector<2x8x32xbf16>, vector<2x8x8xf32> -> vector<2x8x8xf32>
    "tpu.trace_stop"() : () -> ()
    %cst_28 = arith.constant dense<0xFF800000> : vector<2x8xf32>
    %115 = vector.multi_reduction <maximumf>, %114, %cst_28 [2] : vector<2x8x8xf32> to vector<2x8xf32>
    %116 = vector.shape_cast %115 : vector<2x8xf32> to vector<2x8x1xf32>
    %117 = vector.broadcast %116 : vector<2x8x1xf32> to vector<2x8x8xf32>
    %118 = arith.subf %114, %117 : vector<2x8x8xf32>
    %119 = math.exp %118 : vector<2x8x8xf32>
    %cst_29 = arith.constant dense<0.000000e+00> : vector<2x8xf32>
    %120 = vector.multi_reduction <add>, %119, %cst_29 [2] : vector<2x8x8xf32> to vector<2x8xf32>
    %121 = vector.shape_cast %120 : vector<2x8xf32> to vector<2x8x1xf32>
    %122 = tpu.reciprocal %121 {approx = true} : vector<2x8x1xf32> -> vector<2x8x1xf32>
    %123 = vector.broadcast %122 : vector<2x8x1xf32> to vector<2x8x8xf32>
    %124 = arith.mulf %119, %123 : vector<2x8x8xf32>
    %125 = arith.truncf %124 : vector<2x8x8xf32> to vector<2x8x8xbf16>
    "tpu.trace_start"() <{level = 10 : i32, message = "bqk,bkd->bqd"}> : () -> ()
    %cst_30 = arith.constant dense<0.000000e+00> : vector<2x8x32xf32>
    %126 = tpu.matmul %125, %113, %cst_30 {dimension_numbers = #tpu.dot_dimension_numbers<[2], [1], [1], [2], [0, 0, 0, 1, 1, 2], [0], [0]>} : vector<2x8x8xbf16>, vector<2x8x32xbf16>, vector<2x8x32xf32> -> vector<2x8x32xf32>
    "tpu.trace_stop"() : () -> ()
    %127 = tpu.concatenate %69, %88, %107, %126 in 2 : vector<2x8x32xf32>, vector<2x8x32xf32>, vector<2x8x32xf32>, vector<2x8x32xf32> -> vector<2x8x128xf32>
    %128 = vector.shape_cast %127 : vector<2x8x128xf32> to vector<16x128xf32>
    %129 = arith.truncf %128 : vector<16x128xf32> to vector<16x128xbf16>
    %c0_31 = arith.constant 0 : index
    %c0_32 = arith.constant 0 : index
    %c0_33 = arith.constant 0 : index
    %130 = vector.load %arg4[%c0_31, %c0_32, %c0_33] : memref<1x128x128xbf16, #tpu.memory_space<vmem>>, vector<1x128x128xbf16>
    %131 = vector.shape_cast %130 : vector<1x128x128xbf16> to vector<128x128xbf16>
    %cst_34 = arith.constant dense<0.000000e+00> : vector<16x128xf32>
    %132 = tpu.matmul %129, %131, %cst_34 {dimension_numbers = #tpu.dot_dimension_numbers<[1], [0], [0], [1], [0, 0, 1, 1], [], []>} : vector<16x128xbf16>, vector<128x128xbf16>, vector<16x128xf32> -> vector<16x128xf32>
    %133 = vector.broadcast %6 : vector<1x128xf32> to vector<16x128xf32>
    %134 = arith.addf %132, %133 : vector<16x128xf32>
    %135 = arith.addf %14, %134 : vector<16x128xf32>
    %cst_35 = arith.constant dense<0.000000e+00> : vector<16xf32>
    %136 = vector.multi_reduction <add>, %135, %cst_35 [1] : vector<16x128xf32> to vector<16xf32>
    %137 = vector.shape_cast %136 : vector<16xf32> to vector<16x1xf32>
    %cst_36 = arith.constant 1.280000e+02 : f32
    %138 = vector.broadcast %cst_36 : f32 to vector<16x1xf32>
    %139 = arith.divf %137, %138 : vector<16x1xf32>
    %140 = vector.broadcast %139 : vector<16x1xf32> to vector<16x128xf32>
    %141 = arith.subf %135, %140 : vector<16x128xf32>
    %142 = arith.mulf %141, %141 : vector<16x128xf32>
    %cst_37 = arith.constant dense<0.000000e+00> : vector<16xf32>
    %143 = vector.multi_reduction <add>, %142, %cst_37 [1] : vector<16x128xf32> to vector<16xf32>
    %144 = vector.shape_cast %143 : vector<16xf32> to vector<16x1xf32>
    %cst_38 = arith.constant 1.280000e+02 : f32
    %145 = vector.broadcast %cst_38 : f32 to vector<16x1xf32>
    %146 = arith.divf %144, %145 : vector<16x1xf32>
    %147 = vector.broadcast %139 : vector<16x1xf32> to vector<16x128xf32>
    %148 = arith.subf %135, %147 : vector<16x128xf32>
    %cst_39 = arith.constant 9.99999974E-6 : f32
    %149 = vector.broadcast %cst_39 : f32 to vector<16x1xf32>
    %150 = arith.addf %146, %149 : vector<16x1xf32>
    %151 = math.rsqrt %150 : vector<16x1xf32>
    %152 = vector.broadcast %151 : vector<16x1xf32> to vector<16x128xf32>
    %153 = arith.mulf %148, %152 : vector<16x128xf32>
    %154 = vector.broadcast %9 : vector<1x128xf32> to vector<16x128xf32>
    %155 = arith.mulf %153, %154 : vector<16x128xf32>
    %156 = vector.broadcast %10 : vector<1x128xf32> to vector<16x128xf32>
    %157 = arith.addf %155, %156 : vector<16x128xf32>
    %158 = arith.truncf %157 : vector<16x128xf32> to vector<16x128xbf16>
    %c0_40 = arith.constant 0 : index
    %c0_41 = arith.constant 0 : index
    %c0_42 = arith.constant 0 : index
    %159 = vector.load %arg5[%c0_40, %c0_41, %c0_42] : memref<1x128x256xbf16, #tpu.memory_space<vmem>>, vector<1x128x256xbf16>
    %160 = vector.shape_cast %159 : vector<1x128x256xbf16> to vector<128x256xbf16>
    %cst_43 = arith.constant dense<0.000000e+00> : vector<16x256xf32>
    %161 = tpu.matmul %158, %160, %cst_43 {dimension_numbers = #tpu.dot_dimension_numbers<[1], [0], [0], [1], [0, 0, 1, 1], [], []>} : vector<16x128xbf16>, vector<128x256xbf16>, vector<16x256xf32> -> vector<16x256xf32>
    %162 = vector.broadcast %11 : vector<1x256xf32> to vector<16x256xf32>
    %163 = arith.addf %161, %162 : vector<16x256xf32>
    %cst_44 = arith.constant 0.000000e+00 : f32
    %164 = vector.broadcast %cst_44 : f32 to vector<16x256xf32>
    %165 = arith.maximumf %163, %164 : vector<16x256xf32>
    %166 = arith.truncf %165 : vector<16x256xf32> to vector<16x256xbf16>
    %c0_45 = arith.constant 0 : index
    %c0_46 = arith.constant 0 : index
    %c0_47 = arith.constant 0 : index
    %167 = vector.load %arg6[%c0_45, %c0_46, %c0_47] : memref<1x256x128xbf16, #tpu.memory_space<vmem>>, vector<1x256x128xbf16>
    %168 = vector.shape_cast %167 : vector<1x256x128xbf16> to vector<256x128xbf16>
    %cst_48 = arith.constant dense<0.000000e+00> : vector<16x128xf32>
    %169 = tpu.matmul %166, %168, %cst_48 {dimension_numbers = #tpu.dot_dimension_numbers<[1], [0], [0], [1], [0, 0, 1, 1], [], []>} : vector<16x256xbf16>, vector<256x128xbf16>, vector<16x128xf32> -> vector<16x128xf32>
    %170 = arith.addf %135, %169 : vector<16x128xf32>
    %171 = vector.broadcast %12 : vector<1x128xf32> to vector<16x128xf32>
    %172 = arith.addf %170, %171 : vector<16x128xf32>
    %c1_i32 = arith.constant 1 : i32
    %173 = arith.cmpi slt, %arg1, %c1_i32 : i32
    %174 = arith.extui %173 : i1 to i32
    %c0_i32_49 = arith.constant 0 : i32
    %175 = arith.cmpi ne, %174, %c0_i32_49 : i32
    scf.if %175 {
      %179 = vector.shape_cast %172 : vector<16x128xf32> to vector<2x8x128xf32>
      %c0_52 = arith.constant 0 : index
      %c0_53 = arith.constant 0 : index
      %c0_54 = arith.constant 0 : index
      %180 = vector.load %arg13[%c0_52, %c0_53, %c0_54] : memref<2x8x128xf32, #tpu.memory_space<vmem>>, vector<2x8x128xf32>
      tpu.vector_store %arg13[%c0_52, %c0_53, %c0_54], %179 {strides = array<i32>} : memref<2x8x128xf32, #tpu.memory_space<vmem>>, vector<2x8x128xf32>,
    } else {
    }
    %c1_i32_50 = arith.constant 1 : i32
    %176 = arith.cmpi eq, %arg1, %c1_i32_50 : i32
    %177 = arith.extui %176 : i1 to i32
    %c0_i32_51 = arith.constant 0 : i32
    %178 = arith.cmpi ne, %177, %c0_i32_51 : i32
    scf.if %178 {
      %179 = vector.shape_cast %172 : vector<16x128xf32> to vector<2x8x128xf32>
      %cst_52 = arith.constant dense<0.000000e+00> : vector<2x128xf32>
      %180 = vector.multi_reduction <add>, %179, %cst_52 [1] : vector<2x8x128xf32> to vector<2x128xf32>
      %cst_53 = arith.constant 1.250000e-01 : f32
      %181 = vector.broadcast %cst_53 : f32 to vector<2x128xf32>
      %182 = arith.mulf %180, %181 : vector<2x128xf32>
      %183 = arith.truncf %182 : vector<2x128xf32> to vector<2x128xbf16>
      %c0_54 = arith.constant 0 : index
      %c0_55 = arith.constant 0 : index
      %184 = vector.load %arg8[%c0_54, %c0_55] : memref<128x128xbf16, #tpu.memory_space<vmem>>, vector<128x128xbf16>
      %cst_56 = arith.constant dense<0.000000e+00> : vector<2x128xf32>
      %185 = tpu.matmul %183, %184, %cst_56 {dimension_numbers = #tpu.dot_dimension_numbers<[1], [0], [0], [1], [0, 0, 1, 1], [], []>} : vector<2x128xbf16>, vector<128x128xbf16>, vector<2x128xf32> -> vector<2x128xf32>
      %c0_57 = arith.constant 0 : index
      %c0_58 = arith.constant 0 : index
      %186 = vector.load %arg9[%c0_57, %c0_58] : memref<1x128xf32, #tpu.memory_space<vmem>>, vector<1x128xf32>
      %187 = vector.broadcast %186 : vector<1x128xf32> to vector<2x128xf32>
      %188 = arith.addf %185, %187 : vector<2x128xf32>
      %cst_59 = arith.constant 0.000000e+00 : f32
      %189 = vector.broadcast %cst_59 : f32 to vector<2x128xf32>
      %190 = arith.maximumf %188, %189 : vector<2x128xf32>
      %191 = arith.truncf %190 : vector<2x128xf32> to vector<2x128xbf16>
      %c0_60 = arith.constant 0 : index
      %c0_61 = arith.constant 0 : index
      %192 = vector.load %arg10[%c0_60, %c0_61] : memref<128x128xbf16, #tpu.memory_space<vmem>>, vector<128x128xbf16>
      %cst_62 = arith.constant dense<0.000000e+00> : vector<2x128xf32>
      %193 = tpu.matmul %191, %192, %cst_62 {dimension_numbers = #tpu.dot_dimension_numbers<[1], [0], [0], [1], [0, 0, 1, 1], [], []>} : vector<2x128xbf16>, vector<128x128xbf16>, vector<2x128xf32> -> vector<2x128xf32>
      %c0_63 = arith.constant 0 : index
      %c0_64 = arith.constant 0 : index
      %194 = vector.load %arg11[%c0_63, %c0_64] : memref<1x128xf32, #tpu.memory_space<vmem>>, vector<1x128xf32>
      %195 = vector.broadcast %194 : vector<1x128xf32> to vector<2x128xf32>
      %196 = arith.addf %193, %195 : vector<2x128xf32>
      %c0_65 = arith.constant 0 : index
      %c0_66 = arith.constant 0 : index
      %197 = vector.load %arg12[%c0_65, %c0_66] : memref<2x128xf32, #tpu.memory_space<vmem>>, vector<2x128xf32>
      tpu.vector_store %arg12[%c0_65, %c0_66], %196 {strides = array<i32>} : memref<2x128xf32, #tpu.memory_space<vmem>>, vector<2x128xf32>,
    } else {
    }
    return
  }
  func.func @transform_0(%arg0: i32, %arg1: i32) -> (i32, i32, i32) {
    %c0_i32 = arith.constant 0 : i32
    %c0_i32_0 = arith.constant 0 : i32
    %c0_i32_1 = arith.constant 0 : i32
    return %arg0, %c0_i32, %c0_i32_0 : i32, i32, i32
  }
  func.func @transform_1(%arg0: i32, %arg1: i32) -> (i32, i32, i32) {
    %c0_i32 = arith.constant 0 : i32
    %c0_i32_0 = arith.constant 0 : i32
    %c0_i32_1 = arith.constant 0 : i32
    return %arg1, %c0_i32, %c0_i32_0 : i32, i32, i32
  }
  func.func @transform_2(%arg0: i32, %arg1: i32) -> (i32, i32, i32) {
    %c0_i32 = arith.constant 0 : i32
    %c0_i32_0 = arith.constant 0 : i32
    %c0_i32_1 = arith.constant 0 : i32
    return %arg1, %c0_i32, %c0_i32_0 : i32, i32, i32
  }
  func.func @transform_3(%arg0: i32, %arg1: i32) -> (i32, i32, i32) {
    %c0_i32 = arith.constant 0 : i32
    %c0_i32_0 = arith.constant 0 : i32
    %c0_i32_1 = arith.constant 0 : i32
    return %arg1, %c0_i32, %c0_i32_0 : i32, i32, i32
  }
  func.func @transform_4(%arg0: i32, %arg1: i32) -> (i32, i32, i32) {
    %c0_i32 = arith.constant 0 : i32
    %c0_i32_0 = arith.constant 0 : i32
    %c0_i32_1 = arith.constant 0 : i32
    return %arg1, %c0_i32, %c0_i32_0 : i32, i32, i32
  }
  func.func @transform_5(%arg0: i32, %arg1: i32) -> (i32, i32, i32) {
    %c0_i32 = arith.constant 0 : i32
    %c0_i32_0 = arith.constant 0 : i32
    %c0_i32_1 = arith.constant 0 : i32
    return %arg1, %c0_i32, %c0_i32_0 : i32, i32, i32
  }
  func.func @transform_6(%arg0: i32, %arg1: i32) -> (i32, i32) {
    %c0_i32 = arith.constant 0 : i32
    %c0_i32_0 = arith.constant 0 : i32
    %c0_i32_1 = arith.constant 0 : i32
    return %c0_i32, %c0_i32_0 : i32, i32
  }
  func.func @transform_7(%arg0: i32, %arg1: i32) -> (i32, i32) {
    %c0_i32 = arith.constant 0 : i32
    %c0_i32_0 = arith.constant 0 : i32
    %c0_i32_1 = arith.constant 0 : i32
    return %c0_i32, %c0_i32_0 : i32, i32
  }
  func.func @transform_8(%arg0: i32, %arg1: i32) -> (i32, i32) {
    %c0_i32 = arith.constant 0 : i32
    %c0_i32_0 = arith.constant 0 : i32
    %c0_i32_1 = arith.constant 0 : i32
    return %c0_i32, %c0_i32_0 : i32, i32
  }
  func.func @transform_9(%arg0: i32, %arg1: i32) -> (i32, i32) {
    %c0_i32 = arith.constant 0 : i32
    %c0_i32_0 = arith.constant 0 : i32
    %c0_i32_1 = arith.constant 0 : i32
    return %c0_i32, %c0_i32_0 : i32, i32
  }
  func.func @transform_10(%arg0: i32, %arg1: i32) -> (i32, i32) {
    %c0_i32 = arith.constant 0 : i32
    %c0_i32_0 = arith.constant 0 : i32
    return %arg0, %c0_i32 : i32, i32
  }
}

</mosaic_0001>

<bundles_post_ra>
// kernel: tpu_custom_call.1
= control target key start
LH: loop header
LB: loop body
LE: loop exit
PB: predicated region body
PF: predicated region fallthrough
CT: control target
= control target key end

     0   :  { %s4439_s0 = inlined_call_operand.hbm [shape: bf16[2,8,128], index: 0, kind: input, shape index: {}]   ;;  %s4440_s1 = inlined_call_operand.hbm [shape: bf16[2,128,384], index: 1, kind: input, shape index: {}]   ;;  %s4441_s2 = inlined_call_operand.hbm [shape: bf16[2,128,128], index: 2, kind: input, shape index: {}]   ;;  %s4442_s3 = inlined_call_operand.hbm [shape: bf16[2,128,256], index: 3, kind: input, shape index: {}]   ;;  %s4443_s4 = inlined_call_operand.hbm [shape: bf16[2,256,128], index: 4, kind: input, shape index: {}]   ;;  %s4444_s5 = inlined_call_operand.hbm [shape: f32[2,8,384], index: 5, kind: input, shape index: {}]   ;;  %s4445_s6 = inlined_call_operand.hbm [shape: bf16[128,128], index: 6, kind: input, shape index: {}]   ;;  %s4446_s7 = inlined_call_operand.vmem [shape: f32[1,128], index: 7, kind: input, shape index: {}]   ;;  %s4447_s8 = inlined_call_operand.hbm [shape: bf16[128,128], index: 8, kind: input, shape index: {}]   ;;  %s4448_s9 = inlined_call_operand.vmem [shape: f32[1,128], index: 9, kind: input, shape index: {}]   ;;  %s4449_s10 = inlined_call_operand.hbm [shape: f32[2,128], index: 10, kind: output, shape index: {}]  }
   0x1   :  { %4463 = sst [smem:[#allocation32_spill]] %s4440_s1 }
   0x2   :  { %4464 = sst [smem:[#allocation33_spill]] %s4445_s6 }
   0x3   :  { %4465 = sst [smem:[#allocation34_spill]] %s4446_s7 }
   0x4   :  { %4466 = sst [smem:[#allocation35_spill]] %s4448_s9 }
   0x5   :  { %4467 = sst [smem:[#allocation36_spill]] %s4449_s10 }
   0x6   :  { %15 = vsyncpa [#allocation4], 0 }
   0x7   :  { %16 = vsyncpa [#allocation7], 0 }
   0x8   :  { %18 = vsyncpa [#allocation7 + $0x1], 0 }
   0x9   :  { %19 = vsyncpa [#allocation10], 0 }
   0xa   :  { %21 = vsyncpa [#allocation10 + $0x1], 0 }
   0xb   :  { %22 = vsyncpa [#allocation13], 0 }
   0xc   :  { %24 = vsyncpa [#allocation13 + $0x1], 0 }
   0xd   :  { %25 = vsyncpa [#allocation16], 0 }
   0xe   :  { %26 = vsyncpa [#allocation5], 0  ;;  %s3823_s13 = smov 0   ;;  %s3825_s14 = smov 0  }
   0xf   :  { %s3827_s15 = smov 0   ;;  %s3829_s16 = smov 0  }
  0x10   :  { %s3831_s17 = smov 0   ;;  %s3833_s18 = smov 0  }
  0x11 LB: > { %4468 = sst [smem:[#allocation25_spill]] %s3727_s14  ;;  %s3852_s19 = sadd.s32 4294967295, %s3743_s18   ;;  %s3743_s18 = sphi %s3833_s18, %s32_s18   ;;  %s3739_s17 = sphi %s3831_s17, %s4509_s17   ;;  %s3735_s16 = sphi %s3829_s16, %s4508_s16   ;;  %s3731_s15 = sphi %s3827_s15, %s4506_s15   ;;  %s3727_s14 = sphi %s3825_s14, %s4505_s14   ;;  %s3723_s13 = sphi %s3823_s13, %s4504_s13  }
  0x12   : > { %4469 = sst [smem:[#allocation26_spill]] %s3731_s15  ;;  %p84_p0 = scmp.ne.s32.totalorder %s3731_s15, %s3727_s14 }
  0x13   : > { %4470 = sst [smem:[#allocation27_spill]] %s3735_s16  ;;  %p85_p1 = scmp.eq.s32.totalorder %s3743_s18, 0 }
  0x14   : > { %4471 = sst [smem:[#allocation28_spill]] %s3743_s18  ;;  %p90_p2 = scmp.ne.s32.totalorder %s3727_s14, %s3723_s13 }
  0x15   : > { %p4450_p3 = scmp.eq.s32.totalorder %s3852_s19, 0  ;;  %p3860_p4 = por %p85_p1, %p84_p0 }
  0x16   : > { %p2739_p5 = scmp.ge.s32.totalorder %s3743_s18, 1  ;;  %p315_p7 = scmp.lt.s32.totalorder %s3743_s18, 3 }
  0x17   : > { %p3867_p6 = por %p4450_p3, %p90_p2  ;;  %s3745_s24 = smov [#allocation14]  }
  0x18   : > { %p3872_p8 = pnand %p2739_p5, %p315_p7  ;;  %s343_s25 = sshll.u32 %s3745_s24, 4  ;;  %s344_s25 = int_to_ptr.vmem [resolvable:$true] %s343_s25 }
  0x19   : > { %s4473_s22 = scalar_select %p3867_p6, 1, 0 }
  0x1a   : > { %p3172_p9 = pneg %p3872_p8  ;;  %s41_s27 = sadd.s32 1, %s3739_s17 }
  0x1b   : > { %4474 = sst [smem:[#allocation29_spill]] %s4473_s22  ;;  %p3201_p11 = scmp.lt.s32.totalorder %s3743_s18, 2 }
  0x1c   : > { %p3880_p10 = pnand %p3172_p9, %p4450_p3  ;;  %p3886_p12 = scmp.ge.s32.totalorder %s41_s27, 2 }
  0x1d   : > { %s3438_s29 = scalar_lea.vmem %s344_s25, 1024  ;;  %p3446_p5 = scmp.lt.s32.totalorder %s344_s25, %s344_s25 }
  0x1e   : > { %p3429_p13 = pneg %p3880_p10  ;;  %p3439_p0 = scmp.ne.s32.totalorder %s344_s25, %s3438_s29 }
  0x1f   : > { %p3447_p7 = scmp.lt.s32.totalorder %s3438_s29, %s3438_s29 }
  0x20   : > { %p3441_p1 = pnand %p3439_p0, %p3429_p13 }
  0x21   : > { %p3448_p9 = por %p3447_p7, %p3446_p5 }
  0x22   : > { %p3442_p2 = pneg %p3441_p1 }
  0x24   : > { %p3449_p3 = pnand %p3448_p9, %p3442_p2 }
  0x26   : > { %3452 = shalt.err (!%p3449_p3)
}
  0x27   : > { %s4451_s30 = smov 64   ;;  %s4453_s11 = smov 4  }
  0x28   : > { %s4478_s6 = sld [smem:[#allocation33_spill]]  ;;  %s4511_s27 = smov (%p3886_p12, %s41_s27), 0 }
  0x29   : > { %4479 = sst [smem:[#allocation30_spill]] %s4511_s27  ;;  %s3908_s24 = sand.u32 1, %s3743_s18  }
  0x2a   : > { %s3911_s29 = sand.u32 1, %s3731_s15   ;;  %s74_s20 = ssub.s32 %s3739_s17, %s4511_s27 }
  0x2b   : > { %p75_p3 = scmp.eq.s32.totalorder %s74_s20, 0  ;;  %s3140_s10 = smul.u32 192, %s3911_s29 }
  0x2c   : > { %s3141_s9 = smul.u32 3072, %s3739_s17  ;;  %p3921_p0 = pnand %p3201_p11, %p3860_p4 }
  0x2d   : > { %s4483_s1 = sld [smem:[#allocation32_spill]]  ;;  %s4461_s20 = scalar_lea.sflag [#allocation7], %s3908_s24 }
  0x2e   : > { %3178 = dma.hbm_to_vmem [thread:$0]  (!%p3880_p10), %s4478_s6, 1024, %s344_s25, [#allocation13], %s4451_s30, %s4451_s30, %s4453_s11  }
  0x2f   : > { %s4481_s25 = sadd.s32 1, %s3731_s15  ;;  %s380_s11 = scalar_lea.vmem [#allocation6], %s3140_s10 }
  0x30   : > { %s3928_s28 = scalar_select %p75_p3, %s3731_s15, %s4481_s25  }
  0x31   : > { %s387_s6 = sshll.u32 %s380_s11, 4  ;;  %p3936_p12 = pneg %p3921_p0  ;;  %s388_s6 = int_to_ptr.vmem [resolvable:$true] %s387_s6 }
  0x32   : > { %4482 = sst [smem:[#allocation31_spill]] %s3928_s28  ;;  %s3466_s27 = scalar_lea.vmem %s388_s6, 3072 }
  0x33   : > { %s386_s30 = scalar_lea.hbm %s4483_s1, %s3141_s9  ;;  %p3467_p4 = scmp.ne.s32.totalorder %s388_s6, %s3466_s27 }
  0x34   : > { %s3748_s25 = smov [#allocation6]  }
  0x35   : > { %p3469_p11 = pnand %p3467_p4, %p3936_p12  ;;  %s3471_s28 = sshll.u32 %s3748_s25, 4  ;;  %s3472_s28 = int_to_ptr.vmem [resolvable:$false] %s3471_s28 }
  0x36   : > { %s3473_s12 = scalar_lea.vmem %s3472_s28, 6144  ;;  %p3474_p2 = scmp.lt.s32.totalorder %s388_s6, %s3472_s28 }
  0x37   : > { %p3470_p1 = pneg %p3469_p11  ;;  %p3475_p5 = scmp.lt.s32.totalorder %s3473_s12, %s3466_s27 }
  0x39   : > { %p3476_p7 = por %p3475_p5, %p3474_p2 }
  0x3b   : > { %p3477_p9 = pnand %p3476_p7, %p3470_p1 }
  0x3d   : > { %3480 = shalt.err (!%p3477_p9)
}
  0x3e   : > { %s3749_s9 = smov 192   ;;  %s3750_s10 = smov 12  }
  0x3f   : > { %3185 = dma.hbm_to_vmem [thread:$0]  (!%p3921_p0), %s386_s30, 3072, %s388_s6, %s4461_s20, %s3749_s9, %s3749_s9, %s3750_s10  }
  0x40   : > { %s2748_s11 = sshll.u32 %s3911_s29, 7  ;;  %s2868_s13 = sshll.u32 %s3739_s17, 11 }
  0x41   : > { %s428_s27 = scalar_lea.hbm %s4442_s3, %s2868_s13  ;;  %s422_s28 = scalar_lea.vmem [#allocation9], %s2748_s11 }
  0x42   : > { %s429_s12 = sshll.u32 %s422_s28, 4  ;;  %s419_s15 = scalar_lea.sflag [#allocation10], %s3908_s24  ;;  %s430_s12 = int_to_ptr.vmem [resolvable:$true] %s429_s12 }
  0x43   : > { %s3494_s18 = scalar_lea.vmem %s430_s12, 2048  ;;  %s3751_s16 = smov [#allocation9]  }
  0x44   : > { %p3495_p3 = scmp.ne.s32.totalorder %s430_s12, %s3494_s18  ;;  %s3499_s22 = sshll.u32 %s3751_s16, 4  ;;  %s3500_s22 = int_to_ptr.vmem [resolvable:$false] %s3499_s22 }
  0x45   : > { %s3501_s14 = scalar_lea.vmem %s3500_s22, 4096  ;;  %p3502_p1 = scmp.lt.s32.totalorder %s430_s12, %s3500_s22 }
  0x46   : > { %p3497_p4 = pnand %p3495_p3, %p3936_p12  ;;  %p3503_p2 = scmp.lt.s32.totalorder %s3501_s14, %s3494_s18 }
  0x48   : > { %p3498_p11 = pneg %p3497_p4  ;;  %p3504_p5 = por %p3503_p2, %p3502_p1 }
  0x4a   : > { %p3505_p7 = pnand %p3504_p5, %p3498_p11 }
  0x4c   : > { %3508 = shalt.err (!%p3505_p7)
}
  0x4d   : > { %s3752_s1 = smov 128   ;;  %s3753_s6 = smov 8  }
  0x4e   : > { %3191 = dma.hbm_to_vmem [thread:$0]  (!%p3921_p0), %s428_s27, 2048, %s430_s12, %s419_s15, %s3752_s1, %s3752_s1, %s3753_s6  }
  0x4f   : > { %s3961_s10 = scalar_lea.hbm %s4443_s4, %s2868_s13  ;;  %s443_s16 = scalar_lea.vmem [#allocation11], %s2748_s11 }
  0x50   : > { %s450_s25 = sshll.u32 %s443_s16, 4  ;;  %s3754_s14 = smov [#allocation3]   ;;  %s3963_s25 = int_to_ptr.vmem [resolvable:$true] %s450_s25 }
  0x51   : > { %s330_s18 = sshll.u32 %s3754_s14, 4  ;;  %s3755_s22 = smov [#allocation15]   ;;  %s331_s18 = int_to_ptr.vmem [resolvable:$true] %s330_s18 }
  0x52   : > { %s359_s28 = sshll.u32 %s3755_s22, 4  ;;  %s3520_s20 = scalar_lea.vmem %s331_s18, 128  ;;  %s360_s28 = int_to_ptr.vmem [resolvable:$true] %s359_s28 }
  0x53   : > { %p3521_p9 = scmp.ne.s32.totalorder %s331_s18, %s3520_s20  ;;  %p3528_p11 = scmp.lt.s32.totalorder %s331_s18, %s331_s18 }
  0x54   : > { %p3529_p1 = scmp.lt.s32.totalorder %s3520_s20, %s3520_s20 }
  0x55   : > { %p3523_p3 = pnand %p3521_p9, %p3429_p13 }
  0x56   : > { %p3530_p2 = por %p3529_p1, %p3528_p11 }
  0x57   : > { %p3524_p4 = pneg %p3523_p3 }
  0x59   : > { %p3531_p5 = pnand %p3530_p2, %p3524_p4 }
  0x5b   : > { %3534 = shalt.err (!%p3531_p5)
}
  0x5c   : > { %s4485_s11 = smov 4   ;;  %s4486_s13 = smov 64  }
  0x5d   : > { %3175 = dma.hbm_to_vmem [thread:$0]  (!%p3880_p10), %s4439_s0, 128, %s331_s18, [#allocation4], %s4486_s13, %s4486_s13, %s4485_s11  }
  0x5e   : > { %s3546_s1 = scalar_lea.vmem %s360_s28, 1024  ;;  %p3554_p6 = scmp.lt.s32.totalorder %s360_s28, %s360_s28 }
  0x5f   : > { %p3547_p7 = scmp.ne.s32.totalorder %s360_s28, %s3546_s1  ;;  %p3555_p11 = scmp.lt.s32.totalorder %s3546_s1, %s3546_s1 }
  0x61   : > { %p3549_p9 = pnand %p3547_p7, %p3429_p13  ;;  %p3556_p4 = por %p3555_p11, %p3554_p6 }
  0x63   : > { %p3550_p3 = pneg %p3549_p9 }
  0x65   : > { %p3557_p1 = pnand %p3556_p4, %p3550_p3 }
  0x67   : > { %3560 = shalt.err (!%p3557_p1)
}
  0x68   : > { %3181 = dma.hbm_to_vmem [thread:$0]  (!%p3880_p10), %s4447_s8, 1024, %s360_s28, [#allocation16], %s4486_s13, %s4486_s13, %s4485_s11  }
  0x69   : > { %s2745_s30 = sshll.u32 %s3911_s29, 6  ;;  %s2867_s9 = sshll.u32 %s3739_s17, 10 }
  0x6a   : > { %s407_s18 = scalar_lea.hbm %s4441_s2, %s2867_s9  ;;  %s401_s22 = scalar_lea.vmem [#allocation8], %s2745_s30 }
  0x6b   : > { %s408_s27 = sshll.u32 %s401_s22, 4  ;;  %s3142_s26 = smul.u32 24, %s3911_s29  ;;  %s409_s27 = int_to_ptr.vmem [resolvable:$true] %s408_s27 }
  0x6c   : > { %s3574_s12 = scalar_lea.vmem %s409_s27, 1024  ;;  %s3756_s1 = smov [#allocation8]  }
  0x6d   : > { %p3575_p6 = scmp.ne.s32.totalorder %s409_s27, %s3574_s12  ;;  %s3579_s20 = sshll.u32 %s3756_s1, 4  ;;  %s3580_s20 = int_to_ptr.vmem [resolvable:$false] %s3579_s20 }
  0x6e   : > { %s3581_s6 = scalar_lea.vmem %s3580_s20, 2048  ;;  %p3582_p10 = scmp.lt.s32.totalorder %s409_s27, %s3580_s20 }
  0x6f   : > { %p3577_p13 = pnand %p3575_p6, %p3936_p12  ;;  %p3583_p5 = scmp.lt.s32.totalorder %s3581_s6, %s3574_s12 }
  0x71   : > { %p3578_p2 = pneg %p3577_p13  ;;  %p3584_p7 = por %p3583_p5, %p3582_p10 }
  0x73   : > { %p3585_p9 = pnand %p3584_p7, %p3578_p2 }
  0x75   : > { %3588 = shalt.err (!%p3585_p9)
}
  0x76   : > { %s4487_s28 = scalar_lea.sflag [#allocation7], %s3908_s24  ;;  %s3602_s30 = scalar_lea.vmem %s3963_s25, 2048 }
  0x77   : > { %3188 = dma.hbm_to_vmem [thread:$0]  (!%p3921_p0), %s407_s18, 1024, %s409_s27, %s4487_s28, %s4486_s13, %s4486_s13, %s4485_s11  }
  0x78   : > { %p3603_p3 = scmp.ne.s32.totalorder %s3963_s25, %s3602_s30  ;;  %s3757_s9 = smov [#allocation11]  }
  0x79   : > { %s3607_s16 = sshll.u32 %s3757_s9, 4  ;;  %s3608_s16 = int_to_ptr.vmem [resolvable:$false] %s3607_s16 }
  0x7a   : > { %p3605_p11 = pnand %p3603_p3, %p3936_p12  ;;  %s3609_s14 = scalar_lea.vmem %s3608_s16, 4096 }
  0x7b   : > { %p3610_p1 = scmp.lt.s32.totalorder %s3963_s25, %s3608_s16  ;;  %p3611_p6 = scmp.lt.s32.totalorder %s3609_s14, %s3602_s30 }
  0x7c   : > { %p3606_p4 = pneg %p3605_p11 }
  0x7d   : > { %p3612_p13 = por %p3611_p6, %p3610_p1 }
  0x7f   : > { %p3613_p2 = pnand %p3612_p13, %p3606_p4 }
  0x81   : > { %3616 = shalt.err (!%p3613_p2)
}
  0x82   : > { %3194 = dma.hbm_to_vmem [thread:$0]  (!%p3921_p0), %s3961_s10, 2048, %s3963_s25, %s419_s15, %s4486_s13, %s4486_s13, %s4485_s11  }
  0x83   : > { %s3143_s18 = smul.u32 384, %s3739_s17  ;;  %s464_s22 = scalar_lea.vmem [#allocation12], %s3142_s26 }
  0x84   : > { %s472_s27 = sshll.u32 %s464_s22, 4  ;;  %s461_s6 = scalar_lea.sflag [#allocation13], %s3908_s24  ;;  %s473_s27 = int_to_ptr.vmem [resolvable:$true] %s472_s27 }
  0x85   : > { %s470_s20 = scalar_lea.hbm %s4444_s5, %s3143_s18  ;;  %s3630_s28 = scalar_lea.vmem %s473_s27, 384 }
  0x86   : > { %p3631_p10 = scmp.ne.s32.totalorder %s473_s27, %s3630_s28  ;;  %s3758_s30 = smov [#allocation12]  }
  0x87   : > { %s3635_s9 = sshll.u32 %s3758_s30, 4  ;;  %s3636_s9 = int_to_ptr.vmem [resolvable:$false] %s3635_s9 }
  0x88   : > { %p3633_p5 = pnand %p3631_p10, %p3936_p12  ;;  %s3637_s16 = scalar_lea.vmem %s3636_s9, 768 }
  0x89   : > { %p3638_p9 = scmp.lt.s32.totalorder %s473_s27, %s3636_s9  ;;  %p3639_p3 = scmp.lt.s32.totalorder %s3637_s16, %s3630_s28 }
  0x8a   : > { %p3634_p7 = pneg %p3633_p5 }
  0x8b   : > { %p3640_p11 = por %p3639_p3, %p3638_p9 }
  0x8d   : > { %p3641_p4 = pnand %p3640_p11, %p3634_p7 }
  0x8f   : > { %3644 = shalt.err (!%p3641_p4)
}
  0x90   : > { %3197 = dma.hbm_to_vmem [thread:$0]  (!%p3921_p0), %s470_s20, 384, %s473_s27, %s461_s6  }
  0x91   : > { %481 = sbr.rel (%p3872_p8) target bundleno = 4480 (0x1180), region = 60  ;;  %p4488_p1 = scmp.eq.s32.totalorder (!%p3872_p8), %s3852_s19, 0 }
  0x96   : > { %3694 = dma.done.wait (%p4488_p1), [#allocation4], 128   ;;  %p4489_p12 = pmov %p4488_p1 }
  0x97   : > { %s4490_s15 = sld [smem:[#allocation25_spill]]  ;;  %s487_s29 = sand.u32 1, %s3852_s19  }
  0x98   : > { %3696 = vsyncadd (%p4489_p12), [#allocation4], 4294967168  ;;  %s4491_s24 = sld [smem:[#allocation29_spill]]  ;;  %s488_s25 = scalar_lea.sflag [#allocation7], %s487_s29 }
  0x9d   : > { %s489_s21 = sand.u32 1, %s4490_s15  }
  0x9e   : > { %s3144_s10 = smul.u32 192, %s489_s21  ;;  %p4492_p6 = scmp.ne.s32.totalorder %s4491_s24, 0 }
  0xa0   : > { %s4035_s11 = scalar_lea.vmem [#allocation6], %s3144_s10 }
  0xa1   : > { %3698 = dma.done.wait (%p4492_p6), %s488_s25, 4096  }
  0xa2   : > { %3700 = vsyncadd (%p4492_p6), %s488_s25, 4294963200  ;;  %s2757_s7 = sshll.u32 %s489_s21, 6  ;;  %s2758_s23 = sshll.u32 %s489_s21, 7 }
  0xa3   : > { %s4041_s13 = scalar_lea.vmem [#allocation8], %s2757_s7  ;;  %s506_s26 = scalar_lea.sflag [#allocation10], %s487_s29 }
  0xa4   : > { %s4043_s14 = scalar_lea.vmem [#allocation9], %s2758_s23 }
  0xa5   : > { %3702 = dma.done.wait (%p4492_p6), %s506_s26, 4096  }
  0xa6   : > { %3704 = vsyncadd (%p4492_p6), %s506_s26, 4294963200  ;;  %s3145_s18 = smul.u32 24, %s489_s21  ;;  %s4049_s22 = scalar_lea.vmem [#allocation11], %s2758_s23 }
  0xa7   : > { %s524_s27 = scalar_lea.sflag [#allocation13], %s487_s29 }
  0xa8   : > { %s4051_s12 = scalar_lea.vmem [#allocation12], %s3145_s18 }
  0xa9   : > { %3706 = dma.done.wait (%p4492_p6), %s524_s27, 384  }
  0xaa   : > { %3708 = vsyncadd (%p4492_p6), %s524_s27, 4294966912  ;;  %p4493_p8 = pmov %p4488_p1 }
  0xab   : > { %p4494_p0 = pmov %p4488_p1 }
  0xac   : > { %3710 = dma.done.wait (%p4493_p8), [#allocation13], 1024  }
  0xad   : > { %3712 = vsyncadd (%p4494_p0), [#allocation13], 4294966272  ;;  %p4495_p13 = pmov %p4494_p0 }
  0xae   : > { %p4496_p2 = pmov %p4494_p0 }
  0xaf   : > { %3714 = dma.done.wait (%p4495_p13), [#allocation16], 1024  }
  0xb0   : > { %3716 = vsyncadd (%p4496_p2), [#allocation16], 4294966272  ;;  %s4497_s1 = sld [smem:[#allocation27_spill]] }
  0xb6   : > { %p2762_p10 = scmp.ne.s32.totalorder %s4497_s1, 0 }
  0xb8   : > { %592 = sbr.rel (%p2762_p10) target bundleno = 193 (0xc1), region = 96 }
  0xbd   : > { %v2871_v0 = vld [vmem:[#allocation3] sm:$0xff]  }
  0xbe   : > { %v2872_v1 = vunpack.c.l.bf16 %v2871_v0  ;;  %v2873_v2 = vunpack.c.h.bf16 %v2871_v0 }
  0xc0   : > { %597 = vst [vmem:[#allocation2] sm:$0xff] %v2872_v1  ;;  %598 = vst [vmem:[#allocation2 + $0x8] sm:$0xff] %v2873_v2 }
  0xc1 PF: > { %v3288_v5 = vld [vmem:[%s4035_s11 + $0xac] ss:$12 sps:$4 sm:$0xff]   ;;  %v3290_v6 = vld [vmem:[%s4035_s11 + $0xa8] ss:$12 sps:$4 sm:$0xff]   ;;  %v3759_v7 = vmov 0.0   ;;  %v3760_v30 = vmov 0   ;;  %v627_v45 = vlaneseq }
  0xc2   : > { %2964 = vmatprep.subr.bf16.mxu1 %v3759_v7  ;;  %v3291_v8 = vld [vmem:[%s4035_s11 + $0xb0] ss:$12 sps:$4 sm:$0xff]   ;;  %812 = vmatprep.subr.bf16.mxu0 %v3288_v5  ;;  %v3292_v17 = vld [vmem:[%s4035_s11 + $0x94] ss:$12 sps:$4 sm:$0xff]   ;;  %v3295_v19 = vld [vmem:[%s4035_s11 + $0x98] ss:$12 sps:$4 sm:$0xff]  }
  0xc3   : > { %813 = vmatpush1.bf16.msra.mxu0 %v3290_v6  ;;  %2965 = vmatpush3.bf16.msra.mxu1 %v3291_v8  ;;  %v3294_v18 = vld [vmem:[%s4035_s11 + $0x90] ss:$12 sps:$4 sm:$0xff]   ;;  %v3298_v21 = vld [vmem:[%s4035_s11 + $0x78] ss:$12 sps:$4 sm:$0xff]   ;;  %v3299_v22 = vld [vmem:[%s4035_s11 + $0x80] ss:$12 sps:$4 sm:$0xff]  }
  0xc4   : > { %2966 = vmatprep.subr.bf16.mxu1 %v3759_v7  ;;  %814 = vmatprep.subr.bf16.mxu0 %v3292_v17  ;;  %v3296_v20 = vld [vmem:[%s4035_s11 + $0x7c] ss:$12 sps:$4 sm:$0xff]   ;;  %v3300_v23 = vld [vmem:[%s4035_s11 + $0x64] ss:$12 sps:$4 sm:$0xff]   ;;  %v3302_v24 = vld [vmem:[%s4035_s11 + $0x60] ss:$12 sps:$4 sm:$0xff]  }
  0xc5   : > { %v3303_v25 = vld [vmem:[%s4035_s11 + $0x68] ss:$12 sps:$4 sm:$0xff]   ;;  %v3304_v26 = vld [vmem:[%s4035_s11 + $0x4c] ss:$12 sps:$4 sm:$0xff]   ;;  %v3307_v28 = vld [vmem:[%s4035_s11 + $0x50] ss:$12 sps:$4 sm:$0xff]   ;;  %844 = vmatprep.mubr.bf16.mxu0 %v3760_v30 }
  0xc6   : > { %v3306_v27 = vld [vmem:[%s4035_s11 + $0x48] ss:$12 sps:$4 sm:$0xff]   ;;  %vm3761_vm0 = vmmov 0   ;;  %v3310_v31 = vld [vmem:[%s4035_s11 + $0x30] ss:$12 sps:$4 sm:$0xff]   ;;  %v4111_v46 = vshrl.u32 %v627_v45, 7 }
  0xc7   : > { %v602_v3 = vld [vmem:[#allocation2] sm:$0xff]  ;;  %v603_v4 = vld [vmem:[#allocation2 + $0x8] sm:$0xff]  ;;  %815 = vmatpush1.bf16.msra.mxu0 %v3294_v18  ;;  %2967 = vmatpush3.bf16.msra.mxu1 %v3295_v19  ;;  %v3311_v32 = vld [vmem:[%s4035_s11 + $0x38] ss:$12 sps:$4 sm:$0xff]   ;;  %vm904_vm1 = vcmask 261120   ;;  %vm1025_vm2 = vcmask 1043456  }
  0xc8   : > { %604 = vadd.xlane.f32.xlu0 %v602_v3  ;;  %2968 = vmatprep.subr.bf16.mxu1 %v3759_v7  ;;  %v3308_v29 = vld [vmem:[%s4035_s11 + $0x34] ss:$12 sps:$4 sm:$0xff]   ;;  %v3312_v33 = vld [vmem:[%s4035_s11 + $0x1c] ss:$12 sps:$4 sm:$0xff]   ;;  %v3314_v34 = vld [vmem:[%s4035_s11 + $0x18] ss:$12 sps:$4 sm:$0xff]  }
  0xc9   : > { %816 = vmatprep.subr.bf16.mxu0 %v3296_v20  ;;  %2980 = vmatprep.mubr.msk.bf16.mxu1 %vm3761_vm0, %v3759_v7  ;;  %v3315_v35 = vld [vmem:[%s4035_s11 + $0x20] ss:$12 sps:$4 sm:$0xff]   ;;  %v3316_v36 = vld [vmem:[%s4035_s11 + $0x4] ss:$12 sps:$4 sm:$0xff]   ;;  %v3319_v38 = vld [vmem:[%s4035_s11 + $0x8] ss:$12 sps:$4 sm:$0xff]  }
  0xca   : > { %v3318_v37 = vld [vmem:[%s4035_s11] ss:$12 sps:$4 sm:$0xff]   ;;  %v629_v47 = vsub.s32 2, %v4111_v46  ;;  %v635_v52 = vsub.s32 3, %v4111_v46  ;;  %v674_v62 = vsub.s32 0, %v4111_v46  ;;  %vm997_vm3 = vcmask 64512  }
  0xcb   : > { %817 = vmatpush1.bf16.msra.mxu0 %v3298_v21  ;;  %2969 = vmatpush3.bf16.msra.mxu1 %v3299_v22  ;;  %v4115_v48 = vld [vmem:[%s4051_s12] sm:$0xff]  ;;  %v4127_v61 = vld [vmem:[%s4051_s12 + $0x8] sm:$0xff]  ;;  %v601_v1 = vld [vmem:[%s4051_s12 + $0x10] sm:$0xff]  ;;  %s3762_s20 = smov 96   ;;  %s3763_s6 = smov 64   ;;  %vm1807_vm4 = vcmask 523264  }
  0xcc   : > { %606 = vadd.xlane.f32.xlu0 %v603_v4  ;;  %2970 = vmatprep.subr.bf16.mxu1 %v3759_v7  ;;  %v630_v51 = vrot.slane %v4115_v48, %v629_v47  ;;  %v636_v56 = vrot.slane %v4115_v48, %v635_v52  ;;  %v679_v63 = vrot.slane %v4127_v61, %v674_v62  ;;  %s3764_s28 = smov 32   ;;  %vm1810_vm5 = vcmask 785408   ;;  %s4498_s30 = sld [smem:[#allocation27_spill]] }
  0xcd   : > { %818 = vmatprep.subr.bf16.mxu0 %v3300_v23  ;;  %v683_v6 = vrot.slane %v601_v1, %v674_v62 }
  0xcf   : > { %819 = vmatpush1.bf16.msra.mxu0 %v3302_v24  ;;  %2971 = vmatpush3.bf16.msra.mxu1 %v3303_v25 }
  0xd0   : > { %820 = vmatprep.subr.bf16.mxu0 %v3304_v26  ;;  %2972 = vmatprep.subr.bf16.mxu1 %v3759_v7 }
  0xd2   : > { %p2843_p5 = scmp.ge.s32.totalorder %s4498_s30, 1 }
  0xd3   : > { %821 = vmatpush1.bf16.msra.mxu0 %v3306_v27  ;;  %2973 = vmatpush3.bf16.msra.mxu1 %v3307_v28 }
  0xd4   : > { %822 = vmatprep.subr.bf16.mxu0 %v3308_v29  ;;  %2974 = vmatprep.subr.bf16.mxu1 %v3759_v7 }
  0xd7   : > { %823 = vmatpush1.bf16.msra.mxu0 %v3310_v31  ;;  %2975 = vmatpush3.bf16.msra.mxu1 %v3311_v32 }
  0xd8   : > { %824 = vmatprep.subr.bf16.mxu0 %v3312_v33  ;;  %2976 = vmatprep.subr.bf16.mxu1 %v3759_v7 }
  0xdb   : > { %825 = vmatpush1.bf16.msra.mxu0 %v3314_v34  ;;  %2977 = vmatpush3.bf16.msra.mxu1 %v3315_v35 }
  0xdc   : > { %826 = vmatprep.subr.bf16.mxu0 %v3316_v36  ;;  %2978 = vmatprep.subr.bf16.mxu1 %v3759_v7 }
  0xdf   : > { %827 = vmatpush1.bf16.msra.mxu0 %v3318_v37  ;;  %2979 = vmatpush3.bf16.msra.mxu1 %v3319_v38 }
  0xe0   : > { %2984 = vmatprep.subr.bf16.mxu1 %v3759_v7  ;;  %3008 = vmatprep.subr.bf16.mxu0 %v3759_v7 }
 0x151   : > { %v605_v9 = vpop.xlane.xlu0 %604 }
 0x152   : > { %v609_v10 = vmul.f32 0.0078125, %v605_v9 }
 0x154   : > { %v4071_v11 = vsub.f32 %v602_v3, %v609_v10  ;;  %v675_v3 = vrot.slane %v4115_v48, %v674_v62 }
 0x155   : > { %v607_v12 = vpop.xlane.xlu0 %606 }
 0x156   : > { %v610_v13 = vmul.f32 0.0078125, %v607_v12  ;;  %v613_v14 = vmul.f32 %v4071_v11, %v4071_v11 }
 0x158   : > { %v4075_v15 = vsub.f32 %v603_v4, %v610_v13  ;;  %615 = vadd.xlane.f32.xlu1 %v613_v14 }
 0x15a   : > { %v614_v16 = vmul.f32 %v4075_v15, %v4075_v15 }
 0x15c   : > { %617 = vadd.xlane.f32.xlu1 %v614_v16 }
 0x1e1   : > { %v616_v39 = vpop.xlane.xlu1 %615 }
 0x1e2   : > { %v619_v40 = vmul.f32 0.0078125, %v616_v39 }
 0x1e4   : > { %v621_v41 = vadd.f32 1e-05, %v619_v40 }
 0x1e5   : > { %v618_v42 = vpop.xlane.xlu1 %617 }
 0x1e6   : > { %3368 = vrsqrt.f32 %v621_v41  ;;  %v620_v43 = vmul.f32 0.0078125, %v618_v42 }
 0x1e8   : > { %v622_v44 = vadd.f32 1e-05, %v620_v43 }
 0x1ea   : > { %3370 = vrsqrt.f32 %v622_v44 }
 0x1f3   : > { %v3369_v49 = vpop.eup %3368 }
 0x1f4   : > { %v625_v50 = vmul.f32 %v3369_v49, %v4071_v11 }
 0x1f6   : > { %v631_v55 = vmul.f32 %v630_v51, %v625_v50 }
 0x1f7   : > { %v3371_v53 = vpop.eup %3370 }
 0x1f8   : > { %v626_v54 = vmul.f32 %v3371_v53, %v4075_v15  ;;  %v637_v58 = vadd.f32 %v636_v56, %v631_v55 }
 0x1fa   : > { %v632_v57 = vmul.f32 %v630_v51, %v626_v54 }
 0x1fc   : > { %v638_v59 = vadd.f32 %v636_v56, %v632_v57 }
 0x1fe   : > { %v639_v60 = vpack.c.bf16 %v638_v59, %v637_v58 }
 0x200   : > { %845 = vmatmul.mubr.bf16.vlgmr.msra.gmra.mxu0 %v639_v60  ;;  %2981 = vmatmul.mubr.bf16.vlgmr.msra.gmra.mxu1 %v639_v60 }
 0x201   : > { %2986 = vmatprep.mubr.msk.bf16.mxu1 %vm3761_vm0, %v3759_v7  ;;  %3010 = vmatprep.mubr.msk.bf16.mxu0 %vm3761_vm0, %v3759_v7 }
 0x2c0   : > { %v846_v0 = vpop.f32.mrf.mxu0  ;;  %v889_v2 = vpop.f32.mrf.mxu1 }
 0x2c1   : > { %v847_v11 = vadd.f32 %v846_v0, %v675_v3  ;;  %v890_v22 = vadd.f32 %v889_v2, %v683_v6 }
 0x2c2   : > { %v848_v4 = vpop.f32.mrf.mxu0  ;;  %v2982_v5 = vpop.f32.mrf.mxu1 }
 0x2c3   : > { %v849_v8 = vadd.f32 %v848_v4, %v679_v63  ;;  %v896_v18 = vmul.f32 0.17677669, %v847_v11  ;;  %v4151_v25 = vpack.c.bf16 %v890_v22, %v890_v22 }
 0x2c4   : > { %v850_v9 = vpop.f32.mrf.mxu0  ;;  %v892_v10 = vpop.f32.mrf.mxu1 }
 0x2c5   : > { %v4133_v12 = vpack.c.bf16 %v849_v8, %v849_v8  ;;  %v4135_v13 = vadd.f32 %v892_v10, %v683_v6  ;;  %v4142_v20 = vpack.c.bf16 %v896_v18, %v896_v18  ;;  %v851_v21 = vadd.f32 %v850_v9, %v675_v3 }
 0x2c6   : > { %v852_v14 = vpop.f32.mrf.mxu0  ;;  %v2983_v15 = vpop.f32.mrf.mxu1  ;;  %v1027_v27 = vsel %vm1025_vm2, %v4151_v25, 0 }
 0x2c7   : > { %v853_v16 = vadd.f32 %v852_v14, %v679_v63  ;;  %v909_v17 = vsel %vm904_vm1, %v4133_v12, 0  ;;  %v897_v24 = vmul.f32 0.17677669, %v851_v21  ;;  %v4181_v58 = vpack.c.bf16 %v4135_v13, %v4135_v13 }
 0x2c8   : > { %2985 = vmatpush3.bf16.xpose.msra.mxu1 %v909_v17 }
 0x2c9   : > { %2990 = vmatprep.subr.bf16.mxu1 %v3759_v7  ;;  %v4140_v19 = vpack.c.bf16 %v853_v16, %v853_v16  ;;  %v4153_v26 = vpack.c.bf16 %v897_v24, %v897_v24  ;;  %v1073_v62 = vsel %vm1025_vm2, %v4181_v58, 0 }
 0x2cb   : > { %v955_v23 = vsel %vm904_vm1, %v4140_v19, 0 }
 0x2cf   : > { %2987 = vmatmul.mubr.msk.bf16.vlgmr.msra.gmra.mxu1 %vm904_vm1, %v4142_v20 }
 0x2d0   : > { %2991 = vmatpush3.bf16.xpose.msra.mxu1 %v955_v23  ;;  %2992 = vmatprep.mubr.msk.bf16.mxu1 %vm3761_vm0, %v3759_v7 }
 0x2d1   : > { %2996 = vmatprep.subr.bf16.mxu1 %v3759_v7 }
 0x2d7   : > { %2993 = vmatmul.mubr.msk.bf16.vlgmr.msra.gmra.mxu1 %vm904_vm1, %v4153_v26 }
 0x2d8   : > { %2997 = vmatpush3.bf16.msra.mxu1 %v1027_v27  ;;  %2998 = vmatprep.mubr.msk.bf16.mxu1 %vm3761_vm0, %v3759_v7 }
 0x2d9   : > { %3002 = vmatprep.subr.bf16.mxu1 %v3759_v7 }
 0x38f   : > { %v945_v28 = vpop.f32.mrf.mxu1 }
 0x390   : > { %v998_v29 = vsel %vm997_vm3, %v945_v28, -inf }
 0x391   : > { %999 = vmax.xlane.f32.xlu0 %v998_v29  ;;  %v2988_v31 = vpop.f32.mrf.mxu1 }
 0x393   : > { %v948_v32 = vpop.f32.mrf.mxu1 }
 0x395   : > { %v2989_v33 = vpop.f32.mrf.mxu1 }
 0x397   : > { %v991_v34 = vpop.f32.mrf.mxu1 }
 0x398   : > { %v1001_v35 = vsel %vm997_vm3, %v991_v34, -inf }
 0x399   : > { %1002 = vmax.xlane.f32.xlu1 %v1001_v35  ;;  %v2994_v36 = vpop.f32.mrf.mxu1 }
 0x39b   : > { %v994_v37 = vpop.f32.mrf.mxu1 }
 0x39d   : > { %v2995_v38 = vpop.f32.mrf.mxu1 }
 0x3aa   : > { %1171 = vrot.lane.b32.xlu1 %v4140_v19, %s3762_s20 }
 0x41a   : > { %v1000_v39 = vpop.xlane.xlu0 %999 }
 0x41b   : > { %v1004_v40 = vsub.f32 %v945_v28, %v1000_v39 }
 0x41d   : > { %v1006_v41 = vmul.f32 1.442695, %v1004_v40 }
 0x41f   : > { %3372 = vpow2.f32 %v1006_v41 }
 0x422   : > { %v1003_v42 = vpop.xlane.xlu1 %1002 }
 0x423   : > { %v1005_v43 = vsub.f32 %v991_v34, %v1003_v42 }
 0x425   : > { %v1008_v44 = vmul.f32 1.442695, %v1005_v43 }
 0x426   : > { %v1172_v52 = vpop.permute.xlu1 %1171 }
 0x427   : > { %3374 = vpow2.f32 %v1008_v44  ;;  %v1177_v2 = vsel %vm904_vm1, %v1172_v52, 0 }
 0x42c   : > { %v3373_v45 = vpop.eup %3372 }
 0x42d   : > { %v1010_v47 = vsel %vm997_vm3, %v3373_v45, 0.0 }
 0x42e   : > { %1011 = vadd.xlane.f32.xlu0 %v1010_v47 }
 0x434   : > { %v3375_v49 = vpop.eup %3374 }
 0x435   : > { %v1013_v50 = vsel %vm997_vm3, %v3375_v49, 0.0 }
 0x436   : > { %1014 = vadd.xlane.f32.xlu1 %v1013_v50 }
 0x444   : > { %1119 = vrot.lane.b32.xlu0 %v4133_v12, %s3762_s20 }
 0x447   : > { %1116 = vrot.lane.b32.xlu1 %v4142_v20, %s3762_s20 }
 0x44b   : > { %1168 = vrot.lane.b32.xlu1 %v4153_v26, %s3762_s20 }
 0x4b7   : > { %v1012_v51 = vpop.xlane.xlu0 %1011 }
 0x4b8   : > { %3376 = vrcp.f32 %v1012_v51 }
 0x4bb   : > { %v1120_v53 = vpop.permute.xlu0 %1119 }
 0x4bc   : > { %v1125_v54 = vsel %vm904_vm1, %v1120_v53, 0 }
 0x4bd   : > { %3009 = vmatpush3.bf16.xpose.msra.mxu0 %v1125_v54 }
 0x4be   : > { %3020 = vmatprep.subr.bf16.mxu0 %v3759_v7 }
 0x4bf   : > { %v1015_v55 = vpop.xlane.xlu1 %1014 }
 0x4c0   : > { %3378 = vrcp.f32 %v1015_v55 }
 0x4c3   : > { %v1117_v56 = vpop.permute.xlu1 %1116 }
 0x4c4   : > { %3011 = vmatmul.mubr.msk.bf16.vlgmr.msra.gmra.mxu0 %vm904_vm1, %v1117_v56 }
 0x4c5   : > { %v3377_v57 = vpop.eup %3376  ;;  %3022 = vmatprep.mubr.msk.bf16.mxu0 %vm3761_vm0, %v3759_v7 }
 0x4c6   : > { %v1018_v59 = vmul.f32 %v3377_v57, %v3373_v45 }
 0x4c7   : > { %v1169_v3 = vpop.permute.xlu1 %1168 }
 0x4c8   : > { %v1020_v60 = vpack.c.bf16 %v1018_v59, %v1018_v59 }
 0x4ca   : > { %2999 = vmatmul.mubr.msk.bf16.vlgmr.msra.gmra.mxu1 %vm997_vm3, %v1020_v60 }
 0x4cb   : > { %3003 = vmatpush3.bf16.msra.mxu1 %v1073_v62  ;;  %3004 = vmatprep.mubr.msk.bf16.mxu1 %vm3761_vm0, %v3759_v7 }
 0x4cc   : > { %3014 = vmatprep.subr.bf16.mxu1 %v3759_v7 }
 0x4cd   : > { %v3379_v63 = vpop.eup %3378 }
 0x4ce   : > { %v1019_v0 = vmul.f32 %v3379_v63, %v3375_v49 }
 0x4d0   : > { %v1021_v1 = vpack.c.bf16 %v1019_v0, %v1019_v0 }
 0x4d2   : > { %3005 = vmatmul.mubr.msk.bf16.vlgmr.msra.gmra.mxu1 %vm997_vm3, %v1021_v1 }
 0x4d3   : > { %3015 = vmatpush3.bf16.xpose.msra.mxu1 %v1177_v2  ;;  %3016 = vmatprep.mubr.msk.bf16.mxu1 %vm3761_vm0, %v3759_v7 }
 0x4d4   : > { %3026 = vmatprep.subr.bf16.mxu1 %v3759_v7 }
 0x4da   : > { %3017 = vmatmul.mubr.msk.bf16.vlgmr.msra.gmra.mxu1 %vm904_vm1, %v1169_v3 }
 0x4db   : > { %3028 = vmatprep.mubr.msk.bf16.mxu1 %vm3761_vm0, %v3759_v7 }
 0x584   : > { %v1161_v4 = vpop.f32.mrf.mxu0 }
 0x585   : > { %v1219_v5 = vsel %vm997_vm3, %v1161_v4, -inf }
 0x586   : > { %1220 = vmax.xlane.f32.xlu0 %v1219_v5  ;;  %v3012_v6 = vpop.f32.mrf.mxu0 }
 0x588   : > { %v1164_v8 = vpop.f32.mrf.mxu0 }
 0x58a   : > { %v4198_v9 = vpop.f32.mrf.mxu1  ;;  %v3013_v10 = vpop.f32.mrf.mxu0 }
 0x58c   : > { %v3000_v11 = vpop.f32.mrf.mxu1 }
 0x58e   : > { %v1066_v13 = vpop.f32.mrf.mxu1 }
 0x590   : > { %v3001_v14 = vpop.f32.mrf.mxu1 }
 0x592   : > { %v4200_v15 = vpop.f32.mrf.mxu1 }
 0x594   : > { %v3006_v16 = vpop.f32.mrf.mxu1 }
 0x596   : > { %v1112_v17 = vpop.f32.mrf.mxu1 }
 0x598   : > { %v3007_v18 = vpop.f32.mrf.mxu1 }
 0x59a   : > { %v1213_v21 = vpop.f32.mrf.mxu1 }
 0x59b   : > { %v1222_v22 = vsel %vm997_vm3, %v1213_v21, -inf }
 0x59c   : > { %1223 = vmax.xlane.f32.xlu1 %v1222_v22  ;;  %v3018_v23 = vpop.f32.mrf.mxu1 }
 0x59e   : > { %v1216_v24 = vpop.f32.mrf.mxu1 }
 0x5a0   : > { %v3019_v27 = vpop.f32.mrf.mxu1 }
 0x5ad   : > { %1293 = vrot.lane.b32.xlu1 %v4181_v58, %s3762_s20 }
 0x5b1   : > { %1343 = vrot.lane.b32.xlu1 %v4133_v12, %s3763_s6 }
 0x5b5   : > { %1393 = vrot.lane.b32.xlu1 %v4140_v19, %s3763_s6 }
 0x5b9   : > { %1391 = vrot.lane.b32.xlu1 %v4153_v26, %s3763_s6 }
 0x60f   : > { %v1221_v28 = vpop.xlane.xlu0 %1220 }
 0x610   : > { %v1225_v29 = vsub.f32 %v1161_v4, %v1221_v28 }
 0x612   : > { %v1227_v31 = vmul.f32 1.442695, %v1225_v29 }
 0x614   : > { %3380 = vpow2.f32 %v1227_v31 }
 0x621   : > { %v3381_v32 = vpop.eup %3380 }
 0x622   : > { %v1231_v33 = vsel %vm997_vm3, %v3381_v32, 0.0 }
 0x623   : > { %1232 = vadd.xlane.f32.xlu0 %v1231_v33 }
 0x625   : > { %v1224_v34 = vpop.xlane.xlu1 %1223 }
 0x626   : > { %v1226_v35 = vsub.f32 %v1213_v21, %v1224_v34 }
 0x628   : > { %v1229_v36 = vmul.f32 1.442695, %v1226_v35 }
 0x629   : > { %v1294_v37 = vpop.permute.xlu1 %1293 }
 0x62a   : > { %3382 = vpow2.f32 %v1229_v36  ;;  %v1299_v38 = vsel %vm1025_vm2, %v1294_v37, 0 }
 0x62b   : > { %3027 = vmatpush3.bf16.msra.mxu1 %v1299_v38 }
 0x62c   : > { %3038 = vmatprep.subr.bf16.mxu1 %v3759_v7 }
 0x62d   : > { %v1344_v49 = vpop.permute.xlu1 %1343 }
 0x62e   : > { %v1349_v51 = vsel %vm904_vm1, %v1344_v49, 0 }
 0x631   : > { %v1394_v54 = vpop.permute.xlu1 %1393 }
 0x632   : > { %v1399_v57 = vsel %vm904_vm1, %v1394_v54, 0 }
 0x635   : > { %v1392_v59 = vpop.permute.xlu1 %1391 }
 0x637   : > { %v3383_v39 = vpop.eup %3382 }
 0x638   : > { %v1234_v40 = vsel %vm997_vm3, %v3383_v39, 0.0 }
 0x639   : > { %1235 = vadd.xlane.f32.xlu0 %v1234_v40 }
 0x64f   : > { %1244 = vrot.lane.b32.xlu0 %v4151_v25, %s3762_s20 }
 0x653   : > { %1341 = vrot.lane.b32.xlu0 %v4142_v20, %s3763_s6 }
 0x6ac   : > { %v1233_v41 = vpop.xlane.xlu0 %1232 }
 0x6ad   : > { %3384 = vrcp.f32 %v1233_v41 }
 0x6ba   : > { %v3385_v42 = vpop.eup %3384 }
 0x6bb   : > { %v1239_v44 = vmul.f32 %v3385_v42, %v3381_v32 }
 0x6bd   : > { %v1241_v50 = vpack.c.bf16 %v1239_v44, %v1239_v44 }
 0x6c2   : > { %v1236_v43 = vpop.xlane.xlu0 %1235 }
 0x6c3   : > { %3386 = vrcp.f32 %v1236_v43 }
 0x6c6   : > { %v1245_v45 = vpop.permute.xlu0 %1244 }
 0x6c7   : > { %v1250_v47 = vsel %vm1025_vm2, %v1245_v45, 0 }
 0x6c8   : > { %3021 = vmatpush3.bf16.msra.mxu0 %v1250_v47 }
 0x6c9   : > { %3032 = vmatprep.subr.bf16.mxu0 %v3759_v7 }
 0x6ca   : > { %v1342_v55 = vpop.permute.xlu0 %1341 }
 0x6cb   : > { %3023 = vmatmul.mubr.msk.bf16.vlgmr.msra.gmra.mxu0 %vm997_vm3, %v1241_v50 }
 0x6cc   : > { %3033 = vmatpush3.bf16.xpose.msra.mxu0 %v1349_v51  ;;  %3034 = vmatprep.mubr.msk.bf16.mxu0 %vm3761_vm0, %v3759_v7 }
 0x6cd   : > { %3044 = vmatprep.subr.bf16.mxu0 %v3759_v7 }
 0x6d0   : > { %v3387_v52 = vpop.eup %3386 }
 0x6d1   : > { %v1240_v53 = vmul.f32 %v3387_v52, %v3383_v39 }
 0x6d3   : > { %3035 = vmatmul.mubr.msk.bf16.vlgmr.msra.gmra.mxu0 %vm904_vm1, %v1342_v55  ;;  %v1242_v56 = vpack.c.bf16 %v1240_v53, %v1240_v53 }
 0x6d4   : > { %3046 = vmatprep.mubr.msk.bf16.mxu0 %vm3761_vm0, %v3759_v7 }
 0x6d5   : > { %3029 = vmatmul.mubr.msk.bf16.vlgmr.msra.gmra.mxu1 %vm997_vm3, %v1242_v56 }
 0x6d6   : > { %3039 = vmatpush3.bf16.xpose.msra.mxu1 %v1399_v57  ;;  %3040 = vmatprep.mubr.msk.bf16.mxu1 %vm3761_vm0, %v3759_v7 }
 0x6d7   : > { %3050 = vmatprep.subr.bf16.mxu1 %v3759_v7 }
 0x6dd   : > { %3041 = vmatmul.mubr.msk.bf16.vlgmr.msra.gmra.mxu1 %vm904_vm1, %v1392_v59 }
 0x6de   : > { %3052 = vmatprep.mubr.msk.bf16.mxu1 %vm3761_vm0, %v3759_v7 }
 0x78b   : > { %v4237_v60 = vpop.f32.mrf.mxu0 }
 0x78d   : > { %v3024_v62 = vpop.f32.mrf.mxu0 }
 0x78f   : > { %v1289_v63 = vpop.f32.mrf.mxu0 }
 0x791   : > { %v3025_v0 = vpop.f32.mrf.mxu0 }
 0x793   : > { %v1385_v1 = vpop.f32.mrf.mxu0 }
 0x794   : > { %v1441_v2 = vsel %vm997_vm3, %v1385_v1, -inf }
 0x795   : > { %1442 = vmax.xlane.f32.xlu0 %v1441_v2  ;;  %v4240_v3 = vpop.f32.mrf.mxu1  ;;  %v3036_v4 = vpop.f32.mrf.mxu0 }
 0x796   : > { %v3273_v5 = vpack.i.bf16 %v4240_v3, %v4237_v60 }
 0x797   : > { %v3030_v6 = vpop.f32.mrf.mxu1  ;;  %v1388_v8 = vpop.f32.mrf.mxu0 }
 0x799   : > { %v1338_v10 = vpop.f32.mrf.mxu1  ;;  %v3037_v11 = vpop.f32.mrf.mxu0 }
 0x79b   : > { %v3031_v13 = vpop.f32.mrf.mxu1 }
 0x79d   : > { %v1435_v14 = vpop.f32.mrf.mxu1 }
 0x79e   : > { %v1444_v16 = vsel %vm997_vm3, %v1435_v14, -inf }
 0x79f   : > { %1445 = vmax.xlane.f32.xlu1 %v1444_v16  ;;  %v3042_v17 = vpop.f32.mrf.mxu1 }
 0x7a1   : > { %v1438_v18 = vpop.f32.mrf.mxu1 }
 0x7a3   : > { %v3043_v21 = vpop.f32.mrf.mxu1 }
 0x7b0   : > { %1513 = vrot.lane.b32.xlu1 %v4181_v58, %s3763_s6 }
 0x7b4   : > { %1563 = vrot.lane.b32.xlu1 %v4133_v12, %s3764_s28 }
 0x7b8   : > { %1613 = vrot.lane.b32.xlu1 %v4140_v19, %s3764_s28 }
 0x7bc   : > { %1611 = vrot.lane.b32.xlu1 %v4153_v26, %s3764_s28 }
 0x81e   : > { %v1443_v22 = vpop.xlane.xlu0 %1442 }
 0x81f   : > { %v1447_v23 = vsub.f32 %v1385_v1, %v1443_v22 }
 0x821   : > { %v1449_v24 = vmul.f32 1.442695, %v1447_v23 }
 0x823   : > { %3388 = vpow2.f32 %v1449_v24 }
 0x828   : > { %v1446_v27 = vpop.xlane.xlu1 %1445 }
 0x829   : > { %v1448_v28 = vsub.f32 %v1435_v14, %v1446_v27 }
 0x82b   : > { %v1451_v29 = vmul.f32 1.442695, %v1448_v28 }
 0x82c   : > { %v1514_v31 = vpop.permute.xlu1 %1513 }
 0x82d   : > { %3390 = vpow2.f32 %v1451_v29  ;;  %v1519_v32 = vsel %vm1025_vm2, %v1514_v31, 0 }
 0x82e   : > { %3051 = vmatpush3.bf16.msra.mxu1 %v1519_v32 }
 0x82f   : > { %3062 = vmatprep.subr.bf16.mxu1 %v3759_v7 }
 0x830   : > { %v3389_v12 = vpop.eup %3388  ;;  %v1564_v40 = vpop.permute.xlu1 %1563 }
 0x831   : > { %v1453_v19 = vsel %vm997_vm3, %v3389_v12, 0.0  ;;  %v1569_v42 = vsel %vm904_vm1, %v1564_v40, 0 }
 0x832   : > { %1454 = vadd.xlane.f32.xlu0 %v1453_v19 }
 0x834   : > { %v1614_v44 = vpop.permute.xlu1 %1613 }
 0x835   : > { %v1619_v49 = vsel %vm904_vm1, %v1614_v44, 0 }
 0x838   : > { %v1612_v50 = vpop.permute.xlu1 %1611 }
 0x83a   : > { %v3391_v33 = vpop.eup %3390 }
 0x83b   : > { %v1456_v26 = vsel %vm997_vm3, %v3391_v33, 0.0 }
 0x83c   : > { %1457 = vadd.xlane.f32.xlu0 %v1456_v26 }
 0x852   : > { %1465 = vrot.lane.b32.xlu0 %v4151_v25, %s3763_s6 }
 0x856   : > { %1561 = vrot.lane.b32.xlu0 %v4142_v20, %s3764_s28 }
 0x8bb   : > { %v1455_v34 = vpop.xlane.xlu0 %1454 }
 0x8bc   : > { %3392 = vrcp.f32 %v1455_v34  ;;  %v3320_v34 = vld [vmem:[%s4041_s13 + $0x38] sm:$0xff]  }
 0x8c5   : > { %v1458_v35 = vpop.xlane.xlu0 %1457 }
 0x8c6   : > { %3394 = vrcp.f32 %v1458_v35  ;;  %v3321_v35 = vld [vmem:[%s4041_s13 + $0x30] sm:$0xff]  }
 0x8c9   : > { %v3393_v36 = vpop.eup %3392  ;;  %v1466_v37 = vpop.permute.xlu0 %1465 }
 0x8ca   : > { %v1471_v38 = vsel %vm1025_vm2, %v1466_v37, 0  ;;  %v1461_v39 = vmul.f32 %v3393_v36, %v3389_v12  ;;  %v3322_v36 = vld [vmem:[%s4041_s13 + $0x28] sm:$0xff]   ;;  %v3323_v37 = vld [vmem:[%s4041_s13 + $0x20] sm:$0xff]  }
 0x8cb   : > { %3045 = vmatpush3.bf16.msra.mxu0 %v1471_v38  ;;  %v3324_v38 = vld [vmem:[%s4041_s13 + $0x18] sm:$0xff]  }
 0x8cc   : > { %v1463_v41 = vpack.c.bf16 %v1461_v39, %v1461_v39  ;;  %3056 = vmatprep.subr.bf16.mxu0 %v3759_v7  ;;  %v3326_v39 = vld [vmem:[%s4041_s13 + $0x8] sm:$0xff]  }
 0x8cd   : > { %v1562_v45 = vpop.permute.xlu0 %1561 }
 0x8ce   : > { %3047 = vmatmul.mubr.msk.bf16.vlgmr.msra.gmra.mxu0 %vm997_vm3, %v1463_v41  ;;  %v3327_v41 = vld [vmem:[%s4041_s13] sm:$0xff]  }
 0x8cf   : > { %3057 = vmatpush3.bf16.xpose.msra.mxu0 %v1569_v42  ;;  %3058 = vmatprep.mubr.msk.bf16.mxu0 %vm3761_vm0, %v3759_v7 }
 0x8d0   : > { %3068 = vmatprep.subr.bf16.mxu0 %v3759_v7 }
 0x8d3   : > { %v3395_v20 = vpop.eup %3394 }
 0x8d4   : > { %v1462_v43 = vmul.f32 %v3395_v20, %v3391_v33 }
 0x8d6   : > { %3059 = vmatmul.mubr.msk.bf16.vlgmr.msra.gmra.mxu0 %vm904_vm1, %v1562_v45  ;;  %v1464_v47 = vpack.c.bf16 %v1462_v43, %v1462_v43 }
 0x8d7   : > { %3070 = vmatprep.mubr.msk.bf16.mxu0 %vm3761_vm0, %v3759_v7 }
 0x8d8   : > { %3053 = vmatmul.mubr.msk.bf16.vlgmr.msra.gmra.mxu1 %vm997_vm3, %v1464_v47 }
 0x8d9   : > { %3063 = vmatpush3.bf16.xpose.msra.mxu1 %v1619_v49  ;;  %3064 = vmatprep.mubr.msk.bf16.mxu1 %vm3761_vm0, %v3759_v7 }
 0x8da   : > { %3074 = vmatprep.subr.bf16.mxu1 %v3759_v7 }
 0x8e0   : > { %3065 = vmatmul.mubr.msk.bf16.vlgmr.msra.gmra.mxu1 %vm904_vm1, %v1612_v50 }
 0x8e1   : > { %3076 = vmatprep.mubr.msk.bf16.mxu1 %vm3761_vm0, %v3759_v7 }
 0x98e   : > { %v1507_v51 = vpop.f32.mrf.mxu0 }
 0x990   : > { %v3048_v52 = vpop.f32.mrf.mxu0 }
 0x992   : > { %v1510_v53 = vpop.f32.mrf.mxu0 }
 0x994   : > { %v3049_v54 = vpop.f32.mrf.mxu0 }
 0x996   : > { %v1605_v55 = vpop.f32.mrf.mxu0 }
 0x997   : > { %v1661_v56 = vsel %vm997_vm3, %v1605_v55, -inf }
 0x998   : > { %1662 = vmax.xlane.f32.xlu0 %v1661_v56  ;;  %v1555_v57 = vpop.f32.mrf.mxu1  ;;  %v3060_v59 = vpop.f32.mrf.mxu0 }
 0x999   : > { %v3278_v13 = vpack.i.bf16 %v1555_v57, %v1507_v51 }
 0x99a   : > { %v3054_v62 = vpop.f32.mrf.mxu1  ;;  %v1608_v63 = vpop.f32.mrf.mxu0 }
 0x99c   : > { %v1558_v0 = vpop.f32.mrf.mxu1  ;;  %v3061_v1 = vpop.f32.mrf.mxu0 }
 0x99e   : > { %v3055_v2 = vpop.f32.mrf.mxu1 }
 0x9a0   : > { %v1655_v4 = vpop.f32.mrf.mxu1 }
 0x9a1   : > { %v1664_v6 = vsel %vm997_vm3, %v1655_v4, -inf }
 0x9a2   : > { %1665 = vmax.xlane.f32.xlu1 %v1664_v6  ;;  %v3066_v8 = vpop.f32.mrf.mxu1 }
 0x9a3   : > { %v1832_v8 = vsub.s32 1, %v4111_v46 }
 0x9a4   : > { %v1658_v10 = vpop.f32.mrf.mxu1 }
 0x9a5   : > { %v1833_v10 = vrot.slane %v4115_v48, %v1832_v8 }
 0x9a6   : > { %v3067_v11 = vpop.f32.mrf.mxu1 }
 0x9b3   : > { %1733 = vrot.lane.b32.xlu1 %v4181_v58, %s3764_s28 }
 0x9b7   : > { %3274 = vrot.lane.b32.xlu1 %v3273_v5, %s3764_s28 }
 0x9bb   : > { %3279 = vrot.lane.b32.xlu1 %v3278_v13, %s3763_s6 }
 0xa21   : > { %v1663_v14 = vpop.xlane.xlu0 %1662 }
 0xa22   : > { %v1667_v16 = vsub.f32 %v1605_v55, %v1663_v14  ;;  %v3408_v14 = vld [vmem:[#allocation2] sm:$0xff] }
 0xa24   : > { %v1669_v17 = vmul.f32 1.442695, %v1667_v16 }
 0xa26   : > { %3396 = vpow2.f32 %v1669_v17 }
 0xa2b   : > { %v1666_v18 = vpop.xlane.xlu1 %1665 }
 0xa2c   : > { %v1668_v21 = vsub.f32 %v1655_v4, %v1666_v18 }
 0xa2e   : > { %v1671_v22 = vmul.f32 1.442695, %v1668_v21  ;;  %v3409_v21 = vld [vmem:[#allocation2 + $0x8] sm:$0xff] }
 0xa2f   : > { %v1734_v23 = vpop.permute.xlu1 %1733 }
 0xa30   : > { %3398 = vpow2.f32 %v1671_v22  ;;  %v1739_v24 = vsel %vm1025_vm2, %v1734_v23, 0  ;;  %v3328_v23 = vld [vmem:[%s4043_s14 + $0x70] ss:$8 sps:$4 sm:$0xff]  }
 0xa31   : > { %3075 = vmatpush3.bf16.msra.mxu1 %v1739_v24  ;;  %v3330_v24 = vld [vmem:[%s4043_s14 + $0x74] ss:$8 sps:$4 sm:$0xff]  }
 0xa32   : > { %2064 = vmatprep.subr.bf16.mxu1 %v3330_v24 }
 0xa33   : > { %v3397_v58 = vpop.eup %3396  ;;  %v3275_v51 = vpop.permute.xlu1 %3274 }
 0xa34   : > { %v1673_v27 = vsel %vm997_vm3, %v3397_v58, 0.0  ;;  %v3277_v53 = vunpack.i.h.bf16 %v3275_v51  ;;  %v3276_v54 = vunpack.i.l.bf16 %v3275_v51  ;;  %v3361_v51 = vld [vmem:[%s4049_s22 + $0x18] sm:$0xff]  }
 0xa35   : > { %1674 = vadd.xlane.f32.xlu0 %v1673_v27 }
 0xa36   : > { %v1806_v57 = vsel %vm904_vm1, %v4200_v15, %v3277_v53  ;;  %v1805_v59 = vsel %vm904_vm1, %v4198_v9, %v3276_v54 }
 0xa37   : > { %v3280_v52 = vpop.permute.xlu1 %3279 }
 0xa38   : > { %v3282_v55 = vunpack.i.h.bf16 %v3280_v52  ;;  %v3281_v56 = vunpack.i.l.bf16 %v3280_v52 }
 0xa3a   : > { %v1808_v0 = vsel %vm1807_vm4, %v1805_v59, %v3281_v56  ;;  %v1809_v1 = vsel %vm1807_vm4, %v1806_v57, %v3282_v55  ;;  %v1949_v57 = vsub.s32 4, %v4111_v46 }
 0xa3d   : > { %v3399_v60 = vpop.eup %3398 }
 0xa3e   : > { %v1676_v3 = vsel %vm997_vm3, %v3399_v60, 0.0 }
 0xa3f   : > { %1677 = vadd.xlane.f32.xlu0 %v1676_v3 }
 0xa55   : > { %1685 = vrot.lane.b32.xlu0 %v4151_v25, %s3764_s28 }
 0xabe   : > { %v1675_v5 = vpop.xlane.xlu0 %1674 }
 0xabf   : > { %3400 = vrcp.f32 %v1675_v5 }
 0xac8   : > { %v1678_v28 = vpop.xlane.xlu0 %1677 }
 0xac9   : > { %3402 = vrcp.f32 %v1678_v28 }
 0xacc   : > { %v3401_v29 = vpop.eup %3400  ;;  %v1686_v31 = vpop.permute.xlu0 %1685 }
 0xacd   : > { %v1691_v32 = vsel %vm1025_vm2, %v1686_v31, 0  ;;  %v1681_v12 = vmul.f32 %v3401_v29, %v3397_v58 }
 0xace   : > { %3069 = vmatpush3.bf16.msra.mxu0 %v1691_v32  ;;  %v3333_v32 = vld [vmem:[%s4043_s14 + $0x64] ss:$8 sps:$4 sm:$0xff]  }
 0xacf   : > { %v1683_v19 = vpack.c.bf16 %v1681_v12, %v1681_v12  ;;  %3080 = vmatprep.subr.bf16.mxu0 %v3759_v7  ;;  %v3331_v12 = vld [vmem:[%s4043_s14 + $0x60] ss:$8 sps:$4 sm:$0xff]  }
 0xad1   : > { %3071 = vmatmul.mubr.msk.bf16.vlgmr.msra.gmra.mxu0 %vm997_vm3, %v1683_v19  ;;  %v3336_v19 = vld [vmem:[%s4043_s14 + $0x54] ss:$8 sps:$4 sm:$0xff]  }
 0xad2   : > { %3096 = vmatprep.mubr.msk.bf16.mxu0 %vm3761_vm0, %v3759_v7  ;;  %3081 = vmatpush3.bf16.msra.mxu0 %v3320_v34  ;;  %v3342_v34 = vld [vmem:[%s4043_s14 + $0x34] ss:$8 sps:$4 sm:$0xff]  }
 0xad3   : > { %3082 = vmatprep.subr.bf16.mxu0 %v3759_v7 }
 0xad6   : > { %v3403_v25 = vpop.eup %3402  ;;  %3083 = vmatpush3.bf16.msra.mxu0 %v3321_v35  ;;  %v3340_v35 = vld [vmem:[%s4043_s14 + $0x30] ss:$8 sps:$4 sm:$0xff]  }
 0xad7   : > { %v1682_v33 = vmul.f32 %v3403_v25, %v3399_v60  ;;  %3084 = vmatprep.subr.bf16.mxu0 %v3759_v7  ;;  %v3334_v25 = vld [vmem:[%s4043_s14 + $0x50] ss:$8 sps:$4 sm:$0xff]  }
 0xad9   : > { %v1684_v26 = vpack.c.bf16 %v1682_v33, %v1682_v33  ;;  %v3337_v33 = vld [vmem:[%s4043_s14 + $0x40] ss:$8 sps:$4 sm:$0xff]  }
 0xada   : > { %3085 = vmatpush3.bf16.msra.mxu0 %v3322_v36  ;;  %v3345_v36 = vld [vmem:[%s4043_s14 + $0x24] ss:$8 sps:$4 sm:$0xff]  }
 0xadb   : > { %3077 = vmatmul.mubr.msk.bf16.vlgmr.msra.gmra.mxu1 %vm997_vm3, %v1684_v26  ;;  %3086 = vmatprep.subr.bf16.mxu0 %v3759_v7  ;;  %v3339_v26 = vld [vmem:[%s4043_s14 + $0x44] ss:$8 sps:$4 sm:$0xff]  }
 0xadc   : > { %2096 = vmatprep.mubr.bf16.mxu1 %v3760_v30  ;;  %v3325_v30 = vld [vmem:[%s4041_s13 + $0x10] sm:$0xff]   ;;  %2065 = vmatpush1.bf16.msra.mxu1 %v3328_v23  ;;  %v1978_v23 = vsub.s32 6, %v4111_v46 }
 0xadd   : > { %2066 = vmatprep.subr.bf16.mxu1 %v3333_v32 }
 0xade   : > { %3087 = vmatpush3.bf16.msra.mxu0 %v3323_v37  ;;  %v3343_v37 = vld [vmem:[%s4043_s14 + $0x20] ss:$8 sps:$4 sm:$0xff]  }
 0xadf   : > { %3088 = vmatprep.subr.bf16.mxu0 %v3759_v7 }
 0xae0   : > { %2067 = vmatpush1.bf16.msra.mxu1 %v3331_v12 }
 0xae1   : > { %2068 = vmatprep.subr.bf16.mxu1 %v3336_v19 }
 0xae2   : > { %3089 = vmatpush3.bf16.msra.mxu0 %v3324_v38  ;;  %v3348_v38 = vld [vmem:[%s4043_s14 + $0x14] ss:$8 sps:$4 sm:$0xff]  }
 0xae3   : > { %3090 = vmatprep.subr.bf16.mxu0 %v3759_v7 }
 0xae4   : > { %2069 = vmatpush1.bf16.msra.mxu1 %v3334_v25 }
 0xae5   : > { %2070 = vmatprep.subr.bf16.mxu1 %v3339_v26 }
 0xae6   : > { %3091 = vmatpush3.bf16.msra.mxu0 %v3325_v30  ;;  %v3346_v30 = vld [vmem:[%s4043_s14 + $0x10] ss:$8 sps:$4 sm:$0xff]  }
 0xae7   : > { %3092 = vmatprep.subr.bf16.mxu0 %v3759_v7 }
 0xae8   : > { %2071 = vmatpush1.bf16.msra.mxu1 %v3337_v33 }
 0xae9   : > { %2072 = vmatprep.subr.bf16.mxu1 %v3342_v34 }
 0xaea   : > { %3093 = vmatpush3.bf16.msra.mxu0 %v3326_v39  ;;  %v3351_v39 = vld [vmem:[%s4043_s14 + $0x4] ss:$8 sps:$4 sm:$0xff]  }
 0xaeb   : > { %3094 = vmatprep.subr.bf16.mxu0 %v3759_v7 }
 0xaec   : > { %2073 = vmatpush1.bf16.msra.mxu1 %v3340_v35 }
 0xaed   : > { %2074 = vmatprep.subr.bf16.mxu1 %v3345_v36 }
 0xaee   : > { %3095 = vmatpush3.bf16.msra.mxu0 %v3327_v41  ;;  %v3352_v41 = vld [vmem:[%s4049_s22 + $0x78] sm:$0xff]  }
 0xaef   : > { %2924 = vmatprep.subr.bf16.mxu0 %v3352_v41 }
 0xaf0   : > { %2075 = vmatpush1.bf16.msra.mxu1 %v3343_v37  ;;  %v3410_v37 = vld [vmem:[%s4051_s12] sm:$0xff] }
 0xaf1   : > { %2076 = vmatprep.subr.bf16.mxu1 %v3348_v38 }
 0xaf4   : > { %2077 = vmatpush1.bf16.msra.mxu1 %v3346_v30 }
 0xaf5   : > { %2078 = vmatprep.subr.bf16.mxu1 %v3351_v39 }
 0xb91   : > { %v1727_v40 = vpop.f32.mrf.mxu0 }
 0xb93   : > { %v3072_v42 = vpop.f32.mrf.mxu0 }
 0xb94   : > { %v3353_v42 = vld [vmem:[%s4049_s22 + $0x38] sm:$0xff]  }
 0xb95   : > { %v1730_v20 = vpop.f32.mrf.mxu0 }
 0xb96   : > { %v3354_v20 = vld [vmem:[%s4049_s22 + $0x70] sm:$0xff]  }
 0xb97   : > { %v3073_v43 = vpop.f32.mrf.mxu0 }
 0xb98   : > { %v3355_v43 = vld [vmem:[%s4049_s22 + $0x30] sm:$0xff]  }
 0xb9b   : > { %v1775_v44 = vpop.f32.mrf.mxu1 }
 0xb9c   : > { %v3283_v45 = vpack.i.bf16 %v1775_v44, %v1727_v40  ;;  %v3349_v40 = vld [vmem:[%s4043_s14] ss:$8 sps:$4 sm:$0xff]  }
 0xb9d   : > { %v3078_v47 = vpop.f32.mrf.mxu1  ;;  %2079 = vmatpush1.bf16.msra.mxu1 %v3349_v40  ;;  %v3356_v44 = vld [vmem:[%s4049_s22 + $0x68] sm:$0xff]  }
 0xb9e   : > { %3284 = vrot.lane.b32.xlu0 %v3283_v45, %s3762_s20  ;;  %v3357_v45 = vld [vmem:[%s4049_s22 + $0x28] sm:$0xff]   ;;  %v3358_v47 = vld [vmem:[%s4049_s22 + $0x60] sm:$0xff]  }
 0xb9f   : > { %v1778_v49 = vpop.f32.mrf.mxu1 }
 0xba0   : > { %v3359_v49 = vld [vmem:[%s4049_s22 + $0x20] sm:$0xff]  }
 0xba1   : > { %v3079_v50 = vpop.f32.mrf.mxu1 }
 0xba2   : > { %v3360_v50 = vld [vmem:[%s4049_s22 + $0x58] sm:$0xff]  }
 0xc10   : > { %v3285_v7 = vpop.permute.xlu0 %3284 }
 0xc11   : > { %v3287_v62 = vunpack.i.h.bf16 %v3285_v7  ;;  %v3286_v63 = vunpack.i.l.bf16 %v3285_v7 }
 0xc13   : > { %v1812_v2 = vsel %vm1810_vm5, %v1809_v1, %v3287_v62  ;;  %v1811_v4 = vsel %vm1810_vm5, %v1808_v0, %v3286_v63  ;;  %v1950_v63 = vrot.slane %v4115_v48, %v1949_v57  ;;  %v1955_v0 = vsub.s32 5, %v4111_v46 }
 0xc14   : > { %v1813_v6 = vpack.c.bf16 %v1812_v2, %v1811_v4 }
 0xc16   : > { %3097 = vmatmul.mubr.bf16.vlgmr.msra.gmra.mxu0 %v1813_v6  ;;  %v1956_v6 = vrot.slane %v4115_v48, %v1955_v0 }
 0xc17   : > { %2925 = vmatpush3.bf16.msra.mxu0 %v3353_v42 }
 0xc18   : > { %2926 = vmatprep.subr.bf16.mxu0 %v3354_v20 }
 0xc1b   : > { %2927 = vmatpush3.bf16.msra.mxu0 %v3355_v43 }
 0xc1c   : > { %2928 = vmatprep.subr.bf16.mxu0 %v3356_v44 }
 0xc1f   : > { %2929 = vmatpush3.bf16.msra.mxu0 %v3357_v45 }
 0xc20   : > { %2930 = vmatprep.subr.bf16.mxu0 %v3358_v47 }
 0xc23   : > { %2931 = vmatpush3.bf16.msra.mxu0 %v3359_v49 }
 0xc24   : > { %2932 = vmatprep.subr.bf16.mxu0 %v3360_v50 }
 0xc27   : > { %2933 = vmatpush3.bf16.msra.mxu0 %v3361_v51 }
 0xcd6   : > { %v1916_v11 = vpop.f32.mrf.mxu0 }
 0xcd7   : > { %v1917_v13 = vadd.f32 %v1916_v11, %v1833_v10 }
 0xcd8   : > { %v3098_v15 = vpop.f32.mrf.mxu0 }
 0xcd9   : > { %v4322_v16 = vadd.f32 %v3408_v14, %v1917_v13  ;;  %v3362_v15 = vld [vmem:[%s4049_s22 + $0x50] sm:$0xff]  }
 0xcda   : > { %v1919_v9 = vpop.f32.mrf.mxu0  ;;  %v3363_v14 = vld [vmem:[%s4049_s22 + $0x10] sm:$0xff]   ;;  %2934 = vmatprep.subr.bf16.mxu0 %v3362_v15 }
 0xcdb   : > { %v1920_v17 = vadd.f32 %v1919_v9, %v1833_v10  ;;  %1925 = vadd.xlane.f32.xlu1 %v4322_v16  ;;  %2935 = vmatpush3.bf16.msra.mxu0 %v3363_v14  ;;  %v3364_v9 = vld [vmem:[%s4049_s22 + $0x48] sm:$0xff]  }
 0xcdc   : > { %v3099_v18 = vpop.f32.mrf.mxu0  ;;  %2936 = vmatprep.subr.bf16.mxu0 %v3364_v9 }
 0xcdd   : > { %v4325_v22 = vadd.f32 %v3409_v21, %v1920_v17  ;;  %v3365_v17 = vld [vmem:[%s4049_s22 + $0x8] sm:$0xff]   ;;  %v3366_v18 = vld [vmem:[%s4049_s22 + $0x40] sm:$0xff]  }
 0xcde   : > { %v3367_v21 = vld [vmem:[%s4049_s22] sm:$0xff]  }
 0xcdf   : > { %1927 = vadd.xlane.f32.xlu0 %v4325_v22  ;;  %2937 = vmatpush3.bf16.msra.mxu0 %v3365_v17 }
 0xce0   : > { %2938 = vmatprep.subr.bf16.mxu0 %v3366_v18 }
 0xce3   : > { %2939 = vmatpush3.bf16.msra.mxu0 %v3367_v21 }
 0xd64   : > { %v1926_v58 = vpop.xlane.xlu1 %1925 }
 0xd65   : > { %v1929_v27 = vmul.f32 0.0078125, %v1926_v58  ;;  %v1983_v58 = vrot.slane %v4127_v61, %v1978_v23  ;;  %v2286_v61 = vsub.s32 7, %v4111_v46 }
 0xd67   : > { %v4331_v60 = vsub.f32 %v4322_v16, %v1929_v27  ;;  %v1979_v27 = vrot.slane %v4115_v48, %v1978_v23  ;;  %v2287_v38 = vrot.slane %v3410_v37, %v2286_v61 }
 0xd68   : > { %v1928_v3 = vpop.xlane.xlu0 %1927 }
 0xd69   : > { %v1930_v5 = vmul.f32 0.0078125, %v1928_v3  ;;  %v1933_v28 = vmul.f32 %v4331_v60, %v4331_v60 }
 0xd6b   : > { %v4336_v29 = vsub.f32 %v4325_v22, %v1930_v5  ;;  %1935 = vadd.xlane.f32.xlu0 %v1933_v28 }
 0xd6d   : > { %v1934_v31 = vmul.f32 %v4336_v29, %v4336_v29 }
 0xd6f   : > { %1937 = vadd.xlane.f32.xlu0 %v1934_v31 }
 0xdf4   : > { %v1936_v52 = vpop.xlane.xlu0 %1935 }
 0xdf5   : > { %v1939_v53 = vmul.f32 0.0078125, %v1936_v52 }
 0xdf7   : > { %v1941_v54 = vadd.f32 1e-05, %v1939_v53 }
 0xdf8   : > { %v1938_v55 = vpop.xlane.xlu0 %1937 }
 0xdf9   : > { %3404 = vrsqrt.f32 %v1941_v54  ;;  %v1940_v56 = vmul.f32 0.0078125, %v1938_v55 }
 0xdfb   : > { %v1942_v7 = vadd.f32 1e-05, %v1940_v56 }
 0xdfd   : > { %3406 = vrsqrt.f32 %v1942_v7 }
 0xe06   : > { %v3405_v59 = vpop.eup %3404 }
 0xe07   : > { %v1945_v62 = vmul.f32 %v3405_v59, %v4331_v60 }
 0xe09   : > { %v1951_v4 = vmul.f32 %v1950_v63, %v1945_v62 }
 0xe0a   : > { %v3407_v1 = vpop.eup %3406 }
 0xe0b   : > { %v1946_v2 = vmul.f32 %v3407_v1, %v4336_v29  ;;  %v1957_v10 = vadd.f32 %v1956_v6, %v1951_v4 }
 0xe0d   : > { %v1952_v8 = vmul.f32 %v1950_v63, %v1946_v2 }
 0xe0f   : > { %v1958_v11 = vadd.f32 %v1956_v6, %v1952_v8 }
 0xe11   : > { %v1959_v13 = vpack.c.bf16 %v1958_v11, %v1957_v10 }
 0xe13   : > { %2097 = vmatmul.mubr.bf16.vlgmr.msra.gmra.mxu1 %v1959_v13 }
 0xed3   : > { %v2098_v24 = vpop.f32.mrf.mxu1 }
 0xed4   : > { %v2099_v29 = vadd.f32 %v2098_v24, %v1979_v27 }
 0xed5   : > { %v2100_v60 = vpop.f32.mrf.mxu1 }
 0xed6   : > { %v2101_v5 = vadd.f32 %v2100_v60, %v1983_v58  ;;  %v2107_v33 = vmax.f32 %v2099_v29, 0.0 }
 0xed7   : > { %v2102_v3 = vpop.f32.mrf.mxu1 }
 0xed8   : > { %v2103_v28 = vadd.f32 %v2102_v3, %v1979_v27  ;;  %v2108_v19 = vmax.f32 %v2101_v5, 0.0 }
 0xed9   : > { %v2104_v31 = vpop.f32.mrf.mxu1 }
 0xeda   : > { %v2105_v32 = vadd.f32 %v2104_v31, %v1983_v58  ;;  %v2109_v12 = vmax.f32 %v2103_v28, 0.0 }
 0xedc   : > { %v2110_v25 = vmax.f32 %v2105_v32, 0.0  ;;  %v2111_v34 = vpack.c.bf16 %v2109_v12, %v2107_v33 }
 0xede   : > { %v2112_v26 = vpack.c.bf16 %v2110_v25, %v2108_v19 }
 0xee0   : > { %2273 = vmatprep.mubr.bf16.mxu0 %v2112_v26 }
 0xee1   : > { %2274 = vmatmul.mubr.bf16.vlgmr.msra.gmra.mxu0 %v2111_v34 }
 0xfa1   : > { %v2940_v35 = vpop.f32.mrf.mxu0 }
 0xfa3   : > { %v2941_v48 = vpop.f32.mrf.mxu0 }
 0xfa4   : > { %v2942_v36 = vadd.f32 %v2941_v48, %v2940_v35 }
 0xfa5   : > { %v2943_v30 = vpop.f32.mrf.mxu0 }
 0xfa6   : > { %v2282_v39 = vadd.f32 %v2942_v36, %v4322_v16 }
 0xfa7   : > { %v2944_v40 = vpop.f32.mrf.mxu0 }
 0xfa8   : > { %v2288_v41 = vadd.f32 %v2287_v38, %v2282_v39  ;;  %v2945_v42 = vadd.f32 %v2944_v40, %v2943_v30  ;;  %2293 = sbr.rel (%p2843_p5) target bundleno = 4015 (0xfaf), region = 100 }
 0xfaa   : > { %v2283_v20 = vadd.f32 %v2945_v42, %v4325_v22 }
 0xfac   : > { %v2289_v43 = vadd.f32 %v2287_v38, %v2283_v20 }
 0xfad   : > { %2294 = vst [vmem:[#allocation2] sm:$0xff] %v2288_v41 }
 0xfae   : > { %2295 = vst [vmem:[#allocation2 + $0x8] sm:$0xff] %v2289_v43 }
 0xfaf PF: > { %s4499_s9 = sld [smem:[#allocation27_spill]] }
 0xfb5   : > { %p2844_p7 = scmp.ne.s32.totalorder %s4499_s9, 1 }
 0xfb6   : > { %s4500_s24 = sld [smem:[#allocation34_spill]] (!%p2844_p7) }
 0xfb7   : > { %2299 = sbr.rel (%p2844_p7) target bundleno = 4459 (0x116b), region = 104  ;;  %s4501_s10 = sld [smem:[#allocation35_spill]] (!%p2844_p7) }
 0xfbc   : > { %v3411_v46 = vld [vmem:[#allocation14 + $0x38] sm:$0xff]   ;;  %v3765_v44 = vmov 0.0   ;;  %v3412_v16 = vld [vmem:[#allocation14 + $0x30] sm:$0xff]   ;;  %vm3766_vm6 = vmmov 0   ;;  %v2300_v22 = vrot.slane %v2288_v41, 4  ;;  %v2306_v45 = vrot.slane %v2289_v43, 4 }
 0xfbd   : > { %3100 = vmatprep.subr.bf16.mxu0 %v3765_v44  ;;  %3120 = vmatprep.subr.bf16.mxu1 %v3765_v44  ;;  %v3413_v50 = vld [vmem:[#allocation14 + $0x28] sm:$0xff]   ;;  %v3419_v54 = vld [vmem:[#allocation15 + $0x38] sm:$0xff]   ;;  %v3414_v55 = vld [vmem:[#allocation14 + $0x20] sm:$0xff]   ;;  %vm2343_vm7 = vcmask 1041409  }
 0xfbe   : > { %3101 = vmatpush3.bf16.msra.mxu0 %v3411_v46  ;;  %3116 = vmatprep.mubr.msk.bf16.mxu0 %vm3766_vm6, %v3765_v44  ;;  %v2301_v47 = vadd.f32 %v2300_v22, %v2288_v41  ;;  %v2307_v49 = vadd.f32 %v2306_v45, %v2289_v43  ;;  %v3420_v57 = vld [vmem:[#allocation15 + $0x30] sm:$0xff]   ;;  %v3415_v0 = vld [vmem:[#allocation14 + $0x18] sm:$0xff]   ;;  %v3421_v2 = vld [vmem:[#allocation15 + $0x28] sm:$0xff]  }
 0xfbf   : > { %3102 = vmatprep.subr.bf16.mxu0 %v3765_v44  ;;  %3136 = vmatprep.mubr.msk.bf16.mxu1 %vm3766_vm6, %v3765_v44  ;;  %v3416_v6 = vld [vmem:[#allocation14 + $0x10] sm:$0xff]   ;;  %v3422_v11 = vld [vmem:[#allocation15 + $0x20] sm:$0xff]   ;;  %v3417_v13 = vld [vmem:[#allocation14 + $0x8] sm:$0xff]  }
 0xfc0   : > { %v2302_v51 = vrot.slane %v2301_v47, 2  ;;  %v2308_v52 = vrot.slane %v2307_v49, 2  ;;  %3121 = vmatpush3.bf16.msra.mxu1 %v3419_v54  ;;  %v3423_v9 = vld [vmem:[#allocation15 + $0x18] sm:$0xff]   ;;  %v3418_v17 = vld [vmem:[#allocation14] sm:$0xff]   ;;  %v3424_v21 = vld [vmem:[#allocation15 + $0x10] sm:$0xff]  }
 0xfc1   : > { %3122 = vmatprep.subr.bf16.mxu1 %v3765_v44  ;;  %v3425_v24 = vld [vmem:[#allocation15 + $0x8] sm:$0xff]   ;;  %v3426_v58 = vld [vmem:[#allocation15] sm:$0xff]   ;;  %v2845_v27 = vld [vmem:[%s4500_s24] ss:$0 sm:$0xff] }
 0xfc2   : > { %3103 = vmatpush3.bf16.msra.mxu0 %v3412_v16  ;;  %v2303_v53 = vadd.f32 %v2302_v51, %v2301_v47  ;;  %v2309_v56 = vadd.f32 %v2308_v52, %v2307_v49  ;;  %v2854_v12 = vld [vmem:[%s4501_s10] ss:$0 sm:$0xff] }
 0xfc3   : > { %3104 = vmatprep.subr.bf16.mxu0 %v3765_v44 }
 0xfc4   : > { %v2304_v7 = vrot.slane %v2303_v53, 1  ;;  %v2310_v59 = vrot.slane %v2309_v56, 1  ;;  %3123 = vmatpush3.bf16.msra.mxu1 %v3420_v57 }
 0xfc5   : > { %3124 = vmatprep.subr.bf16.mxu1 %v3765_v44 }
 0xfc6   : > { %3105 = vmatpush3.bf16.msra.mxu0 %v3413_v50  ;;  %v2305_v62 = vadd.f32 %v2304_v7, %v2303_v53  ;;  %v2311_v63 = vadd.f32 %v2310_v59, %v2309_v56 }
 0xfc7   : > { %3106 = vmatprep.subr.bf16.mxu0 %v3765_v44 }
 0xfc8   : > { %v2312_v1 = vmul.f32 0.125, %v2305_v62  ;;  %v2313_v4 = vmul.f32 0.125, %v2311_v63  ;;  %3125 = vmatpush3.bf16.msra.mxu1 %v3421_v2 }
 0xfc9   : > { %3126 = vmatprep.subr.bf16.mxu1 %v3765_v44 }
 0xfca   : > { %3107 = vmatpush3.bf16.msra.mxu0 %v3414_v55  ;;  %v2314_v8 = vpack.c.bf16 %v2312_v1, %v2312_v1  ;;  %v2315_v10 = vpack.c.bf16 %v2313_v4, %v2313_v4 }
 0xfcb   : > { %3108 = vmatprep.subr.bf16.mxu0 %v3765_v44 }
 0xfcc   : > { %v2341_v15 = vunpack.c.l.b16 %v2314_v8  ;;  %v2342_v14 = vunpack.c.l.b16 %v2315_v10  ;;  %3127 = vmatpush3.bf16.msra.mxu1 %v3422_v11 }
 0xfcd   : > { %3128 = vmatprep.subr.bf16.mxu1 %v3765_v44 }
 0xfce   : > { %3109 = vmatpush3.bf16.msra.mxu0 %v3415_v0  ;;  %v2344_v18 = vsel %vm2343_vm7, %v2342_v14, %v2341_v15 }
 0xfcf   : > { %3110 = vmatprep.subr.bf16.mxu0 %v3765_v44  ;;  %v2345_v23 = vpack.c.b16 %v2344_v18, %v2344_v18 }
 0xfd0   : > { %3129 = vmatpush3.bf16.msra.mxu1 %v3423_v9 }
 0xfd1   : > { %3130 = vmatprep.subr.bf16.mxu1 %v3765_v44 }
 0xfd2   : > { %3111 = vmatpush3.bf16.msra.mxu0 %v3416_v6 }
 0xfd3   : > { %3112 = vmatprep.subr.bf16.mxu0 %v3765_v44 }
 0xfd4   : > { %3131 = vmatpush3.bf16.msra.mxu1 %v3424_v21 }
 0xfd5   : > { %3132 = vmatprep.subr.bf16.mxu1 %v3765_v44 }
 0xfd6   : > { %3113 = vmatpush3.bf16.msra.mxu0 %v3417_v13 }
 0xfd7   : > { %3114 = vmatprep.subr.bf16.mxu0 %v3765_v44 }
 0xfd8   : > { %3133 = vmatpush3.bf16.msra.mxu1 %v3425_v24 }
 0xfd9   : > { %3134 = vmatprep.subr.bf16.mxu1 %v3765_v44 }
 0xfda   : > { %3115 = vmatpush3.bf16.msra.mxu0 %v3418_v17 }
 0xfdc   : > { %3135 = vmatpush3.bf16.msra.mxu1 %v3426_v58 }
 0xfdd   : > { %3117 = vmatmul.mubr.bf16.vlgmr.msra.gmra.mxu0 %v2345_v23 }
0x109d   : > { %v2429_v60 = vpop.f32.mrf.mxu0 }
0x109e   : > { %v2430_v3 = vadd.f32 %v2845_v27, %v2429_v60 }
0x109f   : > { %v3118_v5 = vpop.f32.mrf.mxu0 }
0x10a0   : > { %v2435_v28 = vmax.f32 %v2430_v3, 0.0 }
0x10a1   : > { %v2432_v29 = vpop.f32.mrf.mxu0 }
0x10a2   : > { %v2436_v31 = vpack.c.bf16 %v2435_v28, %v2435_v28 }
0x10a3   : > { %v3119_v32 = vpop.f32.mrf.mxu0 }
0x10a4   : > { %3137 = vmatmul.mubr.bf16.vlgmr.msra.gmra.mxu1 %v2436_v31 }
0x1164   : > { %v2542_v19 = vpop.f32.mrf.mxu1 }
0x1165   : > { %v2543_v25 = vadd.f32 %v2854_v12, %v2542_v19 }
0x1166   : > { %v3138_v33 = vpop.f32.mrf.mxu1 }
0x1167   : > { %2548 = vst [vmem:[#allocation17] sm:$0x3] %v2543_v25 }
0x1168   : > { %v2545_v26 = vpop.f32.mrf.mxu1 }
0x116a   : > { %v3139_v34 = vpop.f32.mrf.mxu1 }
0x116b PF: > { %p3205_p9 = scmp.eq.s32.totalorder %s3852_s19, 1  ;;  %s3767_s25 = smov [#allocation17]  }
0x116c   : > { %s2558_s11 = sshll.u32 %s3767_s25, 4  ;;  %s2559_s11 = int_to_ptr.vmem [resolvable:$true] %s2558_s11 }
0x116d   : > { %s3645_s7 = scalar_lea.vmem %s2559_s11, 32  ;;  %p3652_p1 = scmp.lt.s32.totalorder %s2559_s11, %s2559_s11 }
0x116e   : > { %p3646_p3 = scmp.ne.s32.totalorder %s2559_s11, %s3645_s7  ;;  %p3653_p12 = scmp.lt.s32.totalorder %s3645_s7, %s3645_s7 }
0x1170   : > { %p3647_p11 = pnand %p3646_p3, %p3205_p9  ;;  %p3654_p6 = por %p3653_p12, %p3652_p1 }
0x1172   : > { %p3648_p4 = pneg %p3647_p11 }
0x1174   : > { %p3655_p8 = pnand %p3654_p6, %p3648_p4 }
0x1176   : > { %3658 = shalt.err (!%p3655_p8)
}
0x1177   : > { %s4502_s26 = sld [smem:[#allocation36_spill]] }
0x117d   : > { %3169 = dma.vmem_to_hbm [thread:$0]  (%p3205_p9), %s2559_s11, 32, %s4502_s26, [#allocation5]  }
0x117e   : > { %3718 = dma.done.wait (%p3205_p9), [#allocation5], 32  }
0x117f   : > { %3720 = vsyncadd (%p3205_p9), [#allocation5], 4294967264 }
0x1180 PF: > { %s4503_s14 = sld [smem:[#allocation28_spill]]  ;;  %s4508_s16 = smov %s3739_s17 }
0x1181   : > { %s4504_s13 = sld [smem:[#allocation25_spill]] }
0x1182   : > { %s4506_s15 = sld [smem:[#allocation31_spill]] }
0x1183   : > { %s4507_s22 = sld [smem:[#allocation30_spill]] }
0x1186   : > { %s32_s18 = sadd.s32 1, %s4503_s14   ;;  %s4505_s14 = sld [smem:[#allocation26_spill]] }
0x1187   : > { %p29_p0 = scmp.ge.s32.totalorder %s32_s18, 4  }
0x1189   : > { %s4509_s17 = smov %s4507_s22  ;;  %31 = sbr.rel (!%p29_p0) target bundleno = 17 (0x11), region = 172 }
0x118e   :  { %2571 = vsyncpa [#allocation4], 1 }
0x118f   :  { %2573 = vsyncpa [#allocation4 + $0x1], 1 }
0x1190   :  { %2574 = vsyncpa [#allocation7], 1 }
0x1191   :  { %2576 = vsyncpa [#allocation7 + $0x1], 1 }
0x1192   :  { %2577 = vsyncpa [#allocation10], 1 }
0x1193   :  { %2579 = vsyncpa [#allocation10 + $0x1], 1 }
0x1194   :  { %2580 = vsyncpa [#allocation13], 1 }
0x1195   :  { %2582 = vsyncpa [#allocation13 + $0x1], 1 }
0x1196   :  { %2583 = vsyncpa [#allocation16], 1 }
0x1197   :  { %2584 = vsyncpa [#allocation5], 1 }
0x1198   :  { %2586 = vsyncpa [#allocation5 + $0x1], 1 }

// kernel: tpu_custom_call.1
= control target key start
LH: loop header
LB: loop body
LE: loop exit
PB: predicated region body
PF: predicated region fallthrough
CT: control target
= control target key end

     0   :  { %s4439_s0 = inlined_call_operand.hbm [shape: bf16[2,8,128], index: 0, kind: input, shape index: {}]   ;;  %s4440_s1 = inlined_call_operand.hbm [shape: bf16[2,128,384], index: 1, kind: input, shape index: {}]   ;;  %s4441_s2 = inlined_call_operand.hbm [shape: bf16[2,128,128], index: 2, kind: input, shape index: {}]   ;;  %s4442_s3 = inlined_call_operand.hbm [shape: bf16[2,128,256], index: 3, kind: input, shape index: {}]   ;;  %s4443_s4 = inlined_call_operand.hbm [shape: bf16[2,256,128], index: 4, kind: input, shape index: {}]   ;;  %s4444_s5 = inlined_call_operand.hbm [shape: f32[2,8,384], index: 5, kind: input, shape index: {}]   ;;  %s4445_s6 = inlined_call_operand.hbm [shape: bf16[128,128], index: 6, kind: input, shape index: {}]   ;;  %s4446_s7 = inlined_call_operand.vmem [shape: f32[1,128], index: 7, kind: input, shape index: {}]   ;;  %s4447_s8 = inlined_call_operand.hbm [shape: bf16[128,128], index: 8, kind: input, shape index: {}]   ;;  %s4448_s9 = inlined_call_operand.vmem [shape: f32[1,128], index: 9, kind: input, shape index: {}]   ;;  %s4449_s10 = inlined_call_operand.hbm [shape: f32[2,128], index: 10, kind: output, shape index: {}]  }
   0x1   :  { %4463 = sst [smem:[#allocation32_spill]] %s4440_s1 }
   0x2   :  { %4464 = sst [smem:[#allocation33_spill]] %s4445_s6 }
   0x3   :  { %4465 = sst [smem:[#allocation34_spill]] %s4446_s7 }
   0x4   :  { %4466 = sst [smem:[#allocation35_spill]] %s4448_s9 }
   0x5   :  { %4467 = sst [smem:[#allocation36_spill]] %s4449_s10 }
   0x6   :  { %15 = vsyncpa [#allocation4], 0 }
   0x7   :  { %16 = vsyncpa [#allocation7], 0 }
   0x8   :  { %18 = vsyncpa [#allocation7 + $0x1], 0 }
   0x9   :  { %19 = vsyncpa [#allocation10], 0 }
   0xa   :  { %21 = vsyncpa [#allocation10 + $0x1], 0 }
   0xb   :  { %22 = vsyncpa [#allocation13], 0 }
   0xc   :  { %24 = vsyncpa [#allocation13 + $0x1], 0 }
   0xd   :  { %25 = vsyncpa [#allocation16], 0 }
   0xe   :  { %26 = vsyncpa [#allocation5], 0  ;;  %s3823_s13 = smov 0   ;;  %s3825_s14 = smov 0  }
   0xf   :  { %s3827_s15 = smov 0   ;;  %s3829_s16 = smov 0  }
  0x10   :  { %s3831_s17 = smov 0   ;;  %s3833_s18 = smov 0  }
  0x11 LB: > { %4468 = sst [smem:[#allocation25_spill]] %s3727_s14  ;;  %s3852_s19 = sadd.s32 4294967295, %s3743_s18   ;;  %s3743_s18 = sphi %s3833_s18, %s32_s18   ;;  %s3739_s17 = sphi %s3831_s17, %s4509_s17   ;;  %s3735_s16 = sphi %s3829_s16, %s4508_s16   ;;  %s3731_s15 = sphi %s3827_s15, %s4506_s15   ;;  %s3727_s14 = sphi %s3825_s14, %s4505_s14   ;;  %s3723_s13 = sphi %s3823_s13, %s4504_s13  }
  0x12   : > { %4469 = sst [smem:[#allocation26_spill]] %s3731_s15  ;;  %p84_p0 = scmp.ne.s32.totalorder %s3731_s15, %s3727_s14 }
  0x13   : > { %4470 = sst [smem:[#allocation27_spill]] %s3735_s16  ;;  %p85_p1 = scmp.eq.s32.totalorder %s3743_s18, 0 }
  0x14   : > { %4471 = sst [smem:[#allocation28_spill]] %s3743_s18  ;;  %p90_p2 = scmp.ne.s32.totalorder %s3727_s14, %s3723_s13 }
  0x15   : > { %p4450_p3 = scmp.eq.s32.totalorder %s3852_s19, 0  ;;  %p3860_p4 = por %p85_p1, %p84_p0 }
  0x16   : > { %p2739_p5 = scmp.ge.s32.totalorder %s3743_s18, 1  ;;  %p315_p7 = scmp.lt.s32.totalorder %s3743_s18, 3 }
  0x17   : > { %p3867_p6 = por %p4450_p3, %p90_p2  ;;  %s3745_s24 = smov [#allocation14]  }
  0x18   : > { %p3872_p8 = pnand %p2739_p5, %p315_p7  ;;  %s343_s25 = sshll.u32 %s3745_s24, 4  ;;  %s344_s25 = int_to_ptr.vmem [resolvable:$true] %s343_s25 }
  0x19   : > { %s4473_s22 = scalar_select %p3867_p6, 1, 0 }
  0x1a   : > { %p3172_p9 = pneg %p3872_p8  ;;  %s41_s27 = sadd.s32 1, %s3739_s17 }
  0x1b   : > { %4474 = sst [smem:[#allocation29_spill]] %s4473_s22  ;;  %p3201_p11 = scmp.lt.s32.totalorder %s3743_s18, 2 }
  0x1c   : > { %p3880_p10 = pnand %p3172_p9, %p4450_p3  ;;  %p3886_p12 = scmp.ge.s32.totalorder %s41_s27, 2 }
  0x1d   : > { %s3438_s29 = scalar_lea.vmem %s344_s25, 1024  ;;  %p3446_p5 = scmp.lt.s32.totalorder %s344_s25, %s344_s25 }
  0x1e   : > { %p3429_p13 = pneg %p3880_p10  ;;  %p3439_p0 = scmp.ne.s32.totalorder %s344_s25, %s3438_s29 }
  0x1f   : > { %p3447_p7 = scmp.lt.s32.totalorder %s3438_s29, %s3438_s29 }
  0x20   : > { %p3441_p1 = pnand %p3439_p0, %p3429_p13 }
  0x21   : > { %p3448_p9 = por %p3447_p7, %p3446_p5 }
  0x22   : > { %p3442_p2 = pneg %p3441_p1 }
  0x24   : > { %p3449_p3 = pnand %p3448_p9, %p3442_p2 }
  0x26   : > { %3452 = shalt.err (!%p3449_p3)
}
  0x27   : > { %s4451_s30 = smov 64   ;;  %s4453_s11 = smov 4  }
  0x28   : > { %s4478_s6 = sld [smem:[#allocation33_spill]]  ;;  %s4511_s27 = smov (%p3886_p12, %s41_s27), 0 }
  0x29   : > { %4479 = sst [smem:[#allocation30_spill]] %s4511_s27  ;;  %s3908_s24 = sand.u32 1, %s3743_s18  }
  0x2a   : > { %s3911_s29 = sand.u32 1, %s3731_s15   ;;  %s74_s20 = ssub.s32 %s3739_s17, %s4511_s27 }
  0x2b   : > { %p75_p3 = scmp.eq.s32.totalorder %s74_s20, 0  ;;  %s3140_s10 = smul.u32 192, %s3911_s29 }
  0x2c   : > { %s3141_s9 = smul.u32 3072, %s3739_s17  ;;  %p3921_p0 = pnand %p3201_p11, %p3860_p4 }
  0x2d   : > { %s4483_s1 = sld [smem:[#allocation32_spill]]  ;;  %s4461_s20 = scalar_lea.sflag [#allocation7], %s3908_s24 }
  0x2e   : > { %3178 = dma.hbm_to_vmem [thread:$0]  (!%p3880_p10), %s4478_s6, 1024, %s344_s25, [#allocation13], %s4451_s30, %s4451_s30, %s4453_s11  }
  0x2f   : > { %s4481_s25 = sadd.s32 1, %s3731_s15  ;;  %s380_s11 = scalar_lea.vmem [#allocation6], %s3140_s10 }
  0x30   : > { %s3928_s28 = scalar_select %p75_p3, %s3731_s15, %s4481_s25  }
  0x31   : > { %s387_s6 = sshll.u32 %s380_s11, 4  ;;  %p3936_p12 = pneg %p3921_p0  ;;  %s388_s6 = int_to_ptr.vmem [resolvable:$true] %s387_s6 }
  0x32   : > { %4482 = sst [smem:[#allocation31_spill]] %s3928_s28  ;;  %s3466_s27 = scalar_lea.vmem %s388_s6, 3072 }
  0x33   : > { %s386_s30 = scalar_lea.hbm %s4483_s1, %s3141_s9  ;;  %p3467_p4 = scmp.ne.s32.totalorder %s388_s6, %s3466_s27 }
  0x34   : > { %s3748_s25 = smov [#allocation6]  }
  0x35   : > { %p3469_p11 = pnand %p3467_p4, %p3936_p12  ;;  %s3471_s28 = sshll.u32 %s3748_s25, 4  ;;  %s3472_s28 = int_to_ptr.vmem [resolvable:$false] %s3471_s28 }
  0x36   : > { %s3473_s12 = scalar_lea.vmem %s3472_s28, 6144  ;;  %p3474_p2 = scmp.lt.s32.totalorder %s388_s6, %s3472_s28 }
  0x37   : > { %p3470_p1 = pneg %p3469_p11  ;;  %p3475_p5 = scmp.lt.s32.totalorder %s3473_s12, %s3466_s27 }
  0x39   : > { %p3476_p7 = por %p3475_p5, %p3474_p2 }
  0x3b   : > { %p3477_p9 = pnand %p3476_p7, %p3470_p1 }
  0x3d   : > { %3480 = shalt.err (!%p3477_p9)
}
  0x3e   : > { %s3749_s9 = smov 192   ;;  %s3750_s10 = smov 12  }
  0x3f   : > { %3185 = dma.hbm_to_vmem [thread:$0]  (!%p3921_p0), %s386_s30, 3072, %s388_s6, %s4461_s20, %s3749_s9, %s3749_s9, %s3750_s10  }
  0x40   : > { %s2748_s11 = sshll.u32 %s3911_s29, 7  ;;  %s2868_s13 = sshll.u32 %s3739_s17, 11 }
  0x41   : > { %s428_s27 = scalar_lea.hbm %s4442_s3, %s2868_s13  ;;  %s422_s28 = scalar_lea.vmem [#allocation9], %s2748_s11 }
  0x42   : > { %s429_s12 = sshll.u32 %s422_s28, 4  ;;  %s419_s15 = scalar_lea.sflag [#allocation10], %s3908_s24  ;;  %s430_s12 = int_to_ptr.vmem [resolvable:$true] %s429_s12 }
  0x43   : > { %s3494_s18 = scalar_lea.vmem %s430_s12, 2048  ;;  %s3751_s16 = smov [#allocation9]  }
  0x44   : > { %p3495_p3 = scmp.ne.s32.totalorder %s430_s12, %s3494_s18  ;;  %s3499_s22 = sshll.u32 %s3751_s16, 4  ;;  %s3500_s22 = int_to_ptr.vmem [resolvable:$false] %s3499_s22 }
  0x45   : > { %s3501_s14 = scalar_lea.vmem %s3500_s22, 4096  ;;  %p3502_p1 = scmp.lt.s32.totalorder %s430_s12, %s3500_s22 }
  0x46   : > { %p3497_p4 = pnand %p3495_p3, %p3936_p12  ;;  %p3503_p2 = scmp.lt.s32.totalorder %s3501_s14, %s3494_s18 }
  0x48   : > { %p3498_p11 = pneg %p3497_p4  ;;  %p3504_p5 = por %p3503_p2, %p3502_p1 }
  0x4a   : > { %p3505_p7 = pnand %p3504_p5, %p3498_p11 }
  0x4c   : > { %3508 = shalt.err (!%p3505_p7)
}
  0x4d   : > { %s3752_s1 = smov 128   ;;  %s3753_s6 = smov 8  }
  0x4e   : > { %3191 = dma.hbm_to_vmem [thread:$0]  (!%p3921_p0), %s428_s27, 2048, %s430_s12, %s419_s15, %s3752_s1, %s3752_s1, %s3753_s6  }
  0x4f   : > { %s3961_s10 = scalar_lea.hbm %s4443_s4, %s2868_s13  ;;  %s443_s16 = scalar_lea.vmem [#allocation11], %s2748_s11 }
  0x50   : > { %s450_s25 = sshll.u32 %s443_s16, 4  ;;  %s3754_s14 = smov [#allocation3]   ;;  %s3963_s25 = int_to_ptr.vmem [resolvable:$true] %s450_s25 }
  0x51   : > { %s330_s18 = sshll.u32 %s3754_s14, 4  ;;  %s3755_s22 = smov [#allocation15]   ;;  %s331_s18 = int_to_ptr.vmem [resolvable:$true] %s330_s18 }
  0x52   : > { %s359_s28 = sshll.u32 %s3755_s22, 4  ;;  %s3520_s20 = scalar_lea.vmem %s331_s18, 128  ;;  %s360_s28 = int_to_ptr.vmem [resolvable:$true] %s359_s28 }
  0x53   : > { %p3521_p9 = scmp.ne.s32.totalorder %s331_s18, %s3520_s20  ;;  %p3528_p11 = scmp.lt.s32.totalorder %s331_s18, %s331_s18 }
  0x54   : > { %p3529_p1 = scmp.lt.s32.totalorder %s3520_s20, %s3520_s20 }
  0x55   : > { %p3523_p3 = pnand %p3521_p9, %p3429_p13 }
  0x56   : > { %p3530_p2 = por %p3529_p1, %p3528_p11 }
  0x57   : > { %p3524_p4 = pneg %p3523_p3 }
  0x59   : > { %p3531_p5 = pnand %p3530_p2, %p3524_p4 }
  0x5b   : > { %3534 = shalt.err (!%p3531_p5)
}
  0x5c   : > { %s4485_s11 = smov 4   ;;  %s4486_s13 = smov 64  }
  0x5d   : > { %3175 = dma.hbm_to_vmem [thread:$0]  (!%p3880_p10), %s4439_s0, 128, %s331_s18, [#allocation4], %s4486_s13, %s4486_s13, %s4485_s11  }
  0x5e   : > { %s3546_s1 = scalar_lea.vmem %s360_s28, 1024  ;;  %p3554_p6 = scmp.lt.s32.totalorder %s360_s28, %s360_s28 }
  0x5f   : > { %p3547_p7 = scmp.ne.s32.totalorder %s360_s28, %s3546_s1  ;;  %p3555_p11 = scmp.lt.s32.totalorder %s3546_s1, %s3546_s1 }
  0x61   : > { %p3549_p9 = pnand %p3547_p7, %p3429_p13  ;;  %p3556_p4 = por %p3555_p11, %p3554_p6 }
  0x63   : > { %p3550_p3 = pneg %p3549_p9 }
  0x65   : > { %p3557_p1 = pnand %p3556_p4, %p3550_p3 }
  0x67   : > { %3560 = shalt.err (!%p3557_p1)
}
  0x68   : > { %3181 = dma.hbm_to_vmem [thread:$0]  (!%p3880_p10), %s4447_s8, 1024, %s360_s28, [#allocation16], %s4486_s13, %s4486_s13, %s4485_s11  }
  0x69   : > { %s2745_s30 = sshll.u32 %s3911_s29, 6  ;;  %s2867_s9 = sshll.u32 %s3739_s17, 10 }
  0x6a   : > { %s407_s18 = scalar_lea.hbm %s4441_s2, %s2867_s9  ;;  %s401_s22 = scalar_lea.vmem [#allocation8], %s2745_s30 }
  0x6b   : > { %s408_s27 = sshll.u32 %s401_s22, 4  ;;  %s3142_s26 = smul.u32 24, %s3911_s29  ;;  %s409_s27 = int_to_ptr.vmem [resolvable:$true] %s408_s27 }
  0x6c   : > { %s3574_s12 = scalar_lea.vmem %s409_s27, 1024  ;;  %s3756_s1 = smov [#allocation8]  }
  0x6d   : > { %p3575_p6 = scmp.ne.s32.totalorder %s409_s27, %s3574_s12  ;;  %s3579_s20 = sshll.u32 %s3756_s1, 4  ;;  %s3580_s20 = int_to_ptr.vmem [resolvable:$false] %s3579_s20 }
  0x6e   : > { %s3581_s6 = scalar_lea.vmem %s3580_s20, 2048  ;;  %p3582_p10 = scmp.lt.s32.totalorder %s409_s27, %s3580_s20 }
  0x6f   : > { %p3577_p13 = pnand %p3575_p6, %p3936_p12  ;;  %p3583_p5 = scmp.lt.s32.totalorder %s3581_s6, %s3574_s12 }
  0x71   : > { %p3578_p2 = pneg %p3577_p13  ;;  %p3584_p7 = por %p3583_p5, %p3582_p10 }
  0x73   : > { %p3585_p9 = pnand %p3584_p7, %p3578_p2 }
  0x75   : > { %3588 = shalt.err (!%p3585_p9)
}
  0x76   : > { %s4487_s28 = scalar_lea.sflag [#allocation7], %s3908_s24  ;;  %s3602_s30 = scalar_lea.vmem %s3963_s25, 2048 }
  0x77   : > { %3188 = dma.hbm_to_vmem [thread:$0]  (!%p3921_p0), %s407_s18, 1024, %s409_s27, %s4487_s28, %s4486_s13, %s4486_s13, %s4485_s11  }
  0x78   : > { %p3603_p3 = scmp.ne.s32.totalorder %s3963_s25, %s3602_s30  ;;  %s3757_s9 = smov [#allocation11]  }
  0x79   : > { %s3607_s16 = sshll.u32 %s3757_s9, 4  ;;  %s3608_s16 = int_to_ptr.vmem [resolvable:$false] %s3607_s16 }
  0x7a   : > { %p3605_p11 = pnand %p3603_p3, %p3936_p12  ;;  %s3609_s14 = scalar_lea.vmem %s3608_s16, 4096 }
  0x7b   : > { %p3610_p1 = scmp.lt.s32.totalorder %s3963_s25, %s3608_s16  ;;  %p3611_p6 = scmp.lt.s32.totalorder %s3609_s14, %s3602_s30 }
  0x7c   : > { %p3606_p4 = pneg %p3605_p11 }
  0x7d   : > { %p3612_p13 = por %p3611_p6, %p3610_p1 }
  0x7f   : > { %p3613_p2 = pnand %p3612_p13, %p3606_p4 }
  0x81   : > { %3616 = shalt.err (!%p3613_p2)
}
  0x82   : > { %3194 = dma.hbm_to_vmem [thread:$0]  (!%p3921_p0), %s3961_s10, 2048, %s3963_s25, %s419_s15, %s4486_s13, %s4486_s13, %s4485_s11  }
  0x83   : > { %s3143_s18 = smul.u32 384, %s3739_s17  ;;  %s464_s22 = scalar_lea.vmem [#allocation12], %s3142_s26 }
  0x84   : > { %s472_s27 = sshll.u32 %s464_s22, 4  ;;  %s461_s6 = scalar_lea.sflag [#allocation13], %s3908_s24  ;;  %s473_s27 = int_to_ptr.vmem [resolvable:$true] %s472_s27 }
  0x85   : > { %s470_s20 = scalar_lea.hbm %s4444_s5, %s3143_s18  ;;  %s3630_s28 = scalar_lea.vmem %s473_s27, 384 }
  0x86   : > { %p3631_p10 = scmp.ne.s32.totalorder %s473_s27, %s3630_s28  ;;  %s3758_s30 = smov [#allocation12]  }
  0x87   : > { %s3635_s9 = sshll.u32 %s3758_s30, 4  ;;  %s3636_s9 = int_to_ptr.vmem [resolvable:$false] %s3635_s9 }
  0x88   : > { %p3633_p5 = pnand %p3631_p10, %p3936_p12  ;;  %s3637_s16 = scalar_lea.vmem %s3636_s9, 768 }
  0x89   : > { %p3638_p9 = scmp.lt.s32.totalorder %s473_s27, %s3636_s9  ;;  %p3639_p3 = scmp.lt.s32.totalorder %s3637_s16, %s3630_s28 }
  0x8a   : > { %p3634_p7 = pneg %p3633_p5 }
  0x8b   : > { %p3640_p11 = por %p3639_p3, %p3638_p9 }
  0x8d   : > { %p3641_p4 = pnand %p3640_p11, %p3634_p7 }
  0x8f   : > { %3644 = shalt.err (!%p3641_p4)
}
  0x90   : > { %3197 = dma.hbm_to_vmem [thread:$0]  (!%p3921_p0), %s470_s20, 384, %s473_s27, %s461_s6  }
  0x91   : > { %481 = sbr.rel (%p3872_p8) target bundleno = 4480 (0x1180), region = 60  ;;  %p4488_p1 = scmp.eq.s32.totalorder (!%p3872_p8), %s3852_s19, 0 }
  0x96   : > { %3694 = dma.done.wait (%p4488_p1), [#allocation4], 128   ;;  %p4489_p12 = pmov %p4488_p1 }
  0x97   : > { %s4490_s15 = sld [smem:[#allocation25_spill]]  ;;  %s487_s29 = sand.u32 1, %s3852_s19  }
  0x98   : > { %3696 = vsyncadd (%p4489_p12), [#allocation4], 4294967168  ;;  %s4491_s24 = sld [smem:[#allocation29_spill]]  ;;  %s488_s25 = scalar_lea.sflag [#allocation7], %s487_s29 }
  0x9d   : > { %s489_s21 = sand.u32 1, %s4490_s15  }
  0x9e   : > { %s3144_s10 = smul.u32 192, %s489_s21  ;;  %p4492_p6 = scmp.ne.s32.totalorder %s4491_s24, 0 }
  0xa0   : > { %s4035_s11 = scalar_lea.vmem [#allocation6], %s3144_s10 }
  0xa1   : > { %3698 = dma.done.wait (%p4492_p6), %s488_s25, 4096  }
  0xa2   : > { %3700 = vsyncadd (%p4492_p6), %s488_s25, 4294963200  ;;  %s2757_s7 = sshll.u32 %s489_s21, 6  ;;  %s2758_s23 = sshll.u32 %s489_s21, 7 }
  0xa3   : > { %s4041_s13 = scalar_lea.vmem [#allocation8], %s2757_s7  ;;  %s506_s26 = scalar_lea.sflag [#allocation10], %s487_s29 }
  0xa4   : > { %s4043_s14 = scalar_lea.vmem [#allocation9], %s2758_s23 }
  0xa5   : > { %3702 = dma.done.wait (%p4492_p6), %s506_s26, 4096  }
  0xa6   : > { %3704 = vsyncadd (%p4492_p6), %s506_s26, 4294963200  ;;  %s3145_s18 = smul.u32 24, %s489_s21  ;;  %s4049_s22 = scalar_lea.vmem [#allocation11], %s2758_s23 }
  0xa7   : > { %s524_s27 = scalar_lea.sflag [#allocation13], %s487_s29 }
  0xa8   : > { %s4051_s12 = scalar_lea.vmem [#allocation12], %s3145_s18 }
  0xa9   : > { %3706 = dma.done.wait (%p4492_p6), %s524_s27, 384  }
  0xaa   : > { %3708 = vsyncadd (%p4492_p6), %s524_s27, 4294966912  ;;  %p4493_p8 = pmov %p4488_p1 }
  0xab   : > { %p4494_p0 = pmov %p4488_p1 }
  0xac   : > { %3710 = dma.done.wait (%p4493_p8), [#allocation13], 1024  }
  0xad   : > { %3712 = vsyncadd (%p4494_p0), [#allocation13], 4294966272  ;;  %p4495_p13 = pmov %p4494_p0 }
  0xae   : > { %p4496_p2 = pmov %p4494_p0 }
  0xaf   : > { %3714 = dma.done.wait (%p4495_p13), [#allocation16], 1024  }
  0xb0   : > { %3716 = vsyncadd (%p4496_p2), [#allocation16], 4294966272  ;;  %s4497_s1 = sld [smem:[#allocation27_spill]] }
  0xb6   : > { %p2762_p10 = scmp.ne.s32.totalorder %s4497_s1, 0 }
  0xb8   : > { %592 = sbr.rel (%p2762_p10) target bundleno = 193 (0xc1), region = 96 }
  0xbd   : > { %v2871_v0 = vld [vmem:[#allocation3] sm:$0xff]  }
  0xbe   : > { %v2872_v1 = vunpack.c.l.bf16 %v2871_v0  ;;  %v2873_v2 = vunpack.c.h.bf16 %v2871_v0 }
  0xc0   : > { %597 = vst [vmem:[#allocation2] sm:$0xff] %v2872_v1  ;;  %598 = vst [vmem:[#allocation2 + $0x8] sm:$0xff] %v2873_v2 }
  0xc1 PF: > { %v3288_v5 = vld [vmem:[%s4035_s11 + $0xac] ss:$12 sps:$4 sm:$0xff]   ;;  %v3290_v6 = vld [vmem:[%s4035_s11 + $0xa8] ss:$12 sps:$4 sm:$0xff]   ;;  %v3759_v7 = vmov 0.0   ;;  %v3760_v30 = vmov 0   ;;  %v627_v45 = vlaneseq }
  0xc2   : > { %2964 = vmatprep.subr.bf16.mxu1 %v3759_v7  ;;  %v3291_v8 = vld [vmem:[%s4035_s11 + $0xb0] ss:$12 sps:$4 sm:$0xff]   ;;  %812 = vmatprep.subr.bf16.mxu0 %v3288_v5  ;;  %v3292_v17 = vld [vmem:[%s4035_s11 + $0x94] ss:$12 sps:$4 sm:$0xff]   ;;  %v3295_v19 = vld [vmem:[%s4035_s11 + $0x98] ss:$12 sps:$4 sm:$0xff]  }
  0xc3   : > { %813 = vmatpush1.bf16.msra.mxu0 %v3290_v6  ;;  %2965 = vmatpush3.bf16.msra.mxu1 %v3291_v8  ;;  %v3294_v18 = vld [vmem:[%s4035_s11 + $0x90] ss:$12 sps:$4 sm:$0xff]   ;;  %v3298_v21 = vld [vmem:[%s4035_s11 + $0x78] ss:$12 sps:$4 sm:$0xff]   ;;  %v3299_v22 = vld [vmem:[%s4035_s11 + $0x80] ss:$12 sps:$4 sm:$0xff]  }
  0xc4   : > { %2966 = vmatprep.subr.bf16.mxu1 %v3759_v7  ;;  %814 = vmatprep.subr.bf16.mxu0 %v3292_v17  ;;  %v3296_v20 = vld [vmem:[%s4035_s11 + $0x7c] ss:$12 sps:$4 sm:$0xff]   ;;  %v3300_v23 = vld [vmem:[%s4035_s11 + $0x64] ss:$12 sps:$4 sm:$0xff]   ;;  %v3302_v24 = vld [vmem:[%s4035_s11 + $0x60] ss:$12 sps:$4 sm:$0xff]  }
  0xc5   : > { %v3303_v25 = vld [vmem:[%s4035_s11 + $0x68] ss:$12 sps:$4 sm:$0xff]   ;;  %v3304_v26 = vld [vmem:[%s4035_s11 + $0x4c] ss:$12 sps:$4 sm:$0xff]   ;;  %v3307_v28 = vld [vmem:[%s4035_s11 + $0x50] ss:$12 sps:$4 sm:$0xff]   ;;  %844 = vmatprep.mubr.bf16.mxu0 %v3760_v30 }
  0xc6   : > { %v3306_v27 = vld [vmem:[%s4035_s11 + $0x48] ss:$12 sps:$4 sm:$0xff]   ;;  %vm3761_vm0 = vmmov 0   ;;  %v3310_v31 = vld [vmem:[%s4035_s11 + $0x30] ss:$12 sps:$4 sm:$0xff]   ;;  %v4111_v46 = vshrl.u32 %v627_v45, 7 }
  0xc7   : > { %v602_v3 = vld [vmem:[#allocation2] sm:$0xff]  ;;  %v603_v4 = vld [vmem:[#allocation2 + $0x8] sm:$0xff]  ;;  %815 = vmatpush1.bf16.msra.mxu0 %v3294_v18  ;;  %2967 = vmatpush3.bf16.msra.mxu1 %v3295_v19  ;;  %v3311_v32 = vld [vmem:[%s4035_s11 + $0x38] ss:$12 sps:$4 sm:$0xff]   ;;  %vm904_vm1 = vcmask 261120   ;;  %vm1025_vm2 = vcmask 1043456  }
  0xc8   : > { %604 = vadd.xlane.f32.xlu0 %v602_v3  ;;  %2968 = vmatprep.subr.bf16.mxu1 %v3759_v7  ;;  %v3308_v29 = vld [vmem:[%s4035_s11 + $0x34] ss:$12 sps:$4 sm:$0xff]   ;;  %v3312_v33 = vld [vmem:[%s4035_s11 + $0x1c] ss:$12 sps:$4 sm:$0xff]   ;;  %v3314_v34 = vld [vmem:[%s4035_s11 + $0x18] ss:$12 sps:$4 sm:$0xff]  }
  0xc9   : > { %816 = vmatprep.subr.bf16.mxu0 %v3296_v20  ;;  %2980 = vmatprep.mubr.msk.bf16.mxu1 %vm3761_vm0, %v3759_v7  ;;  %v3315_v35 = vld [vmem:[%s4035_s11 + $0x20] ss:$12 sps:$4 sm:$0xff]   ;;  %v3316_v36 = vld [vmem:[%s4035_s11 + $0x4] ss:$12 sps:$4 sm:$0xff]   ;;  %v3319_v38 = vld [vmem:[%s4035_s11 + $0x8] ss:$12 sps:$4 sm:$0xff]  }
  0xca   : > { %v3318_v37 = vld [vmem:[%s4035_s11] ss:$12 sps:$4 sm:$0xff]   ;;  %v629_v47 = vsub.s32 2, %v4111_v46  ;;  %v635_v52 = vsub.s32 3, %v4111_v46  ;;  %v674_v62 = vsub.s32 0, %v4111_v46  ;;  %vm997_vm3 = vcmask 64512  }
  0xcb   : > { %817 = vmatpush1.bf16.msra.mxu0 %v3298_v21  ;;  %2969 = vmatpush3.bf16.msra.mxu1 %v3299_v22  ;;  %v4115_v48 = vld [vmem:[%s4051_s12] sm:$0xff]  ;;  %v4127_v61 = vld [vmem:[%s4051_s12 + $0x8] sm:$0xff]  ;;  %v601_v1 = vld [vmem:[%s4051_s12 + $0x10] sm:$0xff]  ;;  %s3762_s20 = smov 96   ;;  %s3763_s6 = smov 64   ;;  %vm1807_vm4 = vcmask 523264  }
  0xcc   : > { %606 = vadd.xlane.f32.xlu0 %v603_v4  ;;  %2970 = vmatprep.subr.bf16.mxu1 %v3759_v7  ;;  %v630_v51 = vrot.slane %v4115_v48, %v629_v47  ;;  %v636_v56 = vrot.slane %v4115_v48, %v635_v52  ;;  %v679_v63 = vrot.slane %v4127_v61, %v674_v62  ;;  %s3764_s28 = smov 32   ;;  %vm1810_vm5 = vcmask 785408   ;;  %s4498_s30 = sld [smem:[#allocation27_spill]] }
  0xcd   : > { %818 = vmatprep.subr.bf16.mxu0 %v3300_v23  ;;  %v683_v6 = vrot.slane %v601_v1, %v674_v62 }
  0xcf   : > { %819 = vmatpush1.bf16.msra.mxu0 %v3302_v24  ;;  %2971 = vmatpush3.bf16.msra.mxu1 %v3303_v25 }
  0xd0   : > { %820 = vmatprep.subr.bf16.mxu0 %v3304_v26  ;;  %2972 = vmatprep.subr.bf16.mxu1 %v3759_v7 }
  0xd2   : > { %p2843_p5 = scmp.ge.s32.totalorder %s4498_s30, 1 }
  0xd3   : > { %821 = vmatpush1.bf16.msra.mxu0 %v3306_v27  ;;  %2973 = vmatpush3.bf16.msra.mxu1 %v3307_v28 }
  0xd4   : > { %822 = vmatprep.subr.bf16.mxu0 %v3308_v29  ;;  %2974 = vmatprep.subr.bf16.mxu1 %v3759_v7 }
  0xd7   : > { %823 = vmatpush1.bf16.msra.mxu0 %v3310_v31  ;;  %2975 = vmatpush3.bf16.msra.mxu1 %v3311_v32 }
  0xd8   : > { %824 = vmatprep.subr.bf16.mxu0 %v3312_v33  ;;  %2976 = vmatprep.subr.bf16.mxu1 %v3759_v7 }
  0xdb   : > { %825 = vmatpush1.bf16.msra.mxu0 %v3314_v34  ;;  %2977 = vmatpush3.bf16.msra.mxu1 %v3315_v35 }
  0xdc   : > { %826 = vmatprep.subr.bf16.mxu0 %v3316_v36  ;;  %2978 = vmatprep.subr.bf16.mxu1 %v3759_v7 }
  0xdf   : > { %827 = vmatpush1.bf16.msra.mxu0 %v3318_v37  ;;  %2979 = vmatpush3.bf16.msra.mxu1 %v3319_v38 }
  0xe0   : > { %2984 = vmatprep.subr.bf16.mxu1 %v3759_v7  ;;  %3008 = vmatprep.subr.bf16.mxu0 %v3759_v7 }
 0x151   : > { %v605_v9 = vpop.xlane.xlu0 %604 }
 0x152   : > { %v609_v10 = vmul.f32 0.0078125, %v605_v9 }
 0x154   : > { %v4071_v11 = vsub.f32 %v602_v3, %v609_v10  ;;  %v675_v3 = vrot.slane %v4115_v48, %v674_v62 }
 0x155   : > { %v607_v12 = vpop.xlane.xlu0 %606 }
 0x156   : > { %v610_v13 = vmul.f32 0.0078125, %v607_v12  ;;  %v613_v14 = vmul.f32 %v4071_v11, %v4071_v11 }
 0x158   : > { %v4075_v15 = vsub.f32 %v603_v4, %v610_v13  ;;  %615 = vadd.xlane.f32.xlu1 %v613_v14 }
 0x15a   : > { %v614_v16 = vmul.f32 %v4075_v15, %v4075_v15 }
 0x15c   : > { %617 = vadd.xlane.f32.xlu1 %v614_v16 }
 0x1e1   : > { %v616_v39 = vpop.xlane.xlu1 %615 }
 0x1e2   : > { %v619_v40 = vmul.f32 0.0078125, %v616_v39 }
 0x1e4   : > { %v621_v41 = vadd.f32 1e-05, %v619_v40 }
 0x1e5   : > { %v618_v42 = vpop.xlane.xlu1 %617 }
 0x1e6   : > { %3368 = vrsqrt.f32 %v621_v41  ;;  %v620_v43 = vmul.f32 0.0078125, %v618_v42 }
 0x1e8   : > { %v622_v44 = vadd.f32 1e-05, %v620_v43 }
 0x1ea   : > { %3370 = vrsqrt.f32 %v622_v44 }
 0x1f3   : > { %v3369_v49 = vpop.eup %3368 }
 0x1f4   : > { %v625_v50 = vmul.f32 %v3369_v49, %v4071_v11 }
 0x1f6   : > { %v631_v55 = vmul.f32 %v630_v51, %v625_v50 }
 0x1f7   : > { %v3371_v53 = vpop.eup %3370 }
 0x1f8   : > { %v626_v54 = vmul.f32 %v3371_v53, %v4075_v15  ;;  %v637_v58 = vadd.f32 %v636_v56, %v631_v55 }
 0x1fa   : > { %v632_v57 = vmul.f32 %v630_v51, %v626_v54 }
 0x1fc   : > { %v638_v59 = vadd.f32 %v636_v56, %v632_v57 }
 0x1fe   : > { %v639_v60 = vpack.c.bf16 %v638_v59, %v637_v58 }
 0x200   : > { %845 = vmatmul.mubr.bf16.vlgmr.msra.gmra.mxu0 %v639_v60  ;;  %2981 = vmatmul.mubr.bf16.vlgmr.msra.gmra.mxu1 %v639_v60 }
 0x201   : > { %2986 = vmatprep.mubr.msk.bf16.mxu1 %vm3761_vm0, %v3759_v7  ;;  %3010 = vmatprep.mubr.msk.bf16.mxu0 %vm3761_vm0, %v3759_v7 }
 0x2c0   : > { %v846_v0 = vpop.f32.mrf.mxu0  ;;  %v889_v2 = vpop.f32.mrf.mxu1 }
 0x2c1   : > { %v847_v11 = vadd.f32 %v846_v0, %v675_v3  ;;  %v890_v22 = vadd.f32 %v889_v2, %v683_v6 }
 0x2c2   : > { %v848_v4 = vpop.f32.mrf.mxu0  ;;  %v2982_v5 = vpop.f32.mrf.mxu1 }
 0x2c3   : > { %v849_v8 = vadd.f32 %v848_v4, %v679_v63  ;;  %v896_v18 = vmul.f32 0.17677669, %v847_v11  ;;  %v4151_v25 = vpack.c.bf16 %v890_v22, %v890_v22 }
 0x2c4   : > { %v850_v9 = vpop.f32.mrf.mxu0  ;;  %v892_v10 = vpop.f32.mrf.mxu1 }
 0x2c5   : > { %v4133_v12 = vpack.c.bf16 %v849_v8, %v849_v8  ;;  %v4135_v13 = vadd.f32 %v892_v10, %v683_v6  ;;  %v4142_v20 = vpack.c.bf16 %v896_v18, %v896_v18  ;;  %v851_v21 = vadd.f32 %v850_v9, %v675_v3 }
 0x2c6   : > { %v852_v14 = vpop.f32.mrf.mxu0  ;;  %v2983_v15 = vpop.f32.mrf.mxu1  ;;  %v1027_v27 = vsel %vm1025_vm2, %v4151_v25, 0 }
 0x2c7   : > { %v853_v16 = vadd.f32 %v852_v14, %v679_v63  ;;  %v909_v17 = vsel %vm904_vm1, %v4133_v12, 0  ;;  %v897_v24 = vmul.f32 0.17677669, %v851_v21  ;;  %v4181_v58 = vpack.c.bf16 %v4135_v13, %v4135_v13 }
 0x2c8   : > { %2985 = vmatpush3.bf16.xpose.msra.mxu1 %v909_v17 }
 0x2c9   : > { %2990 = vmatprep.subr.bf16.mxu1 %v3759_v7  ;;  %v4140_v19 = vpack.c.bf16 %v853_v16, %v853_v16  ;;  %v4153_v26 = vpack.c.bf16 %v897_v24, %v897_v24  ;;  %v1073_v62 = vsel %vm1025_vm2, %v4181_v58, 0 }
 0x2cb   : > { %v955_v23 = vsel %vm904_vm1, %v4140_v19, 0 }
 0x2cf   : > { %2987 = vmatmul.mubr.msk.bf16.vlgmr.msra.gmra.mxu1 %vm904_vm1, %v4142_v20 }
 0x2d0   : > { %2991 = vmatpush3.bf16.xpose.msra.mxu1 %v955_v23  ;;  %2992 = vmatprep.mubr.msk.bf16.mxu1 %vm3761_vm0, %v3759_v7 }
 0x2d1   : > { %2996 = vmatprep.subr.bf16.mxu1 %v3759_v7 }
 0x2d7   : > { %2993 = vmatmul.mubr.msk.bf16.vlgmr.msra.gmra.mxu1 %vm904_vm1, %v4153_v26 }
 0x2d8   : > { %2997 = vmatpush3.bf16.msra.mxu1 %v1027_v27  ;;  %2998 = vmatprep.mubr.msk.bf16.mxu1 %vm3761_vm0, %v3759_v7 }
 0x2d9   : > { %3002 = vmatprep.subr.bf16.mxu1 %v3759_v7 }
 0x38f   : > { %v945_v28 = vpop.f32.mrf.mxu1 }
 0x390   : > { %v998_v29 = vsel %vm997_vm3, %v945_v28, -inf }
 0x391   : > { %999 = vmax.xlane.f32.xlu0 %v998_v29  ;;  %v2988_v31 = vpop.f32.mrf.mxu1 }
 0x393   : > { %v948_v32 = vpop.f32.mrf.mxu1 }
 0x395   : > { %v2989_v33 = vpop.f32.mrf.mxu1 }
 0x397   : > { %v991_v34 = vpop.f32.mrf.mxu1 }
 0x398   : > { %v1001_v35 = vsel %vm997_vm3, %v991_v34, -inf }
 0x399   : > { %1002 = vmax.xlane.f32.xlu1 %v1001_v35  ;;  %v2994_v36 = vpop.f32.mrf.mxu1 }
 0x39b   : > { %v994_v37 = vpop.f32.mrf.mxu1 }
 0x39d   : > { %v2995_v38 = vpop.f32.mrf.mxu1 }
 0x3aa   : > { %1171 = vrot.lane.b32.xlu1 %v4140_v19, %s3762_s20 }
 0x41a   : > { %v1000_v39 = vpop.xlane.xlu0 %999 }
 0x41b   : > { %v1004_v40 = vsub.f32 %v945_v28, %v1000_v39 }
 0x41d   : > { %v1006_v41 = vmul.f32 1.442695, %v1004_v40 }
 0x41f   : > { %3372 = vpow2.f32 %v1006_v41 }
 0x422   : > { %v1003_v42 = vpop.xlane.xlu1 %1002 }
 0x423   : > { %v1005_v43 = vsub.f32 %v991_v34, %v1003_v42 }
 0x425   : > { %v1008_v44 = vmul.f32 1.442695, %v1005_v43 }
 0x426   : > { %v1172_v52 = vpop.permute.xlu1 %1171 }
 0x427   : > { %3374 = vpow2.f32 %v1008_v44  ;;  %v1177_v2 = vsel %vm904_vm1, %v1172_v52, 0 }
 0x42c   : > { %v3373_v45 = vpop.eup %3372 }
 0x42d   : > { %v1010_v47 = vsel %vm997_vm3, %v3373_v45, 0.0 }
 0x42e   : > { %1011 = vadd.xlane.f32.xlu0 %v1010_v47 }
 0x434   : > { %v3375_v49 = vpop.eup %3374 }
 0x435   : > { %v1013_v50 = vsel %vm997_vm3, %v3375_v49, 0.0 }
 0x436   : > { %1014 = vadd.xlane.f32.xlu1 %v1013_v50 }
 0x444   : > { %1119 = vrot.lane.b32.xlu0 %v4133_v12, %s3762_s20 }
 0x447   : > { %1116 = vrot.lane.b32.xlu1 %v4142_v20, %s3762_s20 }
 0x44b   : > { %1168 = vrot.lane.b32.xlu1 %v4153_v26, %s3762_s20 }
 0x4b7   : > { %v1012_v51 = vpop.xlane.xlu0 %1011 }
 0x4b8   : > { %3376 = vrcp.f32 %v1012_v51 }
 0x4bb   : > { %v1120_v53 = vpop.permute.xlu0 %1119 }
 0x4bc   : > { %v1125_v54 = vsel %vm904_vm1, %v1120_v53, 0 }
 0x4bd   : > { %3009 = vmatpush3.bf16.xpose.msra.mxu0 %v1125_v54 }
 0x4be   : > { %3020 = vmatprep.subr.bf16.mxu0 %v3759_v7 }
 0x4bf   : > { %v1015_v55 = vpop.xlane.xlu1 %1014 }
 0x4c0   : > { %3378 = vrcp.f32 %v1015_v55 }
 0x4c3   : > { %v1117_v56 = vpop.permute.xlu1 %1116 }
 0x4c4   : > { %3011 = vmatmul.mubr.msk.bf16.vlgmr.msra.gmra.mxu0 %vm904_vm1, %v1117_v56 }
 0x4c5   : > { %v3377_v57 = vpop.eup %3376  ;;  %3022 = vmatprep.mubr.msk.bf16.mxu0 %vm3761_vm0, %v3759_v7 }
 0x4c6   : > { %v1018_v59 = vmul.f32 %v3377_v57, %v3373_v45 }
 0x4c7   : > { %v1169_v3 = vpop.permute.xlu1 %1168 }
 0x4c8   : > { %v1020_v60 = vpack.c.bf16 %v1018_v59, %v1018_v59 }
 0x4ca   : > { %2999 = vmatmul.mubr.msk.bf16.vlgmr.msra.gmra.mxu1 %vm997_vm3, %v1020_v60 }
 0x4cb   : > { %3003 = vmatpush3.bf16.msra.mxu1 %v1073_v62  ;;  %3004 = vmatprep.mubr.msk.bf16.mxu1 %vm3761_vm0, %v3759_v7 }
 0x4cc   : > { %3014 = vmatprep.subr.bf16.mxu1 %v3759_v7 }
 0x4cd   : > { %v3379_v63 = vpop.eup %3378 }
 0x4ce   : > { %v1019_v0 = vmul.f32 %v3379_v63, %v3375_v49 }
 0x4d0   : > { %v1021_v1 = vpack.c.bf16 %v1019_v0, %v1019_v0 }
 0x4d2   : > { %3005 = vmatmul.mubr.msk.bf16.vlgmr.msra.gmra.mxu1 %vm997_vm3, %v1021_v1 }
 0x4d3   : > { %3015 = vmatpush3.bf16.xpose.msra.mxu1 %v1177_v2  ;;  %3016 = vmatprep.mubr.msk.bf16.mxu1 %vm3761_vm0, %v3759_v7 }
 0x4d4   : > { %3026 = vmatprep.subr.bf16.mxu1 %v3759_v7 }
 0x4da   : > { %3017 = vmatmul.mubr.msk.bf16.vlgmr.msra.gmra.mxu1 %vm904_vm1, %v1169_v3 }
 0x4db   : > { %3028 = vmatprep.mubr.msk.bf16.mxu1 %vm3761_vm0, %v3759_v7 }
 0x584   : > { %v1161_v4 = vpop.f32.mrf.mxu0 }
 0x585   : > { %v1219_v5 = vsel %vm997_vm3, %v1161_v4, -inf }
 0x586   : > { %1220 = vmax.xlane.f32.xlu0 %v1219_v5  ;;  %v3012_v6 = vpop.f32.mrf.mxu0 }
 0x588   : > { %v1164_v8 = vpop.f32.mrf.mxu0 }
 0x58a   : > { %v4198_v9 = vpop.f32.mrf.mxu1  ;;  %v3013_v10 = vpop.f32.mrf.mxu0 }
 0x58c   : > { %v3000_v11 = vpop.f32.mrf.mxu1 }
 0x58e   : > { %v1066_v13 = vpop.f32.mrf.mxu1 }
 0x590   : > { %v3001_v14 = vpop.f32.mrf.mxu1 }
 0x592   : > { %v4200_v15 = vpop.f32.mrf.mxu1 }
 0x594   : > { %v3006_v16 = vpop.f32.mrf.mxu1 }
 0x596   : > { %v1112_v17 = vpop.f32.mrf.mxu1 }
 0x598   : > { %v3007_v18 = vpop.f32.mrf.mxu1 }
 0x59a   : > { %v1213_v21 = vpop.f32.mrf.mxu1 }
 0x59b   : > { %v1222_v22 = vsel %vm997_vm3, %v1213_v21, -inf }
 0x59c   : > { %1223 = vmax.xlane.f32.xlu1 %v1222_v22  ;;  %v3018_v23 = vpop.f32.mrf.mxu1 }
 0x59e   : > { %v1216_v24 = vpop.f32.mrf.mxu1 }
 0x5a0   : > { %v3019_v27 = vpop.f32.mrf.mxu1 }
 0x5ad   : > { %1293 = vrot.lane.b32.xlu1 %v4181_v58, %s3762_s20 }
 0x5b1   : > { %1343 = vrot.lane.b32.xlu1 %v4133_v12, %s3763_s6 }
 0x5b5   : > { %1393 = vrot.lane.b32.xlu1 %v4140_v19, %s3763_s6 }
 0x5b9   : > { %1391 = vrot.lane.b32.xlu1 %v4153_v26, %s3763_s6 }
 0x60f   : > { %v1221_v28 = vpop.xlane.xlu0 %1220 }
 0x610   : > { %v1225_v29 = vsub.f32 %v1161_v4, %v1221_v28 }
 0x612   : > { %v1227_v31 = vmul.f32 1.442695, %v1225_v29 }
 0x614   : > { %3380 = vpow2.f32 %v1227_v31 }
 0x621   : > { %v3381_v32 = vpop.eup %3380 }
 0x622   : > { %v1231_v33 = vsel %vm997_vm3, %v3381_v32, 0.0 }
 0x623   : > { %1232 = vadd.xlane.f32.xlu0 %v1231_v33 }
 0x625   : > { %v1224_v34 = vpop.xlane.xlu1 %1223 }
 0x626   : > { %v1226_v35 = vsub.f32 %v1213_v21, %v1224_v34 }
 0x628   : > { %v1229_v36 = vmul.f32 1.442695, %v1226_v35 }
 0x629   : > { %v1294_v37 = vpop.permute.xlu1 %1293 }
 0x62a   : > { %3382 = vpow2.f32 %v1229_v36  ;;  %v1299_v38 = vsel %vm1025_vm2, %v1294_v37, 0 }
 0x62b   : > { %3027 = vmatpush3.bf16.msra.mxu1 %v1299_v38 }
 0x62c   : > { %3038 = vmatprep.subr.bf16.mxu1 %v3759_v7 }
 0x62d   : > { %v1344_v49 = vpop.permute.xlu1 %1343 }
 0x62e   : > { %v1349_v51 = vsel %vm904_vm1, %v1344_v49, 0 }
 0x631   : > { %v1394_v54 = vpop.permute.xlu1 %1393 }
 0x632   : > { %v1399_v57 = vsel %vm904_vm1, %v1394_v54, 0 }
 0x635   : > { %v1392_v59 = vpop.permute.xlu1 %1391 }
 0x637   : > { %v3383_v39 = vpop.eup %3382 }
 0x638   : > { %v1234_v40 = vsel %vm997_vm3, %v3383_v39, 0.0 }
 0x639   : > { %1235 = vadd.xlane.f32.xlu0 %v1234_v40 }
 0x64f   : > { %1244 = vrot.lane.b32.xlu0 %v4151_v25, %s3762_s20 }
 0x653   : > { %1341 = vrot.lane.b32.xlu0 %v4142_v20, %s3763_s6 }
 0x6ac   : > { %v1233_v41 = vpop.xlane.xlu0 %1232 }
 0x6ad   : > { %3384 = vrcp.f32 %v1233_v41 }
 0x6ba   : > { %v3385_v42 = vpop.eup %3384 }
 0x6bb   : > { %v1239_v44 = vmul.f32 %v3385_v42, %v3381_v32 }
 0x6bd   : > { %v1241_v50 = vpack.c.bf16 %v1239_v44, %v1239_v44 }
 0x6c2   : > { %v1236_v43 = vpop.xlane.xlu0 %1235 }
 0x6c3   : > { %3386 = vrcp.f32 %v1236_v43 }
 0x6c6   : > { %v1245_v45 = vpop.permute.xlu0 %1244 }
 0x6c7   : > { %v1250_v47 = vsel %vm1025_vm2, %v1245_v45, 0 }
 0x6c8   : > { %3021 = vmatpush3.bf16.msra.mxu0 %v1250_v47 }
 0x6c9   : > { %3032 = vmatprep.subr.bf16.mxu0 %v3759_v7 }
 0x6ca   : > { %v1342_v55 = vpop.permute.xlu0 %1341 }
 0x6cb   : > { %3023 = vmatmul.mubr.msk.bf16.vlgmr.msra.gmra.mxu0 %vm997_vm3, %v1241_v50 }
 0x6cc   : > { %3033 = vmatpush3.bf16.xpose.msra.mxu0 %v1349_v51  ;;  %3034 = vmatprep.mubr.msk.bf16.mxu0 %vm3761_vm0, %v3759_v7 }
 0x6cd   : > { %3044 = vmatprep.subr.bf16.mxu0 %v3759_v7 }
 0x6d0   : > { %v3387_v52 = vpop.eup %3386 }
 0x6d1   : > { %v1240_v53 = vmul.f32 %v3387_v52, %v3383_v39 }
 0x6d3   : > { %3035 = vmatmul.mubr.msk.bf16.vlgmr.msra.gmra.mxu0 %vm904_vm1, %v1342_v55  ;;  %v1242_v56 = vpack.c.bf16 %v1240_v53, %v1240_v53 }
 0x6d4   : > { %3046 = vmatprep.mubr.msk.bf16.mxu0 %vm3761_vm0, %v3759_v7 }
 0x6d5   : > { %3029 = vmatmul.mubr.msk.bf16.vlgmr.msra.gmra.mxu1 %vm997_vm3, %v1242_v56 }
 0x6d6   : > { %3039 = vmatpush3.bf16.xpose.msra.mxu1 %v1399_v57  ;;  %3040 = vmatprep.mubr.msk.bf16.mxu1 %vm3761_vm0, %v3759_v7 }
 0x6d7   : > { %3050 = vmatprep.subr.bf16.mxu1 %v3759_v7 }
 0x6dd   : > { %3041 = vmatmul.mubr.msk.bf16.vlgmr.msra.gmra.mxu1 %vm904_vm1, %v1392_v59 }
 0x6de   : > { %3052 = vmatprep.mubr.msk.bf16.mxu1 %vm3761_vm0, %v3759_v7 }
 0x78b   : > { %v4237_v60 = vpop.f32.mrf.mxu0 }
 0x78d   : > { %v3024_v62 = vpop.f32.mrf.mxu0 }
 0x78f   : > { %v1289_v63 = vpop.f32.mrf.mxu0 }
 0x791   : > { %v3025_v0 = vpop.f32.mrf.mxu0 }
 0x793   : > { %v1385_v1 = vpop.f32.mrf.mxu0 }
 0x794   : > { %v1441_v2 = vsel %vm997_vm3, %v1385_v1, -inf }
 0x795   : > { %1442 = vmax.xlane.f32.xlu0 %v1441_v2  ;;  %v4240_v3 = vpop.f32.mrf.mxu1  ;;  %v3036_v4 = vpop.f32.mrf.mxu0 }
 0x796   : > { %v3273_v5 = vpack.i.bf16 %v4240_v3, %v4237_v60 }
 0x797   : > { %v3030_v6 = vpop.f32.mrf.mxu1  ;;  %v1388_v8 = vpop.f32.mrf.mxu0 }
 0x799   : > { %v1338_v10 = vpop.f32.mrf.mxu1  ;;  %v3037_v11 = vpop.f32.mrf.mxu0 }
 0x79b   : > { %v3031_v13 = vpop.f32.mrf.mxu1 }
 0x79d   : > { %v1435_v14 = vpop.f32.mrf.mxu1 }
 0x79e   : > { %v1444_v16 = vsel %vm997_vm3, %v1435_v14, -inf }
 0x79f   : > { %1445 = vmax.xlane.f32.xlu1 %v1444_v16  ;;  %v3042_v17 = vpop.f32.mrf.mxu1 }
 0x7a1   : > { %v1438_v18 = vpop.f32.mrf.mxu1 }
 0x7a3   : > { %v3043_v21 = vpop.f32.mrf.mxu1 }
 0x7b0   : > { %1513 = vrot.lane.b32.xlu1 %v4181_v58, %s3763_s6 }
 0x7b4   : > { %1563 = vrot.lane.b32.xlu1 %v4133_v12, %s3764_s28 }
 0x7b8   : > { %1613 = vrot.lane.b32.xlu1 %v4140_v19, %s3764_s28 }
 0x7bc   : > { %1611 = vrot.lane.b32.xlu1 %v4153_v26, %s3764_s28 }
 0x81e   : > { %v1443_v22 = vpop.xlane.xlu0 %1442 }
 0x81f   : > { %v1447_v23 = vsub.f32 %v1385_v1, %v1443_v22 }
 0x821   : > { %v1449_v24 = vmul.f32 1.442695, %v1447_v23 }
 0x823   : > { %3388 = vpow2.f32 %v1449_v24 }
 0x828   : > { %v1446_v27 = vpop.xlane.xlu1 %1445 }
 0x829   : > { %v1448_v28 = vsub.f32 %v1435_v14, %v1446_v27 }
 0x82b   : > { %v1451_v29 = vmul.f32 1.442695, %v1448_v28 }
 0x82c   : > { %v1514_v31 = vpop.permute.xlu1 %1513 }
 0x82d   : > { %3390 = vpow2.f32 %v1451_v29  ;;  %v1519_v32 = vsel %vm1025_vm2, %v1514_v31, 0 }
 0x82e   : > { %3051 = vmatpush3.bf16.msra.mxu1 %v1519_v32 }
 0x82f   : > { %3062 = vmatprep.subr.bf16.mxu1 %v3759_v7 }
 0x830   : > { %v3389_v12 = vpop.eup %3388  ;;  %v1564_v40 = vpop.permute.xlu1 %1563 }
 0x831   : > { %v1453_v19 = vsel %vm997_vm3, %v3389_v12, 0.0  ;;  %v1569_v42 = vsel %vm904_vm1, %v1564_v40, 0 }
 0x832   : > { %1454 = vadd.xlane.f32.xlu0 %v1453_v19 }
 0x834   : > { %v1614_v44 = vpop.permute.xlu1 %1613 }
 0x835   : > { %v1619_v49 = vsel %vm904_vm1, %v1614_v44, 0 }
 0x838   : > { %v1612_v50 = vpop.permute.xlu1 %1611 }
 0x83a   : > { %v3391_v33 = vpop.eup %3390 }
 0x83b   : > { %v1456_v26 = vsel %vm997_vm3, %v3391_v33, 0.0 }
 0x83c   : > { %1457 = vadd.xlane.f32.xlu0 %v1456_v26 }
 0x852   : > { %1465 = vrot.lane.b32.xlu0 %v4151_v25, %s3763_s6 }
 0x856   : > { %1561 = vrot.lane.b32.xlu0 %v4142_v20, %s3764_s28 }
 0x8bb   : > { %v1455_v34 = vpop.xlane.xlu0 %1454 }
 0x8bc   : > { %3392 = vrcp.f32 %v1455_v34  ;;  %v3320_v34 = vld [vmem:[%s4041_s13 + $0x38] sm:$0xff]  }
 0x8c5   : > { %v1458_v35 = vpop.xlane.xlu0 %1457 }
 0x8c6   : > { %3394 = vrcp.f32 %v1458_v35  ;;  %v3321_v35 = vld [vmem:[%s4041_s13 + $0x30] sm:$0xff]  }
 0x8c9   : > { %v3393_v36 = vpop.eup %3392  ;;  %v1466_v37 = vpop.permute.xlu0 %1465 }
 0x8ca   : > { %v1471_v38 = vsel %vm1025_vm2, %v1466_v37, 0  ;;  %v1461_v39 = vmul.f32 %v3393_v36, %v3389_v12  ;;  %v3322_v36 = vld [vmem:[%s4041_s13 + $0x28] sm:$0xff]   ;;  %v3323_v37 = vld [vmem:[%s4041_s13 + $0x20] sm:$0xff]  }
 0x8cb   : > { %3045 = vmatpush3.bf16.msra.mxu0 %v1471_v38  ;;  %v3324_v38 = vld [vmem:[%s4041_s13 + $0x18] sm:$0xff]  }
 0x8cc   : > { %v1463_v41 = vpack.c.bf16 %v1461_v39, %v1461_v39  ;;  %3056 = vmatprep.subr.bf16.mxu0 %v3759_v7  ;;  %v3326_v39 = vld [vmem:[%s4041_s13 + $0x8] sm:$0xff]  }
 0x8cd   : > { %v1562_v45 = vpop.permute.xlu0 %1561 }
 0x8ce   : > { %3047 = vmatmul.mubr.msk.bf16.vlgmr.msra.gmra.mxu0 %vm997_vm3, %v1463_v41  ;;  %v3327_v41 = vld [vmem:[%s4041_s13] sm:$0xff]  }
 0x8cf   : > { %3057 = vmatpush3.bf16.xpose.msra.mxu0 %v1569_v42  ;;  %3058 = vmatprep.mubr.msk.bf16.mxu0 %vm3761_vm0, %v3759_v7 }
 0x8d0   : > { %3068 = vmatprep.subr.bf16.mxu0 %v3759_v7 }
 0x8d3   : > { %v3395_v20 = vpop.eup %3394 }
 0x8d4   : > { %v1462_v43 = vmul.f32 %v3395_v20, %v3391_v33 }
 0x8d6   : > { %3059 = vmatmul.mubr.msk.bf16.vlgmr.msra.gmra.mxu0 %vm904_vm1, %v1562_v45  ;;  %v1464_v47 = vpack.c.bf16 %v1462_v43, %v1462_v43 }
 0x8d7   : > { %3070 = vmatprep.mubr.msk.bf16.mxu0 %vm3761_vm0, %v3759_v7 }
 0x8d8   : > { %3053 = vmatmul.mubr.msk.bf16.vlgmr.msra.gmra.mxu1 %vm997_vm3, %v1464_v47 }
 0x8d9   : > { %3063 = vmatpush3.bf16.xpose.msra.mxu1 %v1619_v49  ;;  %3064 = vmatprep.mubr.msk.bf16.mxu1 %vm3761_vm0, %v3759_v7 }
 0x8da   : > { %3074 = vmatprep.subr.bf16.mxu1 %v3759_v7 }
 0x8e0   : > { %3065 = vmatmul.mubr.msk.bf16.vlgmr.msra.gmra.mxu1 %vm904_vm1, %v1612_v50 }
 0x8e1   : > { %3076 = vmatprep.mubr.msk.bf16.mxu1 %vm3761_vm0, %v3759_v7 }
 0x98e   : > { %v1507_v51 = vpop.f32.mrf.mxu0 }
 0x990   : > { %v3048_v52 = vpop.f32.mrf.mxu0 }
 0x992   : > { %v1510_v53 = vpop.f32.mrf.mxu0 }
 0x994   : > { %v3049_v54 = vpop.f32.mrf.mxu0 }
 0x996   : > { %v1605_v55 = vpop.f32.mrf.mxu0 }
 0x997   : > { %v1661_v56 = vsel %vm997_vm3, %v1605_v55, -inf }
 0x998   : > { %1662 = vmax.xlane.f32.xlu0 %v1661_v56  ;;  %v1555_v57 = vpop.f32.mrf.mxu1  ;;  %v3060_v59 = vpop.f32.mrf.mxu0 }
 0x999   : > { %v3278_v13 = vpack.i.bf16 %v1555_v57, %v1507_v51 }
 0x99a   : > { %v3054_v62 = vpop.f32.mrf.mxu1  ;;  %v1608_v63 = vpop.f32.mrf.mxu0 }
 0x99c   : > { %v1558_v0 = vpop.f32.mrf.mxu1  ;;  %v3061_v1 = vpop.f32.mrf.mxu0 }
 0x99e   : > { %v3055_v2 = vpop.f32.mrf.mxu1 }
 0x9a0   : > { %v1655_v4 = vpop.f32.mrf.mxu1 }
 0x9a1   : > { %v1664_v6 = vsel %vm997_vm3, %v1655_v4, -inf }
 0x9a2   : > { %1665 = vmax.xlane.f32.xlu1 %v1664_v6  ;;  %v3066_v8 = vpop.f32.mrf.mxu1 }
 0x9a3   : > { %v1832_v8 = vsub.s32 1, %v4111_v46 }
 0x9a4   : > { %v1658_v10 = vpop.f32.mrf.mxu1 }
 0x9a5   : > { %v1833_v10 = vrot.slane %v4115_v48, %v1832_v8 }
 0x9a6   : > { %v3067_v11 = vpop.f32.mrf.mxu1 }
 0x9b3   : > { %1733 = vrot.lane.b32.xlu1 %v4181_v58, %s3764_s28 }
 0x9b7   : > { %3274 = vrot.lane.b32.xlu1 %v3273_v5, %s3764_s28 }
 0x9bb   : > { %3279 = vrot.lane.b32.xlu1 %v3278_v13, %s3763_s6 }
 0xa21   : > { %v1663_v14 = vpop.xlane.xlu0 %1662 }
 0xa22   : > { %v1667_v16 = vsub.f32 %v1605_v55, %v1663_v14  ;;  %v3408_v14 = vld [vmem:[#allocation2] sm:$0xff] }
 0xa24   : > { %v1669_v17 = vmul.f32 1.442695, %v1667_v16 }
 0xa26   : > { %3396 = vpow2.f32 %v1669_v17 }
 0xa2b   : > { %v1666_v18 = vpop.xlane.xlu1 %1665 }
 0xa2c   : > { %v1668_v21 = vsub.f32 %v1655_v4, %v1666_v18 }
 0xa2e   : > { %v1671_v22 = vmul.f32 1.442695, %v1668_v21  ;;  %v3409_v21 = vld [vmem:[#allocation2 + $0x8] sm:$0xff] }
 0xa2f   : > { %v1734_v23 = vpop.permute.xlu1 %1733 }
 0xa30   : > { %3398 = vpow2.f32 %v1671_v22  ;;  %v1739_v24 = vsel %vm1025_vm2, %v1734_v23, 0  ;;  %v3328_v23 = vld [vmem:[%s4043_s14 + $0x70] ss:$8 sps:$4 sm:$0xff]  }
 0xa31   : > { %3075 = vmatpush3.bf16.msra.mxu1 %v1739_v24  ;;  %v3330_v24 = vld [vmem:[%s4043_s14 + $0x74] ss:$8 sps:$4 sm:$0xff]  }
 0xa32   : > { %2064 = vmatprep.subr.bf16.mxu1 %v3330_v24 }
 0xa33   : > { %v3397_v58 = vpop.eup %3396  ;;  %v3275_v51 = vpop.permute.xlu1 %3274 }
 0xa34   : > { %v1673_v27 = vsel %vm997_vm3, %v3397_v58, 0.0  ;;  %v3277_v53 = vunpack.i.h.bf16 %v3275_v51  ;;  %v3276_v54 = vunpack.i.l.bf16 %v3275_v51  ;;  %v3361_v51 = vld [vmem:[%s4049_s22 + $0x18] sm:$0xff]  }
 0xa35   : > { %1674 = vadd.xlane.f32.xlu0 %v1673_v27 }
 0xa36   : > { %v1806_v57 = vsel %vm904_vm1, %v4200_v15, %v3277_v53  ;;  %v1805_v59 = vsel %vm904_vm1, %v4198_v9, %v3276_v54 }
 0xa37   : > { %v3280_v52 = vpop.permute.xlu1 %3279 }
 0xa38   : > { %v3282_v55 = vunpack.i.h.bf16 %v3280_v52  ;;  %v3281_v56 = vunpack.i.l.bf16 %v3280_v52 }
 0xa3a   : > { %v1808_v0 = vsel %vm1807_vm4, %v1805_v59, %v3281_v56  ;;  %v1809_v1 = vsel %vm1807_vm4, %v1806_v57, %v3282_v55  ;;  %v1949_v57 = vsub.s32 4, %v4111_v46 }
 0xa3d   : > { %v3399_v60 = vpop.eup %3398 }
 0xa3e   : > { %v1676_v3 = vsel %vm997_vm3, %v3399_v60, 0.0 }
 0xa3f   : > { %1677 = vadd.xlane.f32.xlu0 %v1676_v3 }
 0xa55   : > { %1685 = vrot.lane.b32.xlu0 %v4151_v25, %s3764_s28 }
 0xabe   : > { %v1675_v5 = vpop.xlane.xlu0 %1674 }
 0xabf   : > { %3400 = vrcp.f32 %v1675_v5 }
 0xac8   : > { %v1678_v28 = vpop.xlane.xlu0 %1677 }
 0xac9   : > { %3402 = vrcp.f32 %v1678_v28 }
 0xacc   : > { %v3401_v29 = vpop.eup %3400  ;;  %v1686_v31 = vpop.permute.xlu0 %1685 }
 0xacd   : > { %v1691_v32 = vsel %vm1025_vm2, %v1686_v31, 0  ;;  %v1681_v12 = vmul.f32 %v3401_v29, %v3397_v58 }
 0xace   : > { %3069 = vmatpush3.bf16.msra.mxu0 %v1691_v32  ;;  %v3333_v32 = vld [vmem:[%s4043_s14 + $0x64] ss:$8 sps:$4 sm:$0xff]  }
 0xacf   : > { %v1683_v19 = vpack.c.bf16 %v1681_v12, %v1681_v12  ;;  %3080 = vmatprep.subr.bf16.mxu0 %v3759_v7  ;;  %v3331_v12 = vld [vmem:[%s4043_s14 + $0x60] ss:$8 sps:$4 sm:$0xff]  }
 0xad1   : > { %3071 = vmatmul.mubr.msk.bf16.vlgmr.msra.gmra.mxu0 %vm997_vm3, %v1683_v19  ;;  %v3336_v19 = vld [vmem:[%s4043_s14 + $0x54] ss:$8 sps:$4 sm:$0xff]  }
 0xad2   : > { %3096 = vmatprep.mubr.msk.bf16.mxu0 %vm3761_vm0, %v3759_v7  ;;  %3081 = vmatpush3.bf16.msra.mxu0 %v3320_v34  ;;  %v3342_v34 = vld [vmem:[%s4043_s14 + $0x34] ss:$8 sps:$4 sm:$0xff]  }
 0xad3   : > { %3082 = vmatprep.subr.bf16.mxu0 %v3759_v7 }
 0xad6   : > { %v3403_v25 = vpop.eup %3402  ;;  %3083 = vmatpush3.bf16.msra.mxu0 %v3321_v35  ;;  %v3340_v35 = vld [vmem:[%s4043_s14 + $0x30] ss:$8 sps:$4 sm:$0xff]  }
 0xad7   : > { %v1682_v33 = vmul.f32 %v3403_v25, %v3399_v60  ;;  %3084 = vmatprep.subr.bf16.mxu0 %v3759_v7  ;;  %v3334_v25 = vld [vmem:[%s4043_s14 + $0x50] ss:$8 sps:$4 sm:$0xff]  }
 0xad9   : > { %v1684_v26 = vpack.c.bf16 %v1682_v33, %v1682_v33  ;;  %v3337_v33 = vld [vmem:[%s4043_s14 + $0x40] ss:$8 sps:$4 sm:$0xff]  }
 0xada   : > { %3085 = vmatpush3.bf16.msra.mxu0 %v3322_v36  ;;  %v3345_v36 = vld [vmem:[%s4043_s14 + $0x24] ss:$8 sps:$4 sm:$0xff]  }
 0xadb   : > { %3077 = vmatmul.mubr.msk.bf16.vlgmr.msra.gmra.mxu1 %vm997_vm3, %v1684_v26  ;;  %3086 = vmatprep.subr.bf16.mxu0 %v3759_v7  ;;  %v3339_v26 = vld [vmem:[%s4043_s14 + $0x44] ss:$8 sps:$4 sm:$0xff]  }
 0xadc   : > { %2096 = vmatprep.mubr.bf16.mxu1 %v3760_v30  ;;  %v3325_v30 = vld [vmem:[%s4041_s13 + $0x10] sm:$0xff]   ;;  %2065 = vmatpush1.bf16.msra.mxu1 %v3328_v23  ;;  %v1978_v23 = vsub.s32 6, %v4111_v46 }
 0xadd   : > { %2066 = vmatprep.subr.bf16.mxu1 %v3333_v32 }
 0xade   : > { %3087 = vmatpush3.bf16.msra.mxu0 %v3323_v37  ;;  %v3343_v37 = vld [vmem:[%s4043_s14 + $0x20] ss:$8 sps:$4 sm:$0xff]  }
 0xadf   : > { %3088 = vmatprep.subr.bf16.mxu0 %v3759_v7 }
 0xae0   : > { %2067 = vmatpush1.bf16.msra.mxu1 %v3331_v12 }
 0xae1   : > { %2068 = vmatprep.subr.bf16.mxu1 %v3336_v19 }
 0xae2   : > { %3089 = vmatpush3.bf16.msra.mxu0 %v3324_v38  ;;  %v3348_v38 = vld [vmem:[%s4043_s14 + $0x14] ss:$8 sps:$4 sm:$0xff]  }
 0xae3   : > { %3090 = vmatprep.subr.bf16.mxu0 %v3759_v7 }
 0xae4   : > { %2069 = vmatpush1.bf16.msra.mxu1 %v3334_v25 }
 0xae5   : > { %2070 = vmatprep.subr.bf16.mxu1 %v3339_v26 }
 0xae6   : > { %3091 = vmatpush3.bf16.msra.mxu0 %v3325_v30  ;;  %v3346_v30 = vld [vmem:[%s4043_s14 + $0x10] ss:$8 sps:$4 sm:$0xff]  }
 0xae7   : > { %3092 = vmatprep.subr.bf16.mxu0 %v3759_v7 }
 0xae8   : > { %2071 = vmatpush1.bf16.msra.mxu1 %v3337_v33 }
 0xae9   : > { %2072 = vmatprep.subr.bf16.mxu1 %v3342_v34 }
 0xaea   : > { %3093 = vmatpush3.bf16.msra.mxu0 %v3326_v39  ;;  %v3351_v39 = vld [vmem:[%s4043_s14 + $0x4] ss:$8 sps:$4 sm:$0xff]  }
 0xaeb   : > { %3094 = vmatprep.subr.bf16.mxu0 %v3759_v7 }
 0xaec   : > { %2073 = vmatpush1.bf16.msra.mxu1 %v3340_v35 }
 0xaed   : > { %2074 = vmatprep.subr.bf16.mxu1 %v3345_v36 }
 0xaee   : > { %3095 = vmatpush3.bf16.msra.mxu0 %v3327_v41  ;;  %v3352_v41 = vld [vmem:[%s4049_s22 + $0x78] sm:$0xff]  }
 0xaef   : > { %2924 = vmatprep.subr.bf16.mxu0 %v3352_v41 }
 0xaf0   : > { %2075 = vmatpush1.bf16.msra.mxu1 %v3343_v37  ;;  %v3410_v37 = vld [vmem:[%s4051_s12] sm:$0xff] }
 0xaf1   : > { %2076 = vmatprep.subr.bf16.mxu1 %v3348_v38 }
 0xaf4   : > { %2077 = vmatpush1.bf16.msra.mxu1 %v3346_v30 }
 0xaf5   : > { %2078 = vmatprep.subr.bf16.mxu1 %v3351_v39 }
 0xb91   : > { %v1727_v40 = vpop.f32.mrf.mxu0 }
 0xb93   : > { %v3072_v42 = vpop.f32.mrf.mxu0 }
 0xb94   : > { %v3353_v42 = vld [vmem:[%s4049_s22 + $0x38] sm:$0xff]  }
 0xb95   : > { %v1730_v20 = vpop.f32.mrf.mxu0 }
 0xb96   : > { %v3354_v20 = vld [vmem:[%s4049_s22 + $0x70] sm:$0xff]  }
 0xb97   : > { %v3073_v43 = vpop.f32.mrf.mxu0 }
 0xb98   : > { %v3355_v43 = vld [vmem:[%s4049_s22 + $0x30] sm:$0xff]  }
 0xb9b   : > { %v1775_v44 = vpop.f32.mrf.mxu1 }
 0xb9c   : > { %v3283_v45 = vpack.i.bf16 %v1775_v44, %v1727_v40  ;;  %v3349_v40 = vld [vmem:[%s4043_s14] ss:$8 sps:$4 sm:$0xff]  }
 0xb9d   : > { %v3078_v47 = vpop.f32.mrf.mxu1  ;;  %2079 = vmatpush1.bf16.msra.mxu1 %v3349_v40  ;;  %v3356_v44 = vld [vmem:[%s4049_s22 + $0x68] sm:$0xff]  }
 0xb9e   : > { %3284 = vrot.lane.b32.xlu0 %v3283_v45, %s3762_s20  ;;  %v3357_v45 = vld [vmem:[%s4049_s22 + $0x28] sm:$0xff]   ;;  %v3358_v47 = vld [vmem:[%s4049_s22 + $0x60] sm:$0xff]  }
 0xb9f   : > { %v1778_v49 = vpop.f32.mrf.mxu1 }
 0xba0   : > { %v3359_v49 = vld [vmem:[%s4049_s22 + $0x20] sm:$0xff]  }
 0xba1   : > { %v3079_v50 = vpop.f32.mrf.mxu1 }
 0xba2   : > { %v3360_v50 = vld [vmem:[%s4049_s22 + $0x58] sm:$0xff]  }
 0xc10   : > { %v3285_v7 = vpop.permute.xlu0 %3284 }
 0xc11   : > { %v3287_v62 = vunpack.i.h.bf16 %v3285_v7  ;;  %v3286_v63 = vunpack.i.l.bf16 %v3285_v7 }
 0xc13   : > { %v1812_v2 = vsel %vm1810_vm5, %v1809_v1, %v3287_v62  ;;  %v1811_v4 = vsel %vm1810_vm5, %v1808_v0, %v3286_v63  ;;  %v1950_v63 = vrot.slane %v4115_v48, %v1949_v57  ;;  %v1955_v0 = vsub.s32 5, %v4111_v46 }
 0xc14   : > { %v1813_v6 = vpack.c.bf16 %v1812_v2, %v1811_v4 }
 0xc16   : > { %3097 = vmatmul.mubr.bf16.vlgmr.msra.gmra.mxu0 %v1813_v6  ;;  %v1956_v6 = vrot.slane %v4115_v48, %v1955_v0 }
 0xc17   : > { %2925 = vmatpush3.bf16.msra.mxu0 %v3353_v42 }
 0xc18   : > { %2926 = vmatprep.subr.bf16.mxu0 %v3354_v20 }
 0xc1b   : > { %2927 = vmatpush3.bf16.msra.mxu0 %v3355_v43 }
 0xc1c   : > { %2928 = vmatprep.subr.bf16.mxu0 %v3356_v44 }
 0xc1f   : > { %2929 = vmatpush3.bf16.msra.mxu0 %v3357_v45 }
 0xc20   : > { %2930 = vmatprep.subr.bf16.mxu0 %v3358_v47 }
 0xc23   : > { %2931 = vmatpush3.bf16.msra.mxu0 %v3359_v49 }
 0xc24   : > { %2932 = vmatprep.subr.bf16.mxu0 %v3360_v50 }
 0xc27   : > { %2933 = vmatpush3.bf16.msra.mxu0 %v3361_v51 }
 0xcd6   : > { %v1916_v11 = vpop.f32.mrf.mxu0 }
 0xcd7   : > { %v1917_v13 = vadd.f32 %v1916_v11, %v1833_v10 }
 0xcd8   : > { %v3098_v15 = vpop.f32.mrf.mxu0 }
 0xcd9   : > { %v4322_v16 = vadd.f32 %v3408_v14, %v1917_v13  ;;  %v3362_v15 = vld [vmem:[%s4049_s22 + $0x50] sm:$0xff]  }
 0xcda   : > { %v1919_v9 = vpop.f32.mrf.mxu0  ;;  %v3363_v14 = vld [vmem:[%s4049_s22 + $0x10] sm:$0xff]   ;;  %2934 = vmatprep.subr.bf16.mxu0 %v3362_v15 }
 0xcdb   : > { %v1920_v17 = vadd.f32 %v1919_v9, %v1833_v10  ;;  %1925 = vadd.xlane.f32.xlu1 %v4322_v16  ;;  %2935 = vmatpush3.bf16.msra.mxu0 %v3363_v14  ;;  %v3364_v9 = vld [vmem:[%s4049_s22 + $0x48] sm:$0xff]  }
 0xcdc   : > { %v3099_v18 = vpop.f32.mrf.mxu0  ;;  %2936 = vmatprep.subr.bf16.mxu0 %v3364_v9 }
 0xcdd   : > { %v4325_v22 = vadd.f32 %v3409_v21, %v1920_v17  ;;  %v3365_v17 = vld [vmem:[%s4049_s22 + $0x8] sm:$0xff]   ;;  %v3366_v18 = vld [vmem:[%s4049_s22 + $0x40] sm:$0xff]  }
 0xcde   : > { %v3367_v21 = vld [vmem:[%s4049_s22] sm:$0xff]  }
 0xcdf   : > { %1927 = vadd.xlane.f32.xlu0 %v4325_v22  ;;  %2937 = vmatpush3.bf16.msra.mxu0 %v3365_v17 }
 0xce0   : > { %2938 = vmatprep.subr.bf16.mxu0 %v3366_v18 }
 0xce3   : > { %2939 = vmatpush3.bf16.msra.mxu0 %v3367_v21 }
 0xd64   : > { %v1926_v58 = vpop.xlane.xlu1 %1925 }
 0xd65   : > { %v1929_v27 = vmul.f32 0.0078125, %v1926_v58  ;;  %v1983_v58 = vrot.slane %v4127_v61, %v1978_v23  ;;  %v2286_v61 = vsub.s32 7, %v4111_v46 }
 0xd67   : > { %v4331_v60 = vsub.f32 %v4322_v16, %v1929_v27  ;;  %v1979_v27 = vrot.slane %v4115_v48, %v1978_v23  ;;  %v2287_v38 = vrot.slane %v3410_v37, %v2286_v61 }
 0xd68   : > { %v1928_v3 = vpop.xlane.xlu0 %1927 }
 0xd69   : > { %v1930_v5 = vmul.f32 0.0078125, %v1928_v3  ;;  %v1933_v28 = vmul.f32 %v4331_v60, %v4331_v60 }
 0xd6b   : > { %v4336_v29 = vsub.f32 %v4325_v22, %v1930_v5  ;;  %1935 = vadd.xlane.f32.xlu0 %v1933_v28 }
 0xd6d   : > { %v1934_v31 = vmul.f32 %v4336_v29, %v4336_v29 }
 0xd6f   : > { %1937 = vadd.xlane.f32.xlu0 %v1934_v31 }
 0xdf4   : > { %v1936_v52 = vpop.xlane.xlu0 %1935 }
 0xdf5   : > { %v1939_v53 = vmul.f32 0.0078125, %v1936_v52 }
 0xdf7   : > { %v1941_v54 = vadd.f32 1e-05, %v1939_v53 }
 0xdf8   : > { %v1938_v55 = vpop.xlane.xlu0 %1937 }
 0xdf9   : > { %3404 = vrsqrt.f32 %v1941_v54  ;;  %v1940_v56 = vmul.f32 0.0078125, %v1938_v55 }
 0xdfb   : > { %v1942_v7 = vadd.f32 1e-05, %v1940_v56 }
 0xdfd   : > { %3406 = vrsqrt.f32 %v1942_v7 }
 0xe06   : > { %v3405_v59 = vpop.eup %3404 }
 0xe07   : > { %v1945_v62 = vmul.f32 %v3405_v59, %v4331_v60 }
 0xe09   : > { %v1951_v4 = vmul.f32 %v1950_v63, %v1945_v62 }
 0xe0a   : > { %v3407_v1 = vpop.eup %3406 }
 0xe0b   : > { %v1946_v2 = vmul.f32 %v3407_v1, %v4336_v29  ;;  %v1957_v10 = vadd.f32 %v1956_v6, %v1951_v4 }
 0xe0d   : > { %v1952_v8 = vmul.f32 %v1950_v63, %v1946_v2 }
 0xe0f   : > { %v1958_v11 = vadd.f32 %v1956_v6, %v1952_v8 }
 0xe11   : > { %v1959_v13 = vpack.c.bf16 %v1958_v11, %v1957_v10 }
 0xe13   : > { %2097 = vmatmul.mubr.bf16.vlgmr.msra.gmra.mxu1 %v1959_v13 }
 0xed3   : > { %v2098_v24 = vpop.f32.mrf.mxu1 }
 0xed4   : > { %v2099_v29 = vadd.f32 %v2098_v24, %v1979_v27 }
 0xed5   : > { %v2100_v60 = vpop.f32.mrf.mxu1 }
 0xed6   : > { %v2101_v5 = vadd.f32 %v2100_v60, %v1983_v58  ;;  %v2107_v33 = vmax.f32 %v2099_v29, 0.0 }
 0xed7   : > { %v2102_v3 = vpop.f32.mrf.mxu1 }
 0xed8   : > { %v2103_v28 = vadd.f32 %v2102_v3, %v1979_v27  ;;  %v2108_v19 = vmax.f32 %v2101_v5, 0.0 }
 0xed9   : > { %v2104_v31 = vpop.f32.mrf.mxu1 }
 0xeda   : > { %v2105_v32 = vadd.f32 %v2104_v31, %v1983_v58  ;;  %v2109_v12 = vmax.f32 %v2103_v28, 0.0 }
 0xedc   : > { %v2110_v25 = vmax.f32 %v2105_v32, 0.0  ;;  %v2111_v34 = vpack.c.bf16 %v2109_v12, %v2107_v33 }
 0xede   : > { %v2112_v26 = vpack.c.bf16 %v2110_v25, %v2108_v19 }
 0xee0   : > { %2273 = vmatprep.mubr.bf16.mxu0 %v2112_v26 }
 0xee1   : > { %2274 = vmatmul.mubr.bf16.vlgmr.msra.gmra.mxu0 %v2111_v34 }
 0xfa1   : > { %v2940_v35 = vpop.f32.mrf.mxu0 }
 0xfa3   : > { %v2941_v48 = vpop.f32.mrf.mxu0 }
 0xfa4   : > { %v2942_v36 = vadd.f32 %v2941_v48, %v2940_v35 }
 0xfa5   : > { %v2943_v30 = vpop.f32.mrf.mxu0 }
 0xfa6   : > { %v2282_v39 = vadd.f32 %v2942_v36, %v4322_v16 }
 0xfa7   : > { %v2944_v40 = vpop.f32.mrf.mxu0 }
 0xfa8   : > { %v2288_v41 = vadd.f32 %v2287_v38, %v2282_v39  ;;  %v2945_v42 = vadd.f32 %v2944_v40, %v2943_v30  ;;  %2293 = sbr.rel (%p2843_p5) target bundleno = 4015 (0xfaf), region = 100 }
 0xfaa   : > { %v2283_v20 = vadd.f32 %v2945_v42, %v4325_v22 }
 0xfac   : > { %v2289_v43 = vadd.f32 %v2287_v38, %v2283_v20 }
 0xfad   : > { %2294 = vst [vmem:[#allocation2] sm:$0xff] %v2288_v41 }
 0xfae   : > { %2295 = vst [vmem:[#allocation2 + $0x8] sm:$0xff] %v2289_v43 }
 0xfaf PF: > { %s4499_s9 = sld [smem:[#allocation27_spill]] }
 0xfb5   : > { %p2844_p7 = scmp.ne.s32.totalorder %s4499_s9, 1 }
 0xfb6   : > { %s4500_s24 = sld [smem:[#allocation34_spill]] (!%p2844_p7) }
 0xfb7   : > { %2299 = sbr.rel (%p2844_p7) target bundleno = 4459 (0x116b), region = 104  ;;  %s4501_s10 = sld [smem:[#allocation35_spill]] (!%p2844_p7) }
 0xfbc   : > { %v3411_v46 = vld [vmem:[#allocation14 + $0x38] sm:$0xff]   ;;  %v3765_v44 = vmov 0.0   ;;  %v3412_v16 = vld [vmem:[#allocation14 + $0x30] sm:$0xff]   ;;  %vm3766_vm6 = vmmov 0   ;;  %v2300_v22 = vrot.slane %v2288_v41, 4  ;;  %v2306_v45 = vrot.slane %v2289_v43, 4 }
 0xfbd   : > { %3100 = vmatprep.subr.bf16.mxu0 %v3765_v44  ;;  %3120 = vmatprep.subr.bf16.mxu1 %v3765_v44  ;;  %v3413_v50 = vld [vmem:[#allocation14 + $0x28] sm:$0xff]   ;;  %v3419_v54 = vld [vmem:[#allocation15 + $0x38] sm:$0xff]   ;;  %v3414_v55 = vld [vmem:[#allocation14 + $0x20] sm:$0xff]   ;;  %vm2343_vm7 = vcmask 1041409  }
 0xfbe   : > { %3101 = vmatpush3.bf16.msra.mxu0 %v3411_v46  ;;  %3116 = vmatprep.mubr.msk.bf16.mxu0 %vm3766_vm6, %v3765_v44  ;;  %v2301_v47 = vadd.f32 %v2300_v22, %v2288_v41  ;;  %v2307_v49 = vadd.f32 %v2306_v45, %v2289_v43  ;;  %v3420_v57 = vld [vmem:[#allocation15 + $0x30] sm:$0xff]   ;;  %v3415_v0 = vld [vmem:[#allocation14 + $0x18] sm:$0xff]   ;;  %v3421_v2 = vld [vmem:[#allocation15 + $0x28] sm:$0xff]  }
 0xfbf   : > { %3102 = vmatprep.subr.bf16.mxu0 %v3765_v44  ;;  %3136 = vmatprep.mubr.msk.bf16.mxu1 %vm3766_vm6, %v3765_v44  ;;  %v3416_v6 = vld [vmem:[#allocation14 + $0x10] sm:$0xff]   ;;  %v3422_v11 = vld [vmem:[#allocation15 + $0x20] sm:$0xff]   ;;  %v3417_v13 = vld [vmem:[#allocation14 + $0x8] sm:$0xff]  }
 0xfc0   : > { %v2302_v51 = vrot.slane %v2301_v47, 2  ;;  %v2308_v52 = vrot.slane %v2307_v49, 2  ;;  %3121 = vmatpush3.bf16.msra.mxu1 %v3419_v54  ;;  %v3423_v9 = vld [vmem:[#allocation15 + $0x18] sm:$0xff]   ;;  %v3418_v17 = vld [vmem:[#allocation14] sm:$0xff]   ;;  %v3424_v21 = vld [vmem:[#allocation15 + $0x10] sm:$0xff]  }
 0xfc1   : > { %3122 = vmatprep.subr.bf16.mxu1 %v3765_v44  ;;  %v3425_v24 = vld [vmem:[#allocation15 + $0x8] sm:$0xff]   ;;  %v3426_v58 = vld [vmem:[#allocation15] sm:$0xff]   ;;  %v2845_v27 = vld [vmem:[%s4500_s24] ss:$0 sm:$0xff] }
 0xfc2   : > { %3103 = vmatpush3.bf16.msra.mxu0 %v3412_v16  ;;  %v2303_v53 = vadd.f32 %v2302_v51, %v2301_v47  ;;  %v2309_v56 = vadd.f32 %v2308_v52, %v2307_v49  ;;  %v2854_v12 = vld [vmem:[%s4501_s10] ss:$0 sm:$0xff] }
 0xfc3   : > { %3104 = vmatprep.subr.bf16.mxu0 %v3765_v44 }
 0xfc4   : > { %v2304_v7 = vrot.slane %v2303_v53, 1  ;;  %v2310_v59 = vrot.slane %v2309_v56, 1  ;;  %3123 = vmatpush3.bf16.msra.mxu1 %v3420_v57 }
 0xfc5   : > { %3124 = vmatprep.subr.bf16.mxu1 %v3765_v44 }
 0xfc6   : > { %3105 = vmatpush3.bf16.msra.mxu0 %v3413_v50  ;;  %v2305_v62 = vadd.f32 %v2304_v7, %v2303_v53  ;;  %v2311_v63 = vadd.f32 %v2310_v59, %v2309_v56 }
 0xfc7   : > { %3106 = vmatprep.subr.bf16.mxu0 %v3765_v44 }
 0xfc8   : > { %v2312_v1 = vmul.f32 0.125, %v2305_v62  ;;  %v2313_v4 = vmul.f32 0.125, %v2311_v63  ;;  %3125 = vmatpush3.bf16.msra.mxu1 %v3421_v2 }
 0xfc9   : > { %3126 = vmatprep.subr.bf16.mxu1 %v3765_v44 }
 0xfca   : > { %3107 = vmatpush3.bf16.msra.mxu0 %v3414_v55  ;;  %v2314_v8 = vpack.c.bf16 %v2312_v1, %v2312_v1  ;;  %v2315_v10 = vpack.c.bf16 %v2313_v4, %v2313_v4 }
 0xfcb   : > { %3108 = vmatprep.subr.bf16.mxu0 %v3765_v44 }
 0xfcc   : > { %v2341_v15 = vunpack.c.l.b16 %v2314_v8  ;;  %v2342_v14 = vunpack.c.l.b16 %v2315_v10  ;;  %3127 = vmatpush3.bf16.msra.mxu1 %v3422_v11 }
 0xfcd   : > { %3128 = vmatprep.subr.bf16.mxu1 %v3765_v44 }
 0xfce   : > { %3109 = vmatpush3.bf16.msra.mxu0 %v3415_v0  ;;  %v2344_v18 = vsel %vm2343_vm7, %v2342_v14, %v2341_v15 }
 0xfcf   : > { %3110 = vmatprep.subr.bf16.mxu0 %v3765_v44  ;;  %v2345_v23 = vpack.c.b16 %v2344_v18, %v2344_v18 }
 0xfd0   : > { %3129 = vmatpush3.bf16.msra.mxu1 %v3423_v9 }
 0xfd1   : > { %3130 = vmatprep.subr.bf16.mxu1 %v3765_v44 }
 0xfd2   : > { %3111 = vmatpush3.bf16.msra.mxu0 %v3416_v6 }
 0xfd3   : > { %3112 = vmatprep.subr.bf16.mxu0 %v3765_v44 }
 0xfd4   : > { %3131 = vmatpush3.bf16.msra.mxu1 %v3424_v21 }
 0xfd5   : > { %3132 = vmatprep.subr.bf16.mxu1 %v3765_v44 }
 0xfd6   : > { %3113 = vmatpush3.bf16.msra.mxu0 %v3417_v13 }
 0xfd7   : > { %3114 = vmatprep.subr.bf16.mxu0 %v3765_v44 }
 0xfd8   : > { %3133 = vmatpush3.bf16.msra.mxu1 %v3425_v24 }
 0xfd9   : > { %3134 = vmatprep.subr.bf16.mxu1 %v3765_v44 }
 0xfda   : > { %3115 = vmatpush3.bf16.msra.mxu0 %v3418_v17 }
 0xfdc   : > { %3135 = vmatpush3.bf16.msra.mxu1 %v3426_v58 }
 0xfdd   : > { %3117 = vmatmul.mubr.bf16.vlgmr.msra.gmra.mxu0 %v2345_v23 }
0x109d   : > { %v2429_v60 = vpop.f32.mrf.mxu0 }
0x109e   : > { %v2430_v3 = vadd.f32 %v2845_v27, %v2429_v60 }
0x109f   : > { %v3118_v5 = vpop.f32.mrf.mxu0 }
0x10a0   : > { %v2435_v28 = vmax.f32 %v2430_v3, 0.0 }
0x10a1   : > { %v2432_v29 = vpop.f32.mrf.mxu0 }
0x10a2   : > { %v2436_v31 = vpack.c.bf16 %v2435_v28, %v2435_v28 }
0x10a3   : > { %v3119_v32 = vpop.f32.mrf.mxu0 }
0x10a4   : > { %3137 = vmatmul.mubr.bf16.vlgmr.msra.gmra.mxu1 %v2436_v31 }
0x1164   : > { %v2542_v19 = vpop.f32.mrf.mxu1 }
0x1165   : > { %v2543_v25 = vadd.f32 %v2854_v12, %v2542_v19 }
0x1166   : > { %v3138_v33 = vpop.f32.mrf.mxu1 }
0x1167   : > { %2548 = vst [vmem:[#allocation17] sm:$0x3] %v2543_v25 }
0x1168   : > { %v2545_v26 = vpop.f32.mrf.mxu1 }
0x116a   : > { %v3139_v34 = vpop.f32.mrf.mxu1 }
0x116b PF: > { %p3205_p9 = scmp.eq.s32.totalorder %s3852_s19, 1  ;;  %s3767_s25 = smov [#allocation17]  }
0x116c   : > { %s2558_s11 = sshll.u32 %s3767_s25, 4  ;;  %s2559_s11 = int_to_ptr.vmem [resolvable:$true] %s2558_s11 }
0x116d   : > { %s3645_s7 = scalar_lea.vmem %s2559_s11, 32  ;;  %p3652_p1 = scmp.lt.s32.totalorder %s2559_s11, %s2559_s11 }
0x116e   : > { %p3646_p3 = scmp.ne.s32.totalorder %s2559_s11, %s3645_s7  ;;  %p3653_p12 = scmp.lt.s32.totalorder %s3645_s7, %s3645_s7 }
0x1170   : > { %p3647_p11 = pnand %p3646_p3, %p3205_p9  ;;  %p3654_p6 = por %p3653_p12, %p3652_p1 }
0x1172   : > { %p3648_p4 = pneg %p3647_p11 }
0x1174   : > { %p3655_p8 = pnand %p3654_p6, %p3648_p4 }
0x1176   : > { %3658 = shalt.err (!%p3655_p8)
}
0x1177   : > { %s4502_s26 = sld [smem:[#allocation36_spill]] }
0x117d   : > { %3169 = dma.vmem_to_hbm [thread:$0]  (%p3205_p9), %s2559_s11, 32, %s4502_s26, [#allocation5]  }
0x117e   : > { %3718 = dma.done.wait (%p3205_p9), [#allocation5], 32  }
0x117f   : > { %3720 = vsyncadd (%p3205_p9), [#allocation5], 4294967264 }
0x1180 PF: > { %s4503_s14 = sld [smem:[#allocation28_spill]]  ;;  %s4508_s16 = smov %s3739_s17 }
0x1181   : > { %s4504_s13 = sld [smem:[#allocation25_spill]] }
0x1182   : > { %s4506_s15 = sld [smem:[#allocation31_spill]] }
0x1183   : > { %s4507_s22 = sld [smem:[#allocation30_spill]] }
0x1186   : > { %s32_s18 = sadd.s32 1, %s4503_s14   ;;  %s4505_s14 = sld [smem:[#allocation26_spill]] }
0x1187   : > { %p29_p0 = scmp.ge.s32.totalorder %s32_s18, 4  }
0x1189   : > { %s4509_s17 = smov %s4507_s22  ;;  %31 = sbr.rel (!%p29_p0) target bundleno = 17 (0x11), region = 172 }
0x118e   :  { %2571 = vsyncpa [#allocation4], 1 }
0x118f   :  { %2573 = vsyncpa [#allocation4 + $0x1], 1 }
0x1190   :  { %2574 = vsyncpa [#allocation7], 1 }
0x1191   :  { %2576 = vsyncpa [#allocation7 + $0x1], 1 }
0x1192   :  { %2577 = vsyncpa [#allocation10], 1 }
0x1193   :  { %2579 = vsyncpa [#allocation10 + $0x1], 1 }
0x1194   :  { %2580 = vsyncpa [#allocation13], 1 }
0x1195   :  { %2582 = vsyncpa [#allocation13 + $0x1], 1 }
0x1196   :  { %2583 = vsyncpa [#allocation16], 1 }
0x1197   :  { %2584 = vsyncpa [#allocation5], 1 }
0x1198   :  { %2586 = vsyncpa [#allocation5 + $0x1], 1 }

</bundles_post_ra>
